<compile_context>
chip_gen: v7x
topology: tpu7x:2x2x1
jax: 0.10.0
libtpu: 0.0.40
codegen_flags: <defaults>
</compile_context>

<pallas_src>
import jax
import jax.numpy as jnp
from jax import lax
from jax.experimental import pallas as pl
from jax.experimental.pallas import tpu as pltpu


class Config:
    channel = 4
    n_feature = 8
    D_kernel_size = 3
    D_stride = 2
    factor = 2


# ----------------------------------------------------------------------------
# Static network geometry (32x32 input, k=3, strides 2/2/2/1/1, pads 0/0/0/1/1)
# ----------------------------------------------------------------------------
K = 3
H_IN = 32
C_IN = 4
NF = 8
H1 = (H_IN - K) // 2 + 1      # 15   conv1
H2 = (H1 - K) // 2 + 1        # 7    conv2
H3 = (H2 - K) // 2 + 1        # 3    conv3 / conv4 / last (stride 1, pad 1)
C1, C2, C3, C4, C5 = NF, NF * 2, NF * 4, NF * 8, C_IN       # 8, 16, 32, 64, 4

XP_ROWS = 256                 # packed input rows: (h//2)*16 + (w//2)
XP_LANES = 16                 # packed input lanes: (h%2)*8 + (w%2)*4 + c
M1 = 16 * (H1 - 1) + H1       # 239: conv1 acc rows, n = 16*oh + ow
S1_ROWS = 240
M2 = 16 * (H2 - 1) + H2       # 103: conv2 acc rows, n = 16*oh + ow
S2_ROWS = 112
M3 = 16 * (H3 - 1) + H3       # 35 : conv3/4/5 acc rows, n = 16*oh + ow
PAD_OFF = 17                  # row of padded-image position (1,1) in s3/s4
S34_ROWS = 72                 # 16-wide-row zero-padded 5x5 image (rows 0..68)
EPS = 1e-5
SLOPE = 0.01                  # nn.LeakyReLU default negative_slope


# ----------------------------------------------------------------------------
# Fused kernel: one grid step = one sample, entire network in VMEM / registers
# ----------------------------------------------------------------------------
def _disc_kernel(xp_ref, w1_ref, b1_ref, w2_ref, w3_ref, w4_ref, w5_ref, b5_ref,
                 o_ref, s1, s2, s3, s4):
    f32 = jnp.float32

    def leaky(v):
        return jnp.where(v >= 0, v, SLOPE * v)

    def conv_taps(src_ref, w_ref, m, stride):
        """Sum of 9 per-tap matmuls over full-layer slabs of `src_ref`."""
        acc = None
        for kh in range(K):
            for kw in range(K):
                base = 16 * kh + kw
                if stride == 2:
                    lhs = src_ref[pl.ds(base, m, stride=2), :]
                else:
                    lhs = src_ref[base:base + m, :]
                t = jnp.dot(lhs, w_ref[kh * K + kw], preferred_element_type=f32)
                acc = t if acc is None else acc + t
        return acc

    def inorm_leaky(acc, h):
        """InstanceNorm (stats over the h*h real rows, in registers) + leaky."""
        chunks = [acc[16 * i:16 * i + h] for i in range(h)]
        npos = float(h * h)
        mean = sum(jnp.sum(c, axis=0, keepdims=True) for c in chunks) / npos
        var = sum(jnp.sum(jnp.square(c - mean), axis=0, keepdims=True)
                  for c in chunks) / npos
        return leaky((acc - mean) * lax.rsqrt(var + EPS))

    # mask of the 3x3 "real" rows in the 35-row accumulator layout (n % 16 < 3)
    row_ids = lax.broadcasted_iota(jnp.int32, (M3, 1), 0)
    mask3 = ((row_ids % 16) < H3).astype(f32)

    # ---- conv1 (4->8, s2) + leaky1: 4 grouped dots over the parity-packed input
    acc = jnp.dot(xp_ref[0, 0:M1, :], w1_ref[0], preferred_element_type=f32)
    acc = acc + jnp.dot(xp_ref[0, 1:1 + M1, :], w1_ref[1],
                        preferred_element_type=f32)
    acc = acc + jnp.dot(xp_ref[0, 16:16 + M1, :], w1_ref[2],
                        preferred_element_type=f32)
    acc = acc + jnp.dot(xp_ref[0, 17:17 + M1, :], w1_ref[3],
                        preferred_element_type=f32)
    s1[0:M1, :] = leaky(acc + b1_ref[...])          # rows n = 16*oh1 + ow1

    # ---- conv2 (8->16, s2) + instance2 + leaky2 (bias cancelled by the norm) --
    acc = conv_taps(s1, w2_ref, M2, 2)              # (103, 16)
    s2[0:M2, :] = inorm_leaky(acc, H2)              # rows n = 16*oh2 + ow2

    # ---- conv3 (16->32, s2) + instance3 + leaky3 -> zero-padded 5x5 buffer ----
    acc = conv_taps(s2, w3_ref, M3, 2)              # (35, 32)
    s3[...] = jnp.zeros(s3.shape, f32)              # zero padding halo/extension
    s3[PAD_OFF:PAD_OFF + M3, :] = mask3 * inorm_leaky(acc, H3)

    # ---- conv4 (32->64, s1, pad1) + instance4 + leaky4 ------------------------
    acc = conv_taps(s3, w4_ref, M3, 1)              # (35, 64)
    s4[...] = jnp.zeros(s4.shape, f32)
    s4[PAD_OFF:PAD_OFF + M3, :] = mask3 * inorm_leaky(acc, H3)

    # ---- last conv (64->4, s1, pad1) + sigmoid, single output store -----------
    acc = conv_taps(s4, w5_ref, M3, 1)              # (35, 4)
    y = jnp.concatenate([acc[16 * i:16 * i + H3] for i in range(H3)], axis=0)
    z = y + b5_ref[...]                             # (9, 4)
    o_ref[0] = 1.0 / (1.0 + jnp.exp(-z))


# ----------------------------------------------------------------------------
# Plain-JAX wrapper glue (one same-size packing transpose in the hot path)
# ----------------------------------------------------------------------------
def _pack_input(x_nchw):
    """(N,4,32,32) NCHW -> (N,256,16): row=(h//2)*16+(w//2), lane=(h%2)*8+(w%2)*4+c."""
    n = x_nchw.shape[0]
    x = x_nchw.astype(jnp.float32).reshape(n, C_IN, 16, 2, 16, 2)  # (N,c,h2,hp,w2,wp)
    x = jnp.transpose(x, (0, 2, 4, 3, 5, 1))                       # (N,h2,w2,hp,wp,c)
    return x.reshape(n, XP_ROWS, XP_LANES)


def prep_params(params):
    """PyTorch-layout params -> kernel-layout params (call ONCE, off hot path).

    conv1 weights are grouped by (kh//2, kw//2) with K-dim lane order
    (kh%2, kw%2, cin); conv2..5 become (k*k, cin, cout) tap matrices.
    b2/b3/b4 are dropped: a per-channel bias immediately followed by
    InstanceNorm cancels exactly (mean shifts by b, variance unchanged).
    """
    (w1, b1), (w2, _b2), (w3, _b3), (w4, _b4), (w5, b5) = params
    w1t = jnp.transpose(w1, (2, 3, 1, 0))                    # (kh,kw,cin,cout)
    w1p = jnp.pad(w1t, ((0, 1), (0, 1), (0, 0), (0, 0)))     # pad kh,kw -> 4
    w1g = jnp.transpose(w1p.reshape(2, 2, 2, 2, C_IN, C1),   # (a,hp,b,wp,c,co)
                        (0, 2, 1, 3, 4, 5)).reshape(4, XP_LANES, C1)

    def taps(w):                                             # (co,ci,3,3)->(9,ci,co)
        return jnp.transpose(w, (2, 3, 1, 0)).reshape(K * K, w.shape[1], w.shape[0])

    return (w1g, b1.reshape(1, C1), taps(w2), taps(w3), taps(w4), taps(w5),
            b5.reshape(1, C5))


@jax.jit
def discriminator_forward(kparams, x_nchw):
    w1g, b1, w2, w3, w4, w5, b5 = kparams
    n = x_nchw.shape[0]
    xp = _pack_input(x_nchw)

    out = pl.pallas_call(
        _disc_kernel,
        out_shape=jax.ShapeDtypeStruct((n, H3 * H3, C5), jnp.float32),
        grid=(n,),
        in_specs=[
            pl.BlockSpec((1, XP_ROWS, XP_LANES), lambda i: (i, 0, 0)),
            pl.BlockSpec((4, XP_LANES, C1), lambda i: (0, 0, 0)),
            pl.BlockSpec((1, C1), lambda i: (0, 0)),
            pl.BlockSpec((K * K, C1, C2), lambda i: (0, 0, 0)),
            pl.BlockSpec((K * K, C2, C3), lambda i: (0, 0, 0)),
            pl.BlockSpec((K * K, C3, C4), lambda i: (0, 0, 0)),
            pl.BlockSpec((K * K, C4, C5), lambda i: (0, 0, 0)),
            pl.BlockSpec((1, C5), lambda i: (0, 0)),
        ],
        out_specs=pl.BlockSpec((1, H3 * H3, C5), lambda i: (i, 0, 0)),
        scratch_shapes=[
            pltpu.VMEM((S1_ROWS, C1), jnp.float32),
            pltpu.VMEM((S2_ROWS, C2), jnp.float32),
            pltpu.VMEM((S34_ROWS, C3), jnp.float32),
            pltpu.VMEM((S34_ROWS, C4), jnp.float32),
        ],
        compiler_params=pltpu.CompilerParams(
            dimension_semantics=("parallel",)),      # batch across TCs on v7x
    )(xp, w1g, b1, w2, w3, w4, w5, b5)

    out = out.reshape(n, H3, H3, C5)
    return jnp.transpose(out, (0, 3, 1, 2))          # NHWC -> NCHW


# ----------------------------------------------------------------------------
# Parameter construction and pure-JAX reference (correctness oracle)
# ----------------------------------------------------------------------------
def init_params(key, cfg):
    """PyTorch-layout weights (Cout, Cin, k, k) and biases (Cout,)."""
    k = cfg.D_kernel_size
    nf, f, c = cfg.n_feature, cfg.factor, cfg.channel
    dims = [(c, nf), (nf, nf * f), (nf * f, nf * f ** 2),
            (nf * f ** 2, nf * f ** 3), (nf * f ** 3, c)]
    params = []
    for cin, cout in dims:
        key, kw_, kb_ = jax.random.split(key, 3)
        bound = 1.0 / float(k * k * cin) ** 0.5
        w = jax.random.uniform(kw_, (cout, cin, k, k), jnp.float32, -bound, bound)
        b = jax.random.uniform(kb_, (cout,), jnp.float32, -bound, bound)
        params.append((w, b))
    return params


@jax.jit
def _reference_forward(params, x_nchw):
    x = jnp.transpose(x_nchw, (0, 2, 3, 1)).astype(jnp.float32)

    def conv(v, w, b, stride, pad):
        w_hwio = jnp.transpose(w, (2, 3, 1, 0))
        y = lax.conv_general_dilated(
            v, w_hwio, window_strides=(stride, stride),
            padding=[(pad, pad), (pad, pad)],
            dimension_numbers=("NHWC", "HWIO", "NHWC"))
        return y + b.reshape(1, 1, 1, -1)

    def leaky(v):
        return jnp.where(v >= 0, v, SLOPE * v)

    def inorm(v):
        m = jnp.mean(v, axis=(1, 2), keepdims=True)
        var = jnp.mean(jnp.square(v - m), axis=(1, 2), keepdims=True)
        return (v - m) * lax.rsqrt(var + EPS)

    (w1, b1), (w2, b2), (w3, b3), (w4, b4), (w5, b5) = params
    y = leaky(conv(x, w1, b1, 2, 0))
    y = leaky(inorm(conv(y, w2, b2, 2, 0)))
    y = leaky(inorm(conv(y, w3, b3, 2, 0)))
    y = leaky(inorm(conv(y, w4, b4, 1, 1)))
    y = 1.0 / (1.0 + jnp.exp(-conv(y, w5, b5, 1, 1)))
    return jnp.transpose(y, (0, 3, 1, 2))


# ----------------------------------------------------------------------------

if __name__ == "__main__":
    cfg = Config()
    key = jax.random.PRNGKey(0)
    key, kx = jax.random.split(key)

    x = jax.random.normal(kx, (2, cfg.channel, H_IN, H_IN), jnp.float32)  # NCHW
    params = init_params(key, cfg)
    kparams = prep_params(params)                    # one-time weight re-layout

    out = jax.block_until_ready(discriminator_forward(kparams, x))
    assert out.shape == (2, cfg.channel, H3, H3), out.shape
    assert bool(jnp.all(jnp.isfinite(out)))
    assert bool(jnp.all((out >= 0.0) & (out <= 1.0)))    # sigmoid output range

    ref = jax.block_until_ready(_reference_forward(params, x))
    err = float(jnp.max(jnp.abs(out - ref)))
    assert err < 2e-3, f"max abs error vs reference: {err}"

    print("KERNEL_OK")
</pallas_src>

<mosaic_0001>
module attributes {stable_mosaic.version = 11 : i64} {
  func.func @_disc_kernel(%arg0: i32, %arg1: memref<1x256x16xf32, #tpu.memory_space<vmem>>, %arg2: memref<4x16x8xf32, #tpu.memory_space<vmem>>, %arg3: memref<1x8xf32, #tpu.memory_space<vmem>>, %arg4: memref<9x8x16xf32, #tpu.memory_space<vmem>>, %arg5: memref<9x16x32xf32, #tpu.memory_space<vmem>>, %arg6: memref<9x32x64xf32, #tpu.memory_space<vmem>>, %arg7: memref<9x64x4xf32, #tpu.memory_space<vmem>>, %arg8: memref<1x4xf32, #tpu.memory_space<vmem>>, %arg9: memref<1x9x4xf32, #tpu.memory_space<vmem>>, %arg10: memref<240x8xf32, #tpu.memory_space<vmem>>, %arg11: memref<112x16xf32, #tpu.memory_space<vmem>>, %arg12: memref<72x32xf32, #tpu.memory_space<vmem>>, %arg13: memref<72x64xf32, #tpu.memory_space<vmem>>) attributes {dimension_semantics = [#tpu.dimension_semantics<parallel>], iteration_bounds = array<i64: 2>, scalar_prefetch = 0 : i64, scratch_operands = 4 : i64, tpu.core_type = #tpu.core_type<tc>, window_params = [{transform_indices = @transform_0, window_bounds = array<i64: 1, 256, 16>}, {pipeline_mode = #tpu.pipeline_mode<synchronous>, transform_indices = @transform_1, window_bounds = array<i64: 4, 16, 8>}, {pipeline_mode = #tpu.pipeline_mode<synchronous>, transform_indices = @transform_2, window_bounds = array<i64: 1, 8>}, {pipeline_mode = #tpu.pipeline_mode<synchronous>, transform_indices = @transform_3, window_bounds = array<i64: 9, 8, 16>}, {pipeline_mode = #tpu.pipeline_mode<synchronous>, transform_indices = @transform_4, window_bounds = array<i64: 9, 16, 32>}, {pipeline_mode = #tpu.pipeline_mode<synchronous>, transform_indices = @transform_5, window_bounds = array<i64: 9, 32, 64>}, {pipeline_mode = #tpu.pipeline_mode<synchronous>, transform_indices = @transform_6, window_bounds = array<i64: 9, 64, 4>}, {pipeline_mode = #tpu.pipeline_mode<synchronous>, transform_indices = @transform_7, window_bounds = array<i64: 1, 4>}, {transform_indices = @transform_8, window_bounds = array<i64: 1, 9, 4>}]} {
    %0 = tpu.iota {dimensions = array<i32: 0>} : vector<35x1xi32>
    %c16_i32 = arith.constant 16 : i32
    %c0_i32 = arith.constant 0 : i32
    %1 = arith.cmpi eq, %c16_i32, %c0_i32 : i32
    %c1_i32 = arith.constant 1 : i32
    %2 = arith.select %1, %c1_i32, %c16_i32 : i32
    %3 = vector.broadcast %2 : i32 to vector<35x1xi32>
    %4 = arith.remsi %0, %3 : vector<35x1xi32>
    %c0_i32_0 = arith.constant 0 : i32
    %5 = vector.broadcast %c0_i32_0 : i32 to vector<35x1xi32>
    %6 = arith.cmpi ne, %4, %5 : vector<35x1xi32>
    %c0_i32_1 = arith.constant 0 : i32
    %7 = vector.broadcast %c0_i32_1 : i32 to vector<35x1xi32>
    %8 = arith.cmpi slt, %4, %7 : vector<35x1xi32>
    %c0_i32_2 = arith.constant 0 : i32
    %9 = arith.cmpi slt, %2, %c0_i32_2 : i32
    %10 = vector.broadcast %9 : i1 to vector<35x1xi1>
    %11 = vector.broadcast %10 : vector<35x1xi1> to vector<35x1xi1>
    %12 = arith.xori %8, %11 : vector<35x1xi1>
    %13 = arith.andi %12, %6 : vector<35x1xi1>
    %14 = vector.broadcast %2 : i32 to vector<35x1xi32>
    %15 = arith.addi %4, %14 : vector<35x1xi32>
    %16 = arith.select %13, %15, %4 : vector<35x1xi1>, vector<35x1xi32>
    %c3_i32 = arith.constant 3 : i32
    %17 = vector.broadcast %c3_i32 : i32 to vector<35x1xi32>
    %18 = arith.cmpi slt, %16, %17 : vector<35x1xi32>
    %19 = arith.extui %18 : vector<35x1xi1> to vector<35x1xi32>
    %20 = arith.sitofp %19 : vector<35x1xi32> to vector<35x1xf32>
    %c0 = arith.constant 0 : index
    %c0_3 = arith.constant 0 : index
    %c0_4 = arith.constant 0 : index
    %21 = vector.load %arg1[%c0, %c0_3, %c0_4] : memref<1x256x16xf32, #tpu.memory_space<vmem>>, vector<1x239x16xf32>
    %22 = vector.shape_cast %21 : vector<1x239x16xf32> to vector<239x16xf32>
    %c0_5 = arith.constant 0 : index
    %c0_6 = arith.constant 0 : index
    %c0_7 = arith.constant 0 : index
    %23 = vector.load %arg2[%c0_5, %c0_6, %c0_7] : memref<4x16x8xf32, #tpu.memory_space<vmem>>, vector<1x16x8xf32>
    %24 = vector.shape_cast %23 : vector<1x16x8xf32> to vector<16x8xf32>
    %cst = arith.constant dense<0.000000e+00> : vector<239x8xf32>
    %25 = tpu.matmul %22, %24, %cst {dimension_numbers = #tpu.dot_dimension_numbers<[1], [0], [0], [1], [0, 0, 1, 1], [], []>} : vector<239x16xf32>, vector<16x8xf32>, vector<239x8xf32> -> vector<239x8xf32>
    %c0_8 = arith.constant 0 : index
    %c1 = arith.constant 1 : index
    %c0_9 = arith.constant 0 : index
    %26 = vector.load %arg1[%c0_8, %c1, %c0_9] : memref<1x256x16xf32, #tpu.memory_space<vmem>>, vector<1x239x16xf32>
    %27 = vector.shape_cast %26 : vector<1x239x16xf32> to vector<239x16xf32>
    %c1_10 = arith.constant 1 : index
    %c0_11 = arith.constant 0 : index
    %c0_12 = arith.constant 0 : index
    %28 = vector.load %arg2[%c1_10, %c0_11, %c0_12] : memref<4x16x8xf32, #tpu.memory_space<vmem>>, vector<1x16x8xf32>
    %29 = vector.shape_cast %28 : vector<1x16x8xf32> to vector<16x8xf32>
    %cst_13 = arith.constant dense<0.000000e+00> : vector<239x8xf32>
    %30 = tpu.matmul %27, %29, %cst_13 {dimension_numbers = #tpu.dot_dimension_numbers<[1], [0], [0], [1], [0, 0, 1, 1], [], []>} : vector<239x16xf32>, vector<16x8xf32>, vector<239x8xf32> -> vector<239x8xf32>
    %31 = arith.addf %25, %30 : vector<239x8xf32>
    %c0_14 = arith.constant 0 : index
    %c16 = arith.constant 16 : index
    %c0_15 = arith.constant 0 : index
    %32 = vector.load %arg1[%c0_14, %c16, %c0_15] : memref<1x256x16xf32, #tpu.memory_space<vmem>>, vector<1x239x16xf32>
    %33 = vector.shape_cast %32 : vector<1x239x16xf32> to vector<239x16xf32>
    %c2 = arith.constant 2 : index
    %c0_16 = arith.constant 0 : index
    %c0_17 = arith.constant 0 : index
    %34 = vector.load %arg2[%c2, %c0_16, %c0_17] : memref<4x16x8xf32, #tpu.memory_space<vmem>>, vector<1x16x8xf32>
    %35 = vector.shape_cast %34 : vector<1x16x8xf32> to vector<16x8xf32>
    %cst_18 = arith.constant dense<0.000000e+00> : vector<239x8xf32>
    %36 = tpu.matmul %33, %35, %cst_18 {dimension_numbers = #tpu.dot_dimension_numbers<[1], [0], [0], [1], [0, 0, 1, 1], [], []>} : vector<239x16xf32>, vector<16x8xf32>, vector<239x8xf32> -> vector<239x8xf32>
    %37 = arith.addf %31, %36 : vector<239x8xf32>
    %c0_19 = arith.constant 0 : index
    %c17 = arith.constant 17 : index
    %c0_20 = arith.constant 0 : index
    %38 = vector.load %arg1[%c0_19, %c17, %c0_20] : memref<1x256x16xf32, #tpu.memory_space<vmem>>, vector<1x239x16xf32>
    %39 = vector.shape_cast %38 : vector<1x239x16xf32> to vector<239x16xf32>
    %c3 = arith.constant 3 : index
    %c0_21 = arith.constant 0 : index
    %c0_22 = arith.constant 0 : index
    %40 = vector.load %arg2[%c3, %c0_21, %c0_22] : memref<4x16x8xf32, #tpu.memory_space<vmem>>, vector<1x16x8xf32>
    %41 = vector.shape_cast %40 : vector<1x16x8xf32> to vector<16x8xf32>
    %cst_23 = arith.constant dense<0.000000e+00> : vector<239x8xf32>
    %42 = tpu.matmul %39, %41, %cst_23 {dimension_numbers = #tpu.dot_dimension_numbers<[1], [0], [0], [1], [0, 0, 1, 1], [], []>} : vector<239x16xf32>, vector<16x8xf32>, vector<239x8xf32> -> vector<239x8xf32>
    %43 = arith.addf %37, %42 : vector<239x8xf32>
    %c0_24 = arith.constant 0 : index
    %c0_25 = arith.constant 0 : index
    %44 = vector.load %arg3[%c0_24, %c0_25] : memref<1x8xf32, #tpu.memory_space<vmem>>, vector<1x8xf32>
    %45 = vector.broadcast %44 : vector<1x8xf32> to vector<239x8xf32>
    %46 = arith.addf %43, %45 : vector<239x8xf32>
    %cst_26 = arith.constant 0.000000e+00 : f32
    %47 = vector.broadcast %cst_26 : f32 to vector<239x8xf32>
    %48 = arith.cmpf oge, %46, %47 : vector<239x8xf32>
    %cst_27 = arith.constant 0.00999999977 : f32
    %49 = vector.broadcast %cst_27 : f32 to vector<239x8xf32>
    %50 = arith.mulf %49, %46 : vector<239x8xf32>
    %51 = arith.select %48, %46, %50 : vector<239x8xi1>, vector<239x8xf32>
    %c0_28 = arith.constant 0 : index
    %c0_29 = arith.constant 0 : index
    %52 = vector.load %arg10[%c0_28, %c0_29] : memref<240x8xf32, #tpu.memory_space<vmem>>, vector<239x8xf32>
    tpu.vector_store %arg10[%c0_28, %c0_29], %51 {strides = array<i32>} : memref<240x8xf32, #tpu.memory_space<vmem>>, vector<239x8xf32>,
    %c0_30 = arith.constant 0 : index
    %c0_31 = arith.constant 0 : index
    %53 = tpu.strided_load %arg10[%c0_30, %c0_31] {strides = array<i32: 2, 1>} : memref<240x8xf32, #tpu.memory_space<vmem>>, vector<103x8xf32>
    %c0_32 = arith.constant 0 : index
    %c0_33 = arith.constant 0 : index
    %c0_34 = arith.constant 0 : index
    %54 = vector.load %arg4[%c0_32, %c0_33, %c0_34] : memref<9x8x16xf32, #tpu.memory_space<vmem>>, vector<1x8x16xf32>
    %55 = vector.shape_cast %54 : vector<1x8x16xf32> to vector<8x16xf32>
    %cst_35 = arith.constant dense<0.000000e+00> : vector<103x16xf32>
    %56 = tpu.matmul %53, %55, %cst_35 {dimension_numbers = #tpu.dot_dimension_numbers<[1], [0], [0], [1], [0, 0, 1, 1], [], []>} : vector<103x8xf32>, vector<8x16xf32>, vector<103x16xf32> -> vector<103x16xf32>
    %c1_36 = arith.constant 1 : index
    %c0_37 = arith.constant 0 : index
    %57 = tpu.strided_load %arg10[%c1_36, %c0_37] {strides = array<i32: 2, 1>} : memref<240x8xf32, #tpu.memory_space<vmem>>, vector<103x8xf32>
    %c1_38 = arith.constant 1 : index
    %c0_39 = arith.constant 0 : index
    %c0_40 = arith.constant 0 : index
    %58 = vector.load %arg4[%c1_38, %c0_39, %c0_40] : memref<9x8x16xf32, #tpu.memory_space<vmem>>, vector<1x8x16xf32>
    %59 = vector.shape_cast %58 : vector<1x8x16xf32> to vector<8x16xf32>
    %cst_41 = arith.constant dense<0.000000e+00> : vector<103x16xf32>
    %60 = tpu.matmul %57, %59, %cst_41 {dimension_numbers = #tpu.dot_dimension_numbers<[1], [0], [0], [1], [0, 0, 1, 1], [], []>} : vector<103x8xf32>, vector<8x16xf32>, vector<103x16xf32> -> vector<103x16xf32>
    %61 = arith.addf %56, %60 : vector<103x16xf32>
    %c2_42 = arith.constant 2 : index
    %c0_43 = arith.constant 0 : index
    %62 = tpu.strided_load %arg10[%c2_42, %c0_43] {strides = array<i32: 2, 1>} : memref<240x8xf32, #tpu.memory_space<vmem>>, vector<103x8xf32>
    %c2_44 = arith.constant 2 : index
    %c0_45 = arith.constant 0 : index
    %c0_46 = arith.constant 0 : index
    %63 = vector.load %arg4[%c2_44, %c0_45, %c0_46] : memref<9x8x16xf32, #tpu.memory_space<vmem>>, vector<1x8x16xf32>
    %64 = vector.shape_cast %63 : vector<1x8x16xf32> to vector<8x16xf32>
    %cst_47 = arith.constant dense<0.000000e+00> : vector<103x16xf32>
    %65 = tpu.matmul %62, %64, %cst_47 {dimension_numbers = #tpu.dot_dimension_numbers<[1], [0], [0], [1], [0, 0, 1, 1], [], []>} : vector<103x8xf32>, vector<8x16xf32>, vector<103x16xf32> -> vector<103x16xf32>
    %66 = arith.addf %61, %65 : vector<103x16xf32>
    %c16_48 = arith.constant 16 : index
    %c0_49 = arith.constant 0 : index
    %67 = tpu.strided_load %arg10[%c16_48, %c0_49] {strides = array<i32: 2, 1>} : memref<240x8xf32, #tpu.memory_space<vmem>>, vector<103x8xf32>
    %c3_50 = arith.constant 3 : index
    %c0_51 = arith.constant 0 : index
    %c0_52 = arith.constant 0 : index
    %68 = vector.load %arg4[%c3_50, %c0_51, %c0_52] : memref<9x8x16xf32, #tpu.memory_space<vmem>>, vector<1x8x16xf32>
    %69 = vector.shape_cast %68 : vector<1x8x16xf32> to vector<8x16xf32>
    %cst_53 = arith.constant dense<0.000000e+00> : vector<103x16xf32>
    %70 = tpu.matmul %67, %69, %cst_53 {dimension_numbers = #tpu.dot_dimension_numbers<[1], [0], [0], [1], [0, 0, 1, 1], [], []>} : vector<103x8xf32>, vector<8x16xf32>, vector<103x16xf32> -> vector<103x16xf32>
    %71 = arith.addf %66, %70 : vector<103x16xf32>
    %c17_54 = arith.constant 17 : index
    %c0_55 = arith.constant 0 : index
    %72 = tpu.strided_load %arg10[%c17_54, %c0_55] {strides = array<i32: 2, 1>} : memref<240x8xf32, #tpu.memory_space<vmem>>, vector<103x8xf32>
    %c4 = arith.constant 4 : index
    %c0_56 = arith.constant 0 : index
    %c0_57 = arith.constant 0 : index
    %73 = vector.load %arg4[%c4, %c0_56, %c0_57] : memref<9x8x16xf32, #tpu.memory_space<vmem>>, vector<1x8x16xf32>
    %74 = vector.shape_cast %73 : vector<1x8x16xf32> to vector<8x16xf32>
    %cst_58 = arith.constant dense<0.000000e+00> : vector<103x16xf32>
    %75 = tpu.matmul %72, %74, %cst_58 {dimension_numbers = #tpu.dot_dimension_numbers<[1], [0], [0], [1], [0, 0, 1, 1], [], []>} : vector<103x8xf32>, vector<8x16xf32>, vector<103x16xf32> -> vector<103x16xf32>
    %76 = arith.addf %71, %75 : vector<103x16xf32>
    %c18 = arith.constant 18 : index
    %c0_59 = arith.constant 0 : index
    %77 = tpu.strided_load %arg10[%c18, %c0_59] {strides = array<i32: 2, 1>} : memref<240x8xf32, #tpu.memory_space<vmem>>, vector<103x8xf32>
    %c5 = arith.constant 5 : index
    %c0_60 = arith.constant 0 : index
    %c0_61 = arith.constant 0 : index
    %78 = vector.load %arg4[%c5, %c0_60, %c0_61] : memref<9x8x16xf32, #tpu.memory_space<vmem>>, vector<1x8x16xf32>
    %79 = vector.shape_cast %78 : vector<1x8x16xf32> to vector<8x16xf32>
    %cst_62 = arith.constant dense<0.000000e+00> : vector<103x16xf32>
    %80 = tpu.matmul %77, %79, %cst_62 {dimension_numbers = #tpu.dot_dimension_numbers<[1], [0], [0], [1], [0, 0, 1, 1], [], []>} : vector<103x8xf32>, vector<8x16xf32>, vector<103x16xf32> -> vector<103x16xf32>
    %81 = arith.addf %76, %80 : vector<103x16xf32>
    %c32 = arith.constant 32 : index
    %c0_63 = arith.constant 0 : index
    %82 = tpu.strided_load %arg10[%c32, %c0_63] {strides = array<i32: 2, 1>} : memref<240x8xf32, #tpu.memory_space<vmem>>, vector<103x8xf32>
    %c6 = arith.constant 6 : index
    %c0_64 = arith.constant 0 : index
    %c0_65 = arith.constant 0 : index
    %83 = vector.load %arg4[%c6, %c0_64, %c0_65] : memref<9x8x16xf32, #tpu.memory_space<vmem>>, vector<1x8x16xf32>
    %84 = vector.shape_cast %83 : vector<1x8x16xf32> to vector<8x16xf32>
    %cst_66 = arith.constant dense<0.000000e+00> : vector<103x16xf32>
    %85 = tpu.matmul %82, %84, %cst_66 {dimension_numbers = #tpu.dot_dimension_numbers<[1], [0], [0], [1], [0, 0, 1, 1], [], []>} : vector<103x8xf32>, vector<8x16xf32>, vector<103x16xf32> -> vector<103x16xf32>
    %86 = arith.addf %81, %85 : vector<103x16xf32>
    %c33 = arith.constant 33 : index
    %c0_67 = arith.constant 0 : index
    %87 = tpu.strided_load %arg10[%c33, %c0_67] {strides = array<i32: 2, 1>} : memref<240x8xf32, #tpu.memory_space<vmem>>, vector<103x8xf32>
    %c7 = arith.constant 7 : index
    %c0_68 = arith.constant 0 : index
    %c0_69 = arith.constant 0 : index
    %88 = vector.load %arg4[%c7, %c0_68, %c0_69] : memref<9x8x16xf32, #tpu.memory_space<vmem>>, vector<1x8x16xf32>
    %89 = vector.shape_cast %88 : vector<1x8x16xf32> to vector<8x16xf32>
    %cst_70 = arith.constant dense<0.000000e+00> : vector<103x16xf32>
    %90 = tpu.matmul %87, %89, %cst_70 {dimension_numbers = #tpu.dot_dimension_numbers<[1], [0], [0], [1], [0, 0, 1, 1], [], []>} : vector<103x8xf32>, vector<8x16xf32>, vector<103x16xf32> -> vector<103x16xf32>
    %91 = arith.addf %86, %90 : vector<103x16xf32>
    %c34 = arith.constant 34 : index
    %c0_71 = arith.constant 0 : index
    %92 = tpu.strided_load %arg10[%c34, %c0_71] {strides = array<i32: 2, 1>} : memref<240x8xf32, #tpu.memory_space<vmem>>, vector<103x8xf32>
    %c8 = arith.constant 8 : index
    %c0_72 = arith.constant 0 : index
    %c0_73 = arith.constant 0 : index
    %93 = vector.load %arg4[%c8, %c0_72, %c0_73] : memref<9x8x16xf32, #tpu.memory_space<vmem>>, vector<1x8x16xf32>
    %94 = vector.shape_cast %93 : vector<1x8x16xf32> to vector<8x16xf32>
    %cst_74 = arith.constant dense<0.000000e+00> : vector<103x16xf32>
    %95 = tpu.matmul %92, %94, %cst_74 {dimension_numbers = #tpu.dot_dimension_numbers<[1], [0], [0], [1], [0, 0, 1, 1], [], []>} : vector<103x8xf32>, vector<8x16xf32>, vector<103x16xf32> -> vector<103x16xf32>
    %96 = arith.addf %91, %95 : vector<103x16xf32>
    %97 = vector.extract_strided_slice %96 {offsets = [0, 0], sizes = [7, 16], strides = [1, 1]} : vector<103x16xf32> to vector<7x16xf32>
    %98 = vector.extract_strided_slice %96 {offsets = [16, 0], sizes = [7, 16], strides = [1, 1]} : vector<103x16xf32> to vector<7x16xf32>
    %99 = vector.extract_strided_slice %96 {offsets = [32, 0], sizes = [7, 16], strides = [1, 1]} : vector<103x16xf32> to vector<7x16xf32>
    %100 = vector.extract_strided_slice %96 {offsets = [48, 0], sizes = [7, 16], strides = [1, 1]} : vector<103x16xf32> to vector<7x16xf32>
    %101 = vector.extract_strided_slice %96 {offsets = [64, 0], sizes = [7, 16], strides = [1, 1]} : vector<103x16xf32> to vector<7x16xf32>
    %102 = vector.extract_strided_slice %96 {offsets = [80, 0], sizes = [7, 16], strides = [1, 1]} : vector<103x16xf32> to vector<7x16xf32>
    %103 = vector.extract_strided_slice %96 {offsets = [96, 0], sizes = [7, 16], strides = [1, 1]} : vector<103x16xf32> to vector<7x16xf32>
    %cst_75 = arith.constant dense<0.000000e+00> : vector<16xf32>
    %104 = vector.multi_reduction <add>, %97, %cst_75 [0] : vector<7x16xf32> to vector<16xf32>
    %105 = vector.shape_cast %104 : vector<16xf32> to vector<1x16xf32>
    %cst_76 = arith.constant 0.000000e+00 : f32
    %106 = vector.broadcast %cst_76 : f32 to vector<1x16xf32>
    %107 = arith.addf %106, %105 : vector<1x16xf32>
    %cst_77 = arith.constant dense<0.000000e+00> : vector<16xf32>
    %108 = vector.multi_reduction <add>, %98, %cst_77 [0] : vector<7x16xf32> to vector<16xf32>
    %109 = vector.shape_cast %108 : vector<16xf32> to vector<1x16xf32>
    %110 = arith.addf %107, %109 : vector<1x16xf32>
    %cst_78 = arith.constant dense<0.000000e+00> : vector<16xf32>
    %111 = vector.multi_reduction <add>, %99, %cst_78 [0] : vector<7x16xf32> to vector<16xf32>
    %112 = vector.shape_cast %111 : vector<16xf32> to vector<1x16xf32>
    %113 = arith.addf %110, %112 : vector<1x16xf32>
    %cst_79 = arith.constant dense<0.000000e+00> : vector<16xf32>
    %114 = vector.multi_reduction <add>, %100, %cst_79 [0] : vector<7x16xf32> to vector<16xf32>
    %115 = vector.shape_cast %114 : vector<16xf32> to vector<1x16xf32>
    %116 = arith.addf %113, %115 : vector<1x16xf32>
    %cst_80 = arith.constant dense<0.000000e+00> : vector<16xf32>
    %117 = vector.multi_reduction <add>, %101, %cst_80 [0] : vector<7x16xf32> to vector<16xf32>
    %118 = vector.shape_cast %117 : vector<16xf32> to vector<1x16xf32>
    %119 = arith.addf %116, %118 : vector<1x16xf32>
    %cst_81 = arith.constant dense<0.000000e+00> : vector<16xf32>
    %120 = vector.multi_reduction <add>, %102, %cst_81 [0] : vector<7x16xf32> to vector<16xf32>
    %121 = vector.shape_cast %120 : vector<16xf32> to vector<1x16xf32>
    %122 = arith.addf %119, %121 : vector<1x16xf32>
    %cst_82 = arith.constant dense<0.000000e+00> : vector<16xf32>
    %123 = vector.multi_reduction <add>, %103, %cst_82 [0] : vector<7x16xf32> to vector<16xf32>
    %124 = vector.shape_cast %123 : vector<16xf32> to vector<1x16xf32>
    %125 = arith.addf %122, %124 : vector<1x16xf32>
    %cst_83 = arith.constant 4.900000e+01 : f32
    %126 = vector.broadcast %cst_83 : f32 to vector<1x16xf32>
    %127 = arith.divf %125, %126 : vector<1x16xf32>
    %128 = vector.broadcast %127 : vector<1x16xf32> to vector<7x16xf32>
    %129 = arith.subf %97, %128 : vector<7x16xf32>
    %130 = arith.mulf %129, %129 : vector<7x16xf32>
    %cst_84 = arith.constant dense<0.000000e+00> : vector<16xf32>
    %131 = vector.multi_reduction <add>, %130, %cst_84 [0] : vector<7x16xf32> to vector<16xf32>
    %132 = vector.shape_cast %131 : vector<16xf32> to vector<1x16xf32>
    %cst_85 = arith.constant 0.000000e+00 : f32
    %133 = vector.broadcast %cst_85 : f32 to vector<1x16xf32>
    %134 = arith.addf %133, %132 : vector<1x16xf32>
    %135 = vector.broadcast %127 : vector<1x16xf32> to vector<7x16xf32>
    %136 = arith.subf %98, %135 : vector<7x16xf32>
    %137 = arith.mulf %136, %136 : vector<7x16xf32>
    %cst_86 = arith.constant dense<0.000000e+00> : vector<16xf32>
    %138 = vector.multi_reduction <add>, %137, %cst_86 [0] : vector<7x16xf32> to vector<16xf32>
    %139 = vector.shape_cast %138 : vector<16xf32> to vector<1x16xf32>
    %140 = arith.addf %134, %139 : vector<1x16xf32>
    %141 = vector.broadcast %127 : vector<1x16xf32> to vector<7x16xf32>
    %142 = arith.subf %99, %141 : vector<7x16xf32>
    %143 = arith.mulf %142, %142 : vector<7x16xf32>
    %cst_87 = arith.constant dense<0.000000e+00> : vector<16xf32>
    %144 = vector.multi_reduction <add>, %143, %cst_87 [0] : vector<7x16xf32> to vector<16xf32>
    %145 = vector.shape_cast %144 : vector<16xf32> to vector<1x16xf32>
    %146 = arith.addf %140, %145 : vector<1x16xf32>
    %147 = vector.broadcast %127 : vector<1x16xf32> to vector<7x16xf32>
    %148 = arith.subf %100, %147 : vector<7x16xf32>
    %149 = arith.mulf %148, %148 : vector<7x16xf32>
    %cst_88 = arith.constant dense<0.000000e+00> : vector<16xf32>
    %150 = vector.multi_reduction <add>, %149, %cst_88 [0] : vector<7x16xf32> to vector<16xf32>
    %151 = vector.shape_cast %150 : vector<16xf32> to vector<1x16xf32>
    %152 = arith.addf %146, %151 : vector<1x16xf32>
    %153 = vector.broadcast %127 : vector<1x16xf32> to vector<7x16xf32>
    %154 = arith.subf %101, %153 : vector<7x16xf32>
    %155 = arith.mulf %154, %154 : vector<7x16xf32>
    %cst_89 = arith.constant dense<0.000000e+00> : vector<16xf32>
    %156 = vector.multi_reduction <add>, %155, %cst_89 [0] : vector<7x16xf32> to vector<16xf32>
    %157 = vector.shape_cast %156 : vector<16xf32> to vector<1x16xf32>
    %158 = arith.addf %152, %157 : vector<1x16xf32>
    %159 = vector.broadcast %127 : vector<1x16xf32> to vector<7x16xf32>
    %160 = arith.subf %102, %159 : vector<7x16xf32>
    %161 = arith.mulf %160, %160 : vector<7x16xf32>
    %cst_90 = arith.constant dense<0.000000e+00> : vector<16xf32>
    %162 = vector.multi_reduction <add>, %161, %cst_90 [0] : vector<7x16xf32> to vector<16xf32>
    %163 = vector.shape_cast %162 : vector<16xf32> to vector<1x16xf32>
    %164 = arith.addf %158, %163 : vector<1x16xf32>
    %165 = vector.broadcast %127 : vector<1x16xf32> to vector<7x16xf32>
    %166 = arith.subf %103, %165 : vector<7x16xf32>
    %167 = arith.mulf %166, %166 : vector<7x16xf32>
    %cst_91 = arith.constant dense<0.000000e+00> : vector<16xf32>
    %168 = vector.multi_reduction <add>, %167, %cst_91 [0] : vector<7x16xf32> to vector<16xf32>
    %169 = vector.shape_cast %168 : vector<16xf32> to vector<1x16xf32>
    %170 = arith.addf %164, %169 : vector<1x16xf32>
    %cst_92 = arith.constant 4.900000e+01 : f32
    %171 = vector.broadcast %cst_92 : f32 to vector<1x16xf32>
    %172 = arith.divf %170, %171 : vector<1x16xf32>
    %173 = vector.broadcast %127 : vector<1x16xf32> to vector<103x16xf32>
    %174 = arith.subf %96, %173 : vector<103x16xf32>
    %cst_93 = arith.constant 9.99999974E-6 : f32
    %175 = vector.broadcast %cst_93 : f32 to vector<1x16xf32>
    %176 = arith.addf %172, %175 : vector<1x16xf32>
    %177 = math.rsqrt %176 : vector<1x16xf32>
    %178 = vector.broadcast %177 : vector<1x16xf32> to vector<103x16xf32>
    %179 = arith.mulf %174, %178 : vector<103x16xf32>
    %cst_94 = arith.constant 0.000000e+00 : f32
    %180 = vector.broadcast %cst_94 : f32 to vector<103x16xf32>
    %181 = arith.cmpf oge, %179, %180 : vector<103x16xf32>
    %cst_95 = arith.constant 0.00999999977 : f32
    %182 = vector.broadcast %cst_95 : f32 to vector<103x16xf32>
    %183 = arith.mulf %182, %179 : vector<103x16xf32>
    %184 = arith.select %181, %179, %183 : vector<103x16xi1>, vector<103x16xf32>
    %c0_96 = arith.constant 0 : index
    %c0_97 = arith.constant 0 : index
    %185 = vector.load %arg11[%c0_96, %c0_97] : memref<112x16xf32, #tpu.memory_space<vmem>>, vector<103x16xf32>
    tpu.vector_store %arg11[%c0_96, %c0_97], %184 {strides = array<i32>} : memref<112x16xf32, #tpu.memory_space<vmem>>, vector<103x16xf32>,
    %c0_98 = arith.constant 0 : index
    %c0_99 = arith.constant 0 : index
    %186 = tpu.strided_load %arg11[%c0_98, %c0_99] {strides = array<i32: 2, 1>} : memref<112x16xf32, #tpu.memory_space<vmem>>, vector<35x16xf32>
    %c0_100 = arith.constant 0 : index
    %c0_101 = arith.constant 0 : index
    %c0_102 = arith.constant 0 : index
    %187 = vector.load %arg5[%c0_100, %c0_101, %c0_102] : memref<9x16x32xf32, #tpu.memory_space<vmem>>, vector<1x16x32xf32>
    %188 = vector.shape_cast %187 : vector<1x16x32xf32> to vector<16x32xf32>
    %cst_103 = arith.constant dense<0.000000e+00> : vector<35x32xf32>
    %189 = tpu.matmul %186, %188, %cst_103 {dimension_numbers = #tpu.dot_dimension_numbers<[1], [0], [0], [1], [0, 0, 1, 1], [], []>} : vector<35x16xf32>, vector<16x32xf32>, vector<35x32xf32> -> vector<35x32xf32>
    %c1_104 = arith.constant 1 : index
    %c0_105 = arith.constant 0 : index
    %190 = tpu.strided_load %arg11[%c1_104, %c0_105] {strides = array<i32: 2, 1>} : memref<112x16xf32, #tpu.memory_space<vmem>>, vector<35x16xf32>
    %c1_106 = arith.constant 1 : index
    %c0_107 = arith.constant 0 : index
    %c0_108 = arith.constant 0 : index
    %191 = vector.load %arg5[%c1_106, %c0_107, %c0_108] : memref<9x16x32xf32, #tpu.memory_space<vmem>>, vector<1x16x32xf32>
    %192 = vector.shape_cast %191 : vector<1x16x32xf32> to vector<16x32xf32>
    %cst_109 = arith.constant dense<0.000000e+00> : vector<35x32xf32>
    %193 = tpu.matmul %190, %192, %cst_109 {dimension_numbers = #tpu.dot_dimension_numbers<[1], [0], [0], [1], [0, 0, 1, 1], [], []>} : vector<35x16xf32>, vector<16x32xf32>, vector<35x32xf32> -> vector<35x32xf32>
    %194 = arith.addf %189, %193 : vector<35x32xf32>
    %c2_110 = arith.constant 2 : index
    %c0_111 = arith.constant 0 : index
    %195 = tpu.strided_load %arg11[%c2_110, %c0_111] {strides = array<i32: 2, 1>} : memref<112x16xf32, #tpu.memory_space<vmem>>, vector<35x16xf32>
    %c2_112 = arith.constant 2 : index
    %c0_113 = arith.constant 0 : index
    %c0_114 = arith.constant 0 : index
    %196 = vector.load %arg5[%c2_112, %c0_113, %c0_114] : memref<9x16x32xf32, #tpu.memory_space<vmem>>, vector<1x16x32xf32>
    %197 = vector.shape_cast %196 : vector<1x16x32xf32> to vector<16x32xf32>
    %cst_115 = arith.constant dense<0.000000e+00> : vector<35x32xf32>
    %198 = tpu.matmul %195, %197, %cst_115 {dimension_numbers = #tpu.dot_dimension_numbers<[1], [0], [0], [1], [0, 0, 1, 1], [], []>} : vector<35x16xf32>, vector<16x32xf32>, vector<35x32xf32> -> vector<35x32xf32>
    %199 = arith.addf %194, %198 : vector<35x32xf32>
    %c16_116 = arith.constant 16 : index
    %c0_117 = arith.constant 0 : index
    %200 = tpu.strided_load %arg11[%c16_116, %c0_117] {strides = array<i32: 2, 1>} : memref<112x16xf32, #tpu.memory_space<vmem>>, vector<35x16xf32>
    %c3_118 = arith.constant 3 : index
    %c0_119 = arith.constant 0 : index
    %c0_120 = arith.constant 0 : index
    %201 = vector.load %arg5[%c3_118, %c0_119, %c0_120] : memref<9x16x32xf32, #tpu.memory_space<vmem>>, vector<1x16x32xf32>
    %202 = vector.shape_cast %201 : vector<1x16x32xf32> to vector<16x32xf32>
    %cst_121 = arith.constant dense<0.000000e+00> : vector<35x32xf32>
    %203 = tpu.matmul %200, %202, %cst_121 {dimension_numbers = #tpu.dot_dimension_numbers<[1], [0], [0], [1], [0, 0, 1, 1], [], []>} : vector<35x16xf32>, vector<16x32xf32>, vector<35x32xf32> -> vector<35x32xf32>
    %204 = arith.addf %199, %203 : vector<35x32xf32>
    %c17_122 = arith.constant 17 : index
    %c0_123 = arith.constant 0 : index
    %205 = tpu.strided_load %arg11[%c17_122, %c0_123] {strides = array<i32: 2, 1>} : memref<112x16xf32, #tpu.memory_space<vmem>>, vector<35x16xf32>
    %c4_124 = arith.constant 4 : index
    %c0_125 = arith.constant 0 : index
    %c0_126 = arith.constant 0 : index
    %206 = vector.load %arg5[%c4_124, %c0_125, %c0_126] : memref<9x16x32xf32, #tpu.memory_space<vmem>>, vector<1x16x32xf32>
    %207 = vector.shape_cast %206 : vector<1x16x32xf32> to vector<16x32xf32>
    %cst_127 = arith.constant dense<0.000000e+00> : vector<35x32xf32>
    %208 = tpu.matmul %205, %207, %cst_127 {dimension_numbers = #tpu.dot_dimension_numbers<[1], [0], [0], [1], [0, 0, 1, 1], [], []>} : vector<35x16xf32>, vector<16x32xf32>, vector<35x32xf32> -> vector<35x32xf32>
    %209 = arith.addf %204, %208 : vector<35x32xf32>
    %c18_128 = arith.constant 18 : index
    %c0_129 = arith.constant 0 : index
    %210 = tpu.strided_load %arg11[%c18_128, %c0_129] {strides = array<i32: 2, 1>} : memref<112x16xf32, #tpu.memory_space<vmem>>, vector<35x16xf32>
    %c5_130 = arith.constant 5 : index
    %c0_131 = arith.constant 0 : index
    %c0_132 = arith.constant 0 : index
    %211 = vector.load %arg5[%c5_130, %c0_131, %c0_132] : memref<9x16x32xf32, #tpu.memory_space<vmem>>, vector<1x16x32xf32>
    %212 = vector.shape_cast %211 : vector<1x16x32xf32> to vector<16x32xf32>
    %cst_133 = arith.constant dense<0.000000e+00> : vector<35x32xf32>
    %213 = tpu.matmul %210, %212, %cst_133 {dimension_numbers = #tpu.dot_dimension_numbers<[1], [0], [0], [1], [0, 0, 1, 1], [], []>} : vector<35x16xf32>, vector<16x32xf32>, vector<35x32xf32> -> vector<35x32xf32>
    %214 = arith.addf %209, %213 : vector<35x32xf32>
    %c32_134 = arith.constant 32 : index
    %c0_135 = arith.constant 0 : index
    %215 = tpu.strided_load %arg11[%c32_134, %c0_135] {strides = array<i32: 2, 1>} : memref<112x16xf32, #tpu.memory_space<vmem>>, vector<35x16xf32>
    %c6_136 = arith.constant 6 : index
    %c0_137 = arith.constant 0 : index
    %c0_138 = arith.constant 0 : index
    %216 = vector.load %arg5[%c6_136, %c0_137, %c0_138] : memref<9x16x32xf32, #tpu.memory_space<vmem>>, vector<1x16x32xf32>
    %217 = vector.shape_cast %216 : vector<1x16x32xf32> to vector<16x32xf32>
    %cst_139 = arith.constant dense<0.000000e+00> : vector<35x32xf32>
    %218 = tpu.matmul %215, %217, %cst_139 {dimension_numbers = #tpu.dot_dimension_numbers<[1], [0], [0], [1], [0, 0, 1, 1], [], []>} : vector<35x16xf32>, vector<16x32xf32>, vector<35x32xf32> -> vector<35x32xf32>
    %219 = arith.addf %214, %218 : vector<35x32xf32>
    %c33_140 = arith.constant 33 : index
    %c0_141 = arith.constant 0 : index
    %220 = tpu.strided_load %arg11[%c33_140, %c0_141] {strides = array<i32: 2, 1>} : memref<112x16xf32, #tpu.memory_space<vmem>>, vector<35x16xf32>
    %c7_142 = arith.constant 7 : index
    %c0_143 = arith.constant 0 : index
    %c0_144 = arith.constant 0 : index
    %221 = vector.load %arg5[%c7_142, %c0_143, %c0_144] : memref<9x16x32xf32, #tpu.memory_space<vmem>>, vector<1x16x32xf32>
    %222 = vector.shape_cast %221 : vector<1x16x32xf32> to vector<16x32xf32>
    %cst_145 = arith.constant dense<0.000000e+00> : vector<35x32xf32>
    %223 = tpu.matmul %220, %222, %cst_145 {dimension_numbers = #tpu.dot_dimension_numbers<[1], [0], [0], [1], [0, 0, 1, 1], [], []>} : vector<35x16xf32>, vector<16x32xf32>, vector<35x32xf32> -> vector<35x32xf32>
    %224 = arith.addf %219, %223 : vector<35x32xf32>
    %c34_146 = arith.constant 34 : index
    %c0_147 = arith.constant 0 : index
    %225 = tpu.strided_load %arg11[%c34_146, %c0_147] {strides = array<i32: 2, 1>} : memref<112x16xf32, #tpu.memory_space<vmem>>, vector<35x16xf32>
    %c8_148 = arith.constant 8 : index
    %c0_149 = arith.constant 0 : index
    %c0_150 = arith.constant 0 : index
    %226 = vector.load %arg5[%c8_148, %c0_149, %c0_150] : memref<9x16x32xf32, #tpu.memory_space<vmem>>, vector<1x16x32xf32>
    %227 = vector.shape_cast %226 : vector<1x16x32xf32> to vector<16x32xf32>
    %cst_151 = arith.constant dense<0.000000e+00> : vector<35x32xf32>
    %228 = tpu.matmul %225, %227, %cst_151 {dimension_numbers = #tpu.dot_dimension_numbers<[1], [0], [0], [1], [0, 0, 1, 1], [], []>} : vector<35x16xf32>, vector<16x32xf32>, vector<35x32xf32> -> vector<35x32xf32>
    %229 = arith.addf %224, %228 : vector<35x32xf32>
    %cst_152 = arith.constant 0.000000e+00 : f32
    %230 = vector.broadcast %cst_152 : f32 to vector<72x32xf32>
    %c0_153 = arith.constant 0 : index
    %c0_154 = arith.constant 0 : index
    %231 = vector.load %arg12[%c0_153, %c0_154] : memref<72x32xf32, #tpu.memory_space<vmem>>, vector<72x32xf32>
    tpu.vector_store %arg12[%c0_153, %c0_154], %230 {strides = array<i32>} : memref<72x32xf32, #tpu.memory_space<vmem>>, vector<72x32xf32>,
    %232 = vector.extract_strided_slice %229 {offsets = [0, 0], sizes = [3, 32], strides = [1, 1]} : vector<35x32xf32> to vector<3x32xf32>
    %233 = vector.extract_strided_slice %229 {offsets = [16, 0], sizes = [3, 32], strides = [1, 1]} : vector<35x32xf32> to vector<3x32xf32>
    %234 = vector.extract_strided_slice %229 {offsets = [32, 0], sizes = [3, 32], strides = [1, 1]} : vector<35x32xf32> to vector<3x32xf32>
    %cst_155 = arith.constant dense<0.000000e+00> : vector<32xf32>
    %235 = vector.multi_reduction <add>, %232, %cst_155 [0] : vector<3x32xf32> to vector<32xf32>
    %236 = vector.shape_cast %235 : vector<32xf32> to vector<1x32xf32>
    %cst_156 = arith.constant 0.000000e+00 : f32
    %237 = vector.broadcast %cst_156 : f32 to vector<1x32xf32>
    %238 = arith.addf %237, %236 : vector<1x32xf32>
    %cst_157 = arith.constant dense<0.000000e+00> : vector<32xf32>
    %239 = vector.multi_reduction <add>, %233, %cst_157 [0] : vector<3x32xf32> to vector<32xf32>
    %240 = vector.shape_cast %239 : vector<32xf32> to vector<1x32xf32>
    %241 = arith.addf %238, %240 : vector<1x32xf32>
    %cst_158 = arith.constant dense<0.000000e+00> : vector<32xf32>
    %242 = vector.multi_reduction <add>, %234, %cst_158 [0] : vector<3x32xf32> to vector<32xf32>
    %243 = vector.shape_cast %242 : vector<32xf32> to vector<1x32xf32>
    %244 = arith.addf %241, %243 : vector<1x32xf32>
    %cst_159 = arith.constant 9.000000e+00 : f32
    %245 = vector.broadcast %cst_159 : f32 to vector<1x32xf32>
    %246 = arith.divf %244, %245 : vector<1x32xf32>
    %247 = vector.broadcast %246 : vector<1x32xf32> to vector<3x32xf32>
    %248 = arith.subf %232, %247 : vector<3x32xf32>
    %249 = arith.mulf %248, %248 : vector<3x32xf32>
    %cst_160 = arith.constant dense<0.000000e+00> : vector<32xf32>
    %250 = vector.multi_reduction <add>, %249, %cst_160 [0] : vector<3x32xf32> to vector<32xf32>
    %251 = vector.shape_cast %250 : vector<32xf32> to vector<1x32xf32>
    %cst_161 = arith.constant 0.000000e+00 : f32
    %252 = vector.broadcast %cst_161 : f32 to vector<1x32xf32>
    %253 = arith.addf %252, %251 : vector<1x32xf32>
    %254 = vector.broadcast %246 : vector<1x32xf32> to vector<3x32xf32>
    %255 = arith.subf %233, %254 : vector<3x32xf32>
    %256 = arith.mulf %255, %255 : vector<3x32xf32>
    %cst_162 = arith.constant dense<0.000000e+00> : vector<32xf32>
    %257 = vector.multi_reduction <add>, %256, %cst_162 [0] : vector<3x32xf32> to vector<32xf32>
    %258 = vector.shape_cast %257 : vector<32xf32> to vector<1x32xf32>
    %259 = arith.addf %253, %258 : vector<1x32xf32>
    %260 = vector.broadcast %246 : vector<1x32xf32> to vector<3x32xf32>
    %261 = arith.subf %234, %260 : vector<3x32xf32>
    %262 = arith.mulf %261, %261 : vector<3x32xf32>
    %cst_163 = arith.constant dense<0.000000e+00> : vector<32xf32>
    %263 = vector.multi_reduction <add>, %262, %cst_163 [0] : vector<3x32xf32> to vector<32xf32>
    %264 = vector.shape_cast %263 : vector<32xf32> to vector<1x32xf32>
    %265 = arith.addf %259, %264 : vector<1x32xf32>
    %cst_164 = arith.constant 9.000000e+00 : f32
    %266 = vector.broadcast %cst_164 : f32 to vector<1x32xf32>
    %267 = arith.divf %265, %266 : vector<1x32xf32>
    %268 = vector.broadcast %246 : vector<1x32xf32> to vector<35x32xf32>
    %269 = arith.subf %229, %268 : vector<35x32xf32>
    %cst_165 = arith.constant 9.99999974E-6 : f32
    %270 = vector.broadcast %cst_165 : f32 to vector<1x32xf32>
    %271 = arith.addf %267, %270 : vector<1x32xf32>
    %272 = math.rsqrt %271 : vector<1x32xf32>
    %273 = vector.broadcast %272 : vector<1x32xf32> to vector<35x32xf32>
    %274 = arith.mulf %269, %273 : vector<35x32xf32>
    %cst_166 = arith.constant 0.000000e+00 : f32
    %275 = vector.broadcast %cst_166 : f32 to vector<35x32xf32>
    %276 = arith.cmpf oge, %274, %275 : vector<35x32xf32>
    %cst_167 = arith.constant 0.00999999977 : f32
    %277 = vector.broadcast %cst_167 : f32 to vector<35x32xf32>
    %278 = arith.mulf %277, %274 : vector<35x32xf32>
    %279 = arith.select %276, %274, %278 : vector<35x32xi1>, vector<35x32xf32>
    %280 = vector.broadcast %20 : vector<35x1xf32> to vector<35x32xf32>
    %281 = arith.mulf %280, %279 : vector<35x32xf32>
    %c17_168 = arith.constant 17 : index
    %c0_169 = arith.constant 0 : index
    %282 = vector.load %arg12[%c17_168, %c0_169] : memref<72x32xf32, #tpu.memory_space<vmem>>, vector<35x32xf32>
    tpu.vector_store %arg12[%c17_168, %c0_169], %281 {strides = array<i32>} : memref<72x32xf32, #tpu.memory_space<vmem>>, vector<35x32xf32>,
    %c0_170 = arith.constant 0 : index
    %c0_171 = arith.constant 0 : index
    %283 = vector.load %arg12[%c0_170, %c0_171] : memref<72x32xf32, #tpu.memory_space<vmem>>, vector<35x32xf32>
    %c0_172 = arith.constant 0 : index
    %c0_173 = arith.constant 0 : index
    %c0_174 = arith.constant 0 : index
    %284 = vector.load %arg6[%c0_172, %c0_173, %c0_174] : memref<9x32x64xf32, #tpu.memory_space<vmem>>, vector<1x32x64xf32>
    %285 = vector.shape_cast %284 : vector<1x32x64xf32> to vector<32x64xf32>
    %cst_175 = arith.constant dense<0.000000e+00> : vector<35x64xf32>
    %286 = tpu.matmul %283, %285, %cst_175 {dimension_numbers = #tpu.dot_dimension_numbers<[1], [0], [0], [1], [0, 0, 1, 1], [], []>} : vector<35x32xf32>, vector<32x64xf32>, vector<35x64xf32> -> vector<35x64xf32>
    %c1_176 = arith.constant 1 : index
    %c0_177 = arith.constant 0 : index
    %287 = vector.load %arg12[%c1_176, %c0_177] : memref<72x32xf32, #tpu.memory_space<vmem>>, vector<35x32xf32>
    %c1_178 = arith.constant 1 : index
    %c0_179 = arith.constant 0 : index
    %c0_180 = arith.constant 0 : index
    %288 = vector.load %arg6[%c1_178, %c0_179, %c0_180] : memref<9x32x64xf32, #tpu.memory_space<vmem>>, vector<1x32x64xf32>
    %289 = vector.shape_cast %288 : vector<1x32x64xf32> to vector<32x64xf32>
    %cst_181 = arith.constant dense<0.000000e+00> : vector<35x64xf32>
    %290 = tpu.matmul %287, %289, %cst_181 {dimension_numbers = #tpu.dot_dimension_numbers<[1], [0], [0], [1], [0, 0, 1, 1], [], []>} : vector<35x32xf32>, vector<32x64xf32>, vector<35x64xf32> -> vector<35x64xf32>
    %291 = arith.addf %286, %290 : vector<35x64xf32>
    %c2_182 = arith.constant 2 : index
    %c0_183 = arith.constant 0 : index
    %292 = vector.load %arg12[%c2_182, %c0_183] : memref<72x32xf32, #tpu.memory_space<vmem>>, vector<35x32xf32>
    %c2_184 = arith.constant 2 : index
    %c0_185 = arith.constant 0 : index
    %c0_186 = arith.constant 0 : index
    %293 = vector.load %arg6[%c2_184, %c0_185, %c0_186] : memref<9x32x64xf32, #tpu.memory_space<vmem>>, vector<1x32x64xf32>
    %294 = vector.shape_cast %293 : vector<1x32x64xf32> to vector<32x64xf32>
    %cst_187 = arith.constant dense<0.000000e+00> : vector<35x64xf32>
    %295 = tpu.matmul %292, %294, %cst_187 {dimension_numbers = #tpu.dot_dimension_numbers<[1], [0], [0], [1], [0, 0, 1, 1], [], []>} : vector<35x32xf32>, vector<32x64xf32>, vector<35x64xf32> -> vector<35x64xf32>
    %296 = arith.addf %291, %295 : vector<35x64xf32>
    %c16_188 = arith.constant 16 : index
    %c0_189 = arith.constant 0 : index
    %297 = vector.load %arg12[%c16_188, %c0_189] : memref<72x32xf32, #tpu.memory_space<vmem>>, vector<35x32xf32>
    %c3_190 = arith.constant 3 : index
    %c0_191 = arith.constant 0 : index
    %c0_192 = arith.constant 0 : index
    %298 = vector.load %arg6[%c3_190, %c0_191, %c0_192] : memref<9x32x64xf32, #tpu.memory_space<vmem>>, vector<1x32x64xf32>
    %299 = vector.shape_cast %298 : vector<1x32x64xf32> to vector<32x64xf32>
    %cst_193 = arith.constant dense<0.000000e+00> : vector<35x64xf32>
    %300 = tpu.matmul %297, %299, %cst_193 {dimension_numbers = #tpu.dot_dimension_numbers<[1], [0], [0], [1], [0, 0, 1, 1], [], []>} : vector<35x32xf32>, vector<32x64xf32>, vector<35x64xf32> -> vector<35x64xf32>
    %301 = arith.addf %296, %300 : vector<35x64xf32>
    %c17_194 = arith.constant 17 : index
    %c0_195 = arith.constant 0 : index
    %302 = vector.load %arg12[%c17_194, %c0_195] : memref<72x32xf32, #tpu.memory_space<vmem>>, vector<35x32xf32>
    %c4_196 = arith.constant 4 : index
    %c0_197 = arith.constant 0 : index
    %c0_198 = arith.constant 0 : index
    %303 = vector.load %arg6[%c4_196, %c0_197, %c0_198] : memref<9x32x64xf32, #tpu.memory_space<vmem>>, vector<1x32x64xf32>
    %304 = vector.shape_cast %303 : vector<1x32x64xf32> to vector<32x64xf32>
    %cst_199 = arith.constant dense<0.000000e+00> : vector<35x64xf32>
    %305 = tpu.matmul %302, %304, %cst_199 {dimension_numbers = #tpu.dot_dimension_numbers<[1], [0], [0], [1], [0, 0, 1, 1], [], []>} : vector<35x32xf32>, vector<32x64xf32>, vector<35x64xf32> -> vector<35x64xf32>
    %306 = arith.addf %301, %305 : vector<35x64xf32>
    %c18_200 = arith.constant 18 : index
    %c0_201 = arith.constant 0 : index
    %307 = vector.load %arg12[%c18_200, %c0_201] : memref<72x32xf32, #tpu.memory_space<vmem>>, vector<35x32xf32>
    %c5_202 = arith.constant 5 : index
    %c0_203 = arith.constant 0 : index
    %c0_204 = arith.constant 0 : index
    %308 = vector.load %arg6[%c5_202, %c0_203, %c0_204] : memref<9x32x64xf32, #tpu.memory_space<vmem>>, vector<1x32x64xf32>
    %309 = vector.shape_cast %308 : vector<1x32x64xf32> to vector<32x64xf32>
    %cst_205 = arith.constant dense<0.000000e+00> : vector<35x64xf32>
    %310 = tpu.matmul %307, %309, %cst_205 {dimension_numbers = #tpu.dot_dimension_numbers<[1], [0], [0], [1], [0, 0, 1, 1], [], []>} : vector<35x32xf32>, vector<32x64xf32>, vector<35x64xf32> -> vector<35x64xf32>
    %311 = arith.addf %306, %310 : vector<35x64xf32>
    %c32_206 = arith.constant 32 : index
    %c0_207 = arith.constant 0 : index
    %312 = vector.load %arg12[%c32_206, %c0_207] : memref<72x32xf32, #tpu.memory_space<vmem>>, vector<35x32xf32>
    %c6_208 = arith.constant 6 : index
    %c0_209 = arith.constant 0 : index
    %c0_210 = arith.constant 0 : index
    %313 = vector.load %arg6[%c6_208, %c0_209, %c0_210] : memref<9x32x64xf32, #tpu.memory_space<vmem>>, vector<1x32x64xf32>
    %314 = vector.shape_cast %313 : vector<1x32x64xf32> to vector<32x64xf32>
    %cst_211 = arith.constant dense<0.000000e+00> : vector<35x64xf32>
    %315 = tpu.matmul %312, %314, %cst_211 {dimension_numbers = #tpu.dot_dimension_numbers<[1], [0], [0], [1], [0, 0, 1, 1], [], []>} : vector<35x32xf32>, vector<32x64xf32>, vector<35x64xf32> -> vector<35x64xf32>
    %316 = arith.addf %311, %315 : vector<35x64xf32>
    %c33_212 = arith.constant 33 : index
    %c0_213 = arith.constant 0 : index
    %317 = vector.load %arg12[%c33_212, %c0_213] : memref<72x32xf32, #tpu.memory_space<vmem>>, vector<35x32xf32>
    %c7_214 = arith.constant 7 : index
    %c0_215 = arith.constant 0 : index
    %c0_216 = arith.constant 0 : index
    %318 = vector.load %arg6[%c7_214, %c0_215, %c0_216] : memref<9x32x64xf32, #tpu.memory_space<vmem>>, vector<1x32x64xf32>
    %319 = vector.shape_cast %318 : vector<1x32x64xf32> to vector<32x64xf32>
    %cst_217 = arith.constant dense<0.000000e+00> : vector<35x64xf32>
    %320 = tpu.matmul %317, %319, %cst_217 {dimension_numbers = #tpu.dot_dimension_numbers<[1], [0], [0], [1], [0, 0, 1, 1], [], []>} : vector<35x32xf32>, vector<32x64xf32>, vector<35x64xf32> -> vector<35x64xf32>
    %321 = arith.addf %316, %320 : vector<35x64xf32>
    %c34_218 = arith.constant 34 : index
    %c0_219 = arith.constant 0 : index
    %322 = vector.load %arg12[%c34_218, %c0_219] : memref<72x32xf32, #tpu.memory_space<vmem>>, vector<35x32xf32>
    %c8_220 = arith.constant 8 : index
    %c0_221 = arith.constant 0 : index
    %c0_222 = arith.constant 0 : index
    %323 = vector.load %arg6[%c8_220, %c0_221, %c0_222] : memref<9x32x64xf32, #tpu.memory_space<vmem>>, vector<1x32x64xf32>
    %324 = vector.shape_cast %323 : vector<1x32x64xf32> to vector<32x64xf32>
    %cst_223 = arith.constant dense<0.000000e+00> : vector<35x64xf32>
    %325 = tpu.matmul %322, %324, %cst_223 {dimension_numbers = #tpu.dot_dimension_numbers<[1], [0], [0], [1], [0, 0, 1, 1], [], []>} : vector<35x32xf32>, vector<32x64xf32>, vector<35x64xf32> -> vector<35x64xf32>
    %326 = arith.addf %321, %325 : vector<35x64xf32>
    %cst_224 = arith.constant 0.000000e+00 : f32
    %327 = vector.broadcast %cst_224 : f32 to vector<72x64xf32>
    %c0_225 = arith.constant 0 : index
    %c0_226 = arith.constant 0 : index
    %328 = vector.load %arg13[%c0_225, %c0_226] : memref<72x64xf32, #tpu.memory_space<vmem>>, vector<72x64xf32>
    tpu.vector_store %arg13[%c0_225, %c0_226], %327 {strides = array<i32>} : memref<72x64xf32, #tpu.memory_space<vmem>>, vector<72x64xf32>,
    %329 = vector.extract_strided_slice %326 {offsets = [0, 0], sizes = [3, 64], strides = [1, 1]} : vector<35x64xf32> to vector<3x64xf32>
    %330 = vector.extract_strided_slice %326 {offsets = [16, 0], sizes = [3, 64], strides = [1, 1]} : vector<35x64xf32> to vector<3x64xf32>
    %331 = vector.extract_strided_slice %326 {offsets = [32, 0], sizes = [3, 64], strides = [1, 1]} : vector<35x64xf32> to vector<3x64xf32>
    %cst_227 = arith.constant dense<0.000000e+00> : vector<64xf32>
    %332 = vector.multi_reduction <add>, %329, %cst_227 [0] : vector<3x64xf32> to vector<64xf32>
    %333 = vector.shape_cast %332 : vector<64xf32> to vector<1x64xf32>
    %cst_228 = arith.constant 0.000000e+00 : f32
    %334 = vector.broadcast %cst_228 : f32 to vector<1x64xf32>
    %335 = arith.addf %334, %333 : vector<1x64xf32>
    %cst_229 = arith.constant dense<0.000000e+00> : vector<64xf32>
    %336 = vector.multi_reduction <add>, %330, %cst_229 [0] : vector<3x64xf32> to vector<64xf32>
    %337 = vector.shape_cast %336 : vector<64xf32> to vector<1x64xf32>
    %338 = arith.addf %335, %337 : vector<1x64xf32>
    %cst_230 = arith.constant dense<0.000000e+00> : vector<64xf32>
    %339 = vector.multi_reduction <add>, %331, %cst_230 [0] : vector<3x64xf32> to vector<64xf32>
    %340 = vector.shape_cast %339 : vector<64xf32> to vector<1x64xf32>
    %341 = arith.addf %338, %340 : vector<1x64xf32>
    %cst_231 = arith.constant 9.000000e+00 : f32
    %342 = vector.broadcast %cst_231 : f32 to vector<1x64xf32>
    %343 = arith.divf %341, %342 : vector<1x64xf32>
    %344 = vector.broadcast %343 : vector<1x64xf32> to vector<3x64xf32>
    %345 = arith.subf %329, %344 : vector<3x64xf32>
    %346 = arith.mulf %345, %345 : vector<3x64xf32>
    %cst_232 = arith.constant dense<0.000000e+00> : vector<64xf32>
    %347 = vector.multi_reduction <add>, %346, %cst_232 [0] : vector<3x64xf32> to vector<64xf32>
    %348 = vector.shape_cast %347 : vector<64xf32> to vector<1x64xf32>
    %cst_233 = arith.constant 0.000000e+00 : f32
    %349 = vector.broadcast %cst_233 : f32 to vector<1x64xf32>
    %350 = arith.addf %349, %348 : vector<1x64xf32>
    %351 = vector.broadcast %343 : vector<1x64xf32> to vector<3x64xf32>
    %352 = arith.subf %330, %351 : vector<3x64xf32>
    %353 = arith.mulf %352, %352 : vector<3x64xf32>
    %cst_234 = arith.constant dense<0.000000e+00> : vector<64xf32>
    %354 = vector.multi_reduction <add>, %353, %cst_234 [0] : vector<3x64xf32> to vector<64xf32>
    %355 = vector.shape_cast %354 : vector<64xf32> to vector<1x64xf32>
    %356 = arith.addf %350, %355 : vector<1x64xf32>
    %357 = vector.broadcast %343 : vector<1x64xf32> to vector<3x64xf32>
    %358 = arith.subf %331, %357 : vector<3x64xf32>
    %359 = arith.mulf %358, %358 : vector<3x64xf32>
    %cst_235 = arith.constant dense<0.000000e+00> : vector<64xf32>
    %360 = vector.multi_reduction <add>, %359, %cst_235 [0] : vector<3x64xf32> to vector<64xf32>
    %361 = vector.shape_cast %360 : vector<64xf32> to vector<1x64xf32>
    %362 = arith.addf %356, %361 : vector<1x64xf32>
    %cst_236 = arith.constant 9.000000e+00 : f32
    %363 = vector.broadcast %cst_236 : f32 to vector<1x64xf32>
    %364 = arith.divf %362, %363 : vector<1x64xf32>
    %365 = vector.broadcast %343 : vector<1x64xf32> to vector<35x64xf32>
    %366 = arith.subf %326, %365 : vector<35x64xf32>
    %cst_237 = arith.constant 9.99999974E-6 : f32
    %367 = vector.broadcast %cst_237 : f32 to vector<1x64xf32>
    %368 = arith.addf %364, %367 : vector<1x64xf32>
    %369 = math.rsqrt %368 : vector<1x64xf32>
    %370 = vector.broadcast %369 : vector<1x64xf32> to vector<35x64xf32>
    %371 = arith.mulf %366, %370 : vector<35x64xf32>
    %cst_238 = arith.constant 0.000000e+00 : f32
    %372 = vector.broadcast %cst_238 : f32 to vector<35x64xf32>
    %373 = arith.cmpf oge, %371, %372 : vector<35x64xf32>
    %cst_239 = arith.constant 0.00999999977 : f32
    %374 = vector.broadcast %cst_239 : f32 to vector<35x64xf32>
    %375 = arith.mulf %374, %371 : vector<35x64xf32>
    %376 = arith.select %373, %371, %375 : vector<35x64xi1>, vector<35x64xf32>
    %377 = vector.broadcast %20 : vector<35x1xf32> to vector<35x64xf32>
    %378 = arith.mulf %377, %376 : vector<35x64xf32>
    %c17_240 = arith.constant 17 : index
    %c0_241 = arith.constant 0 : index
    %379 = vector.load %arg13[%c17_240, %c0_241] : memref<72x64xf32, #tpu.memory_space<vmem>>, vector<35x64xf32>
    tpu.vector_store %arg13[%c17_240, %c0_241], %378 {strides = array<i32>} : memref<72x64xf32, #tpu.memory_space<vmem>>, vector<35x64xf32>,
    %c0_242 = arith.constant 0 : index
    %c0_243 = arith.constant 0 : index
    %380 = vector.load %arg13[%c0_242, %c0_243] : memref<72x64xf32, #tpu.memory_space<vmem>>, vector<35x64xf32>
    %c0_244 = arith.constant 0 : index
    %c0_245 = arith.constant 0 : index
    %c0_246 = arith.constant 0 : index
    %381 = vector.load %arg7[%c0_244, %c0_245, %c0_246] : memref<9x64x4xf32, #tpu.memory_space<vmem>>, vector<1x64x4xf32>
    %382 = vector.shape_cast %381 : vector<1x64x4xf32> to vector<64x4xf32>
    %cst_247 = arith.constant dense<0.000000e+00> : vector<35x4xf32>
    %383 = tpu.matmul %380, %382, %cst_247 {dimension_numbers = #tpu.dot_dimension_numbers<[1], [0], [0], [1], [0, 0, 1, 1], [], []>} : vector<35x64xf32>, vector<64x4xf32>, vector<35x4xf32> -> vector<35x4xf32>
    %c1_248 = arith.constant 1 : index
    %c0_249 = arith.constant 0 : index
    %384 = vector.load %arg13[%c1_248, %c0_249] : memref<72x64xf32, #tpu.memory_space<vmem>>, vector<35x64xf32>
    %c1_250 = arith.constant 1 : index
    %c0_251 = arith.constant 0 : index
    %c0_252 = arith.constant 0 : index
    %385 = vector.load %arg7[%c1_250, %c0_251, %c0_252] : memref<9x64x4xf32, #tpu.memory_space<vmem>>, vector<1x64x4xf32>
    %386 = vector.shape_cast %385 : vector<1x64x4xf32> to vector<64x4xf32>
    %cst_253 = arith.constant dense<0.000000e+00> : vector<35x4xf32>
    %387 = tpu.matmul %384, %386, %cst_253 {dimension_numbers = #tpu.dot_dimension_numbers<[1], [0], [0], [1], [0, 0, 1, 1], [], []>} : vector<35x64xf32>, vector<64x4xf32>, vector<35x4xf32> -> vector<35x4xf32>
    %388 = arith.addf %383, %387 : vector<35x4xf32>
    %c2_254 = arith.constant 2 : index
    %c0_255 = arith.constant 0 : index
    %389 = vector.load %arg13[%c2_254, %c0_255] : memref<72x64xf32, #tpu.memory_space<vmem>>, vector<35x64xf32>
    %c2_256 = arith.constant 2 : index
    %c0_257 = arith.constant 0 : index
    %c0_258 = arith.constant 0 : index
    %390 = vector.load %arg7[%c2_256, %c0_257, %c0_258] : memref<9x64x4xf32, #tpu.memory_space<vmem>>, vector<1x64x4xf32>
    %391 = vector.shape_cast %390 : vector<1x64x4xf32> to vector<64x4xf32>
    %cst_259 = arith.constant dense<0.000000e+00> : vector<35x4xf32>
    %392 = tpu.matmul %389, %391, %cst_259 {dimension_numbers = #tpu.dot_dimension_numbers<[1], [0], [0], [1], [0, 0, 1, 1], [], []>} : vector<35x64xf32>, vector<64x4xf32>, vector<35x4xf32> -> vector<35x4xf32>
    %393 = arith.addf %388, %392 : vector<35x4xf32>
    %c16_260 = arith.constant 16 : index
    %c0_261 = arith.constant 0 : index
    %394 = vector.load %arg13[%c16_260, %c0_261] : memref<72x64xf32, #tpu.memory_space<vmem>>, vector<35x64xf32>
    %c3_262 = arith.constant 3 : index
    %c0_263 = arith.constant 0 : index
    %c0_264 = arith.constant 0 : index
    %395 = vector.load %arg7[%c3_262, %c0_263, %c0_264] : memref<9x64x4xf32, #tpu.memory_space<vmem>>, vector<1x64x4xf32>
    %396 = vector.shape_cast %395 : vector<1x64x4xf32> to vector<64x4xf32>
    %cst_265 = arith.constant dense<0.000000e+00> : vector<35x4xf32>
    %397 = tpu.matmul %394, %396, %cst_265 {dimension_numbers = #tpu.dot_dimension_numbers<[1], [0], [0], [1], [0, 0, 1, 1], [], []>} : vector<35x64xf32>, vector<64x4xf32>, vector<35x4xf32> -> vector<35x4xf32>
    %398 = arith.addf %393, %397 : vector<35x4xf32>
    %c17_266 = arith.constant 17 : index
    %c0_267 = arith.constant 0 : index
    %399 = vector.load %arg13[%c17_266, %c0_267] : memref<72x64xf32, #tpu.memory_space<vmem>>, vector<35x64xf32>
    %c4_268 = arith.constant 4 : index
    %c0_269 = arith.constant 0 : index
    %c0_270 = arith.constant 0 : index
    %400 = vector.load %arg7[%c4_268, %c0_269, %c0_270] : memref<9x64x4xf32, #tpu.memory_space<vmem>>, vector<1x64x4xf32>
    %401 = vector.shape_cast %400 : vector<1x64x4xf32> to vector<64x4xf32>
    %cst_271 = arith.constant dense<0.000000e+00> : vector<35x4xf32>
    %402 = tpu.matmul %399, %401, %cst_271 {dimension_numbers = #tpu.dot_dimension_numbers<[1], [0], [0], [1], [0, 0, 1, 1], [], []>} : vector<35x64xf32>, vector<64x4xf32>, vector<35x4xf32> -> vector<35x4xf32>
    %403 = arith.addf %398, %402 : vector<35x4xf32>
    %c18_272 = arith.constant 18 : index
    %c0_273 = arith.constant 0 : index
    %404 = vector.load %arg13[%c18_272, %c0_273] : memref<72x64xf32, #tpu.memory_space<vmem>>, vector<35x64xf32>
    %c5_274 = arith.constant 5 : index
    %c0_275 = arith.constant 0 : index
    %c0_276 = arith.constant 0 : index
    %405 = vector.load %arg7[%c5_274, %c0_275, %c0_276] : memref<9x64x4xf32, #tpu.memory_space<vmem>>, vector<1x64x4xf32>
    %406 = vector.shape_cast %405 : vector<1x64x4xf32> to vector<64x4xf32>
    %cst_277 = arith.constant dense<0.000000e+00> : vector<35x4xf32>
    %407 = tpu.matmul %404, %406, %cst_277 {dimension_numbers = #tpu.dot_dimension_numbers<[1], [0], [0], [1], [0, 0, 1, 1], [], []>} : vector<35x64xf32>, vector<64x4xf32>, vector<35x4xf32> -> vector<35x4xf32>
    %408 = arith.addf %403, %407 : vector<35x4xf32>
    %c32_278 = arith.constant 32 : index
    %c0_279 = arith.constant 0 : index
    %409 = vector.load %arg13[%c32_278, %c0_279] : memref<72x64xf32, #tpu.memory_space<vmem>>, vector<35x64xf32>
    %c6_280 = arith.constant 6 : index
    %c0_281 = arith.constant 0 : index
    %c0_282 = arith.constant 0 : index
    %410 = vector.load %arg7[%c6_280, %c0_281, %c0_282] : memref<9x64x4xf32, #tpu.memory_space<vmem>>, vector<1x64x4xf32>
    %411 = vector.shape_cast %410 : vector<1x64x4xf32> to vector<64x4xf32>
    %cst_283 = arith.constant dense<0.000000e+00> : vector<35x4xf32>
    %412 = tpu.matmul %409, %411, %cst_283 {dimension_numbers = #tpu.dot_dimension_numbers<[1], [0], [0], [1], [0, 0, 1, 1], [], []>} : vector<35x64xf32>, vector<64x4xf32>, vector<35x4xf32> -> vector<35x4xf32>
    %413 = arith.addf %408, %412 : vector<35x4xf32>
    %c33_284 = arith.constant 33 : index
    %c0_285 = arith.constant 0 : index
    %414 = vector.load %arg13[%c33_284, %c0_285] : memref<72x64xf32, #tpu.memory_space<vmem>>, vector<35x64xf32>
    %c7_286 = arith.constant 7 : index
    %c0_287 = arith.constant 0 : index
    %c0_288 = arith.constant 0 : index
    %415 = vector.load %arg7[%c7_286, %c0_287, %c0_288] : memref<9x64x4xf32, #tpu.memory_space<vmem>>, vector<1x64x4xf32>
    %416 = vector.shape_cast %415 : vector<1x64x4xf32> to vector<64x4xf32>
    %cst_289 = arith.constant dense<0.000000e+00> : vector<35x4xf32>
    %417 = tpu.matmul %414, %416, %cst_289 {dimension_numbers = #tpu.dot_dimension_numbers<[1], [0], [0], [1], [0, 0, 1, 1], [], []>} : vector<35x64xf32>, vector<64x4xf32>, vector<35x4xf32> -> vector<35x4xf32>
    %418 = arith.addf %413, %417 : vector<35x4xf32>
    %c34_290 = arith.constant 34 : index
    %c0_291 = arith.constant 0 : index
    %419 = vector.load %arg13[%c34_290, %c0_291] : memref<72x64xf32, #tpu.memory_space<vmem>>, vector<35x64xf32>
    %c8_292 = arith.constant 8 : index
    %c0_293 = arith.constant 0 : index
    %c0_294 = arith.constant 0 : index
    %420 = vector.load %arg7[%c8_292, %c0_293, %c0_294] : memref<9x64x4xf32, #tpu.memory_space<vmem>>, vector<1x64x4xf32>
    %421 = vector.shape_cast %420 : vector<1x64x4xf32> to vector<64x4xf32>
    %cst_295 = arith.constant dense<0.000000e+00> : vector<35x4xf32>
    %422 = tpu.matmul %419, %421, %cst_295 {dimension_numbers = #tpu.dot_dimension_numbers<[1], [0], [0], [1], [0, 0, 1, 1], [], []>} : vector<35x64xf32>, vector<64x4xf32>, vector<35x4xf32> -> vector<35x4xf32>
    %423 = arith.addf %418, %422 : vector<35x4xf32>
    %424 = vector.extract_strided_slice %423 {offsets = [0, 0], sizes = [3, 4], strides = [1, 1]} : vector<35x4xf32> to vector<3x4xf32>
    %425 = vector.extract_strided_slice %423 {offsets = [16, 0], sizes = [3, 4], strides = [1, 1]} : vector<35x4xf32> to vector<3x4xf32>
    %426 = vector.extract_strided_slice %423 {offsets = [32, 0], sizes = [3, 4], strides = [1, 1]} : vector<35x4xf32> to vector<3x4xf32>
    %427 = tpu.concatenate %424, %425, %426 in 0 : vector<3x4xf32>, vector<3x4xf32>, vector<3x4xf32> -> vector<9x4xf32>
    %c0_296 = arith.constant 0 : index
    %c0_297 = arith.constant 0 : index
    %428 = vector.load %arg8[%c0_296, %c0_297] : memref<1x4xf32, #tpu.memory_space<vmem>>, vector<1x4xf32>
    %429 = vector.broadcast %428 : vector<1x4xf32> to vector<9x4xf32>
    %430 = arith.addf %427, %429 : vector<9x4xf32>
    %cst_298 = arith.constant 0.000000e+00 : f32
    %431 = vector.broadcast %cst_298 : f32 to vector<9x4xf32>
    %432 = arith.subf %431, %430 : vector<9x4xf32>
    %433 = math.exp %432 : vector<9x4xf32>
    %cst_299 = arith.constant 1.000000e+00 : f32
    %434 = vector.broadcast %cst_299 : f32 to vector<9x4xf32>
    %435 = arith.addf %434, %433 : vector<9x4xf32>
    %cst_300 = arith.constant 1.000000e+00 : f32
    %436 = vector.broadcast %cst_300 : f32 to vector<9x4xf32>
    %437 = arith.divf %436, %435 : vector<9x4xf32>
    %c0_301 = arith.constant 0 : index
    %c0_302 = arith.constant 0 : index
    %c0_303 = arith.constant 0 : index
    %438 = vector.load %arg9[%c0_301, %c0_302, %c0_303] : memref<1x9x4xf32, #tpu.memory_space<vmem>>, vector<1x9x4xf32>
    %439 = vector.shape_cast %438 : vector<1x9x4xf32> to vector<9x4xf32>
    %440 = vector.shape_cast %437 : vector<9x4xf32> to vector<1x9x4xf32>
    tpu.vector_store %arg9[%c0_301, %c0_302, %c0_303], %440 {strides = array<i32>} : memref<1x9x4xf32, #tpu.memory_space<vmem>>, vector<1x9x4xf32>,
    return
  }
  func.func @transform_0(%arg0: i32) -> (i32, i32, i32) {
    %c0_i32 = arith.constant 0 : i32
    %c0_i32_0 = arith.constant 0 : i32
    %c0_i32_1 = arith.constant 0 : i32
    return %arg0, %c0_i32, %c0_i32_0 : i32, i32, i32
  }
  func.func @transform_1(%arg0: i32) -> (i32, i32, i32) {
    %c0_i32 = arith.constant 0 : i32
    %c0_i32_0 = arith.constant 0 : i32
    %c0_i32_1 = arith.constant 0 : i32
    %c0_i32_2 = arith.constant 0 : i32
    return %c0_i32, %c0_i32_0, %c0_i32_1 : i32, i32, i32
  }
  func.func @transform_2(%arg0: i32) -> (i32, i32) {
    %c0_i32 = arith.constant 0 : i32
    %c0_i32_0 = arith.constant 0 : i32
    %c0_i32_1 = arith.constant 0 : i32
    return %c0_i32, %c0_i32_0 : i32, i32
  }
  func.func @transform_3(%arg0: i32) -> (i32, i32, i32) {
    %c0_i32 = arith.constant 0 : i32
    %c0_i32_0 = arith.constant 0 : i32
    %c0_i32_1 = arith.constant 0 : i32
    %c0_i32_2 = arith.constant 0 : i32
    return %c0_i32, %c0_i32_0, %c0_i32_1 : i32, i32, i32
  }
  func.func @transform_4(%arg0: i32) -> (i32, i32, i32) {
    %c0_i32 = arith.constant 0 : i32
    %c0_i32_0 = arith.constant 0 : i32
    %c0_i32_1 = arith.constant 0 : i32
    %c0_i32_2 = arith.constant 0 : i32
    return %c0_i32, %c0_i32_0, %c0_i32_1 : i32, i32, i32
  }
  func.func @transform_5(%arg0: i32) -> (i32, i32, i32) {
    %c0_i32 = arith.constant 0 : i32
    %c0_i32_0 = arith.constant 0 : i32
    %c0_i32_1 = arith.constant 0 : i32
    %c0_i32_2 = arith.constant 0 : i32
    return %c0_i32, %c0_i32_0, %c0_i32_1 : i32, i32, i32
  }
  func.func @transform_6(%arg0: i32) -> (i32, i32, i32) {
    %c0_i32 = arith.constant 0 : i32
    %c0_i32_0 = arith.constant 0 : i32
    %c0_i32_1 = arith.constant 0 : i32
    %c0_i32_2 = arith.constant 0 : i32
    return %c0_i32, %c0_i32_0, %c0_i32_1 : i32, i32, i32
  }
  func.func @transform_7(%arg0: i32) -> (i32, i32) {
    %c0_i32 = arith.constant 0 : i32
    %c0_i32_0 = arith.constant 0 : i32
    %c0_i32_1 = arith.constant 0 : i32
    return %c0_i32, %c0_i32_0 : i32, i32
  }
  func.func @transform_8(%arg0: i32) -> (i32, i32, i32) {
    %c0_i32 = arith.constant 0 : i32
    %c0_i32_0 = arith.constant 0 : i32
    %c0_i32_1 = arith.constant 0 : i32
    return %arg0, %c0_i32, %c0_i32_0 : i32, i32, i32
  }
}

</mosaic_0001>

<bundles_post_ra>
// kernel: discriminator_forward.1
= control target key start
LH: loop header
LB: loop body
LE: loop exit
PB: predicated region body
PF: predicated region fallthrough
CT: control target
= control target key end

     0   :  { %s10506_s27 = smov 0   ;;  %s12429_s0 = inlined_call_operand.vmem [shape: f32[2,256,16], index: 0, kind: input, shape index: {}]   ;;  %s12430_s1 = inlined_call_operand.vmem [shape: f32[4,16,8], index: 1, kind: input, shape index: {}]   ;;  %s12431_s2 = inlined_call_operand.vmem [shape: f32[1,8], index: 2, kind: input, shape index: {}]   ;;  %s12432_s3 = inlined_call_operand.vmem [shape: f32[9,8,16], index: 3, kind: input, shape index: {}]   ;;  %s12433_s4 = inlined_call_operand.vmem [shape: f32[9,16,32], index: 4, kind: input, shape index: {}]   ;;  %s12434_s5 = inlined_call_operand.vmem [shape: f32[9,32,64], index: 5, kind: input, shape index: {}]   ;;  %s12435_s6 = inlined_call_operand.vmem [shape: f32[9,64,4], index: 6, kind: input, shape index: {}]   ;;  %s12436_s7 = inlined_call_operand.vmem [shape: f32[1,4], index: 7, kind: input, shape index: {}]   ;;  %s12437_s8 = inlined_call_operand.vmem [shape: f32[2,9,4], index: 8, kind: output, shape index: {}]  }
   0x1 LB: > { %s7457_s28 = sadd.s32 4294967295, %s10456_s27   ;;  %p7461_p0 = scmp.ge.s32.totalorder %s10456_s27, 1  ;;  %s10456_s27 = sphi %s10506_s27, %s18_s27  }
   0x2   : > { %p262_p1 = scmp.lt.s32.totalorder %s10456_s27, 3 }
   0x4   : > { %p263_p2 = pnand %p7461_p0, %p262_p1 }
   0x5   : > { %v7469_v0 = vld [vmem:[%s12430_s1 + $0x10] sm:$0xff] (!%p263_p2)  ;;  %v7470_v1 = vld [vmem:[%s12430_s1 + $0x18] sm:$0xff] (!%p263_p2)  ;;  %p296_p3 = scmp.lt.s32.totalorder (!%p263_p2), %s7457_s28, 1  ;;  %v417_v2 = vld [vmem:[%s12430_s1] sm:$0xff] (!%p263_p2)  ;;  %vm452_vm0 = vcmask (!%p263_p2), 130048   ;;  %vm10459_vm1 = vmmov (!%p263_p2), 0  }
   0x6   : > { %266 = sbr.rel (%p263_p2) target bundleno = 2499 (0x9c3), region = 52  ;;  %v9710_v3 = vpack.c.bf16 (!%p263_p2), %v7470_v1, %v7469_v0  ;;  %v418_v4 = vld [vmem:[%s12430_s1 + $0x8] sm:$0xff] (!%p263_p2)  ;;  %v7531_v6 = vld [vmem:[%s12430_s1 + $0x20] sm:$0xff] (!%p263_p2)  ;;  %v7563_v40 = vld [vmem:[%s12430_s1 + $0x30] sm:$0xff] (!%p263_p2)  ;;  %vm1926_vm3 = vcmask (!%p263_p2), 64512  }
   0x7   : > { %v9714_v5 = vpack.c.bf16 (!%p263_p2), %v418_v4, %v417_v2  ;;  %v7532_v7 = vld [vmem:[%s12430_s1 + $0x28] sm:$0xff] (!%p263_p2)  ;;  %v7564_v41 = vld [vmem:[%s12430_s1 + $0x38] sm:$0xff] (!%p263_p2) }
   0x8   : > { %9711 = vmatprep.subr.bf16.mxu0 (!%p263_p2), %v9710_v3  ;;  %v10545_v11 = vpack.c.bf16 (!%p263_p2), %v7532_v7, %v7531_v6  ;;  %v9722_v44 = vpack.c.bf16 (!%p263_p2), %v7564_v41, %v7563_v40 }
   0x9   : > { %9713 = vmatpush3.bf16.msra.mxu0 (!%p263_p2), %v9710_v3 }
   0xa   : > { %9715 = vmatprep.subr.bf16.mxu0 (!%p263_p2), %v9714_v5 }
   0xd   : > { %s12439_s28 = smov (!%p296_p3, %s7457_s28), 1 }
   0xe   : > { %s7971_s19 = sshll.u32 %s12439_s28, 8  ;;  %s7972_s21 = sshll.u32 %s12439_s28, 4 }
   0xf   : > { %s10538_s22 = scalar_lea.vmem %s12429_s0, %s7971_s19  ;;  %s305_s24 = scalar_lea.vmem %s12437_s8, %s7972_s21 }
  0x10   : > { %v419_v8 = vld [vmem:[%s10538_s22 + $0x1] sm:$0xff]  ;;  %v420_v9 = vld [vmem:[%s10538_s22 + $0x9] sm:$0xff]  ;;  %v10543_v10 = vld [vmem:[%s10538_s22 + $0x11] sm:$0xff] }
  0x11   : > { %8492 = vmatprep.mubr.msk.f32.mxu0 %vm452_vm0, %v419_v8  ;;  %v10552_v12 = vld [vmem:[%s10538_s22 + $0x19] sm:$0xff]  ;;  %v10555_v13 = vld [vmem:[%s10538_s22 + $0x21] sm:$0xff]  ;;  %v10563_v14 = vld [vmem:[%s10538_s22 + $0x29] sm:$0xff] }
  0x12   : > { %8493 = vmatmul.mubr.msk.f32.vlgmr.msra.gmra.mrb[0].mxu0 %vm452_vm0, %v420_v9  ;;  %v10566_v15 = vld [vmem:[%s10538_s22 + $0x31] sm:$0xff]  ;;  %v10573_v16 = vld [vmem:[%s10538_s22 + $0x39] sm:$0xff]  ;;  %v10576_v17 = vld [vmem:[%s10538_s22 + $0x41] sm:$0xff] }
  0x13   : > { %9717 = vmatpush3.bf16.msra.mxu0 %v9714_v5  ;;  %8495 = vmatprep.mubr.msk.f32.mxu0 %vm452_vm0, %v10543_v10  ;;  %v10583_v18 = vld [vmem:[%s10538_s22 + $0x49] sm:$0xff]  ;;  %v10586_v19 = vld [vmem:[%s10538_s22 + $0x51] sm:$0xff]  ;;  %v10593_v20 = vld [vmem:[%s10538_s22 + $0x59] sm:$0xff] }
  0x14   : > { %9719 = vmatprep.subr.bf16.mxu0 %v10545_v11  ;;  %v10596_v21 = vld [vmem:[%s10538_s22 + $0x61] sm:$0xff]  ;;  %v10603_v22 = vld [vmem:[%s10538_s22 + $0x69] sm:$0xff]  ;;  %v10606_v23 = vld [vmem:[%s10538_s22 + $0x71] sm:$0xff] }
  0x15   : > { %v10613_v24 = vld [vmem:[%s10538_s22 + $0x79] sm:$0xff]  ;;  %v10616_v25 = vld [vmem:[%s10538_s22 + $0x81] sm:$0xff]  ;;  %v10623_v26 = vld [vmem:[%s10538_s22 + $0x89] sm:$0xff] }
  0x16   : > { %8496 = vmatmul.mubr.msk.f32.gmra.mrb[2].mxu0 %vm452_vm0, %v10552_v12  ;;  %v10626_v27 = vld [vmem:[%s10538_s22 + $0x91] sm:$0xff]  ;;  %v10633_v28 = vld [vmem:[%s10538_s22 + $0x99] sm:$0xff]  ;;  %v10636_v29 = vld [vmem:[%s10538_s22 + $0xa1] sm:$0xff] }
  0x17   : > { %8498 = vmatprep.mubr.msk.f32.mxu0 %vm452_vm0, %v10555_v13  ;;  %v10643_v30 = vld [vmem:[%s10538_s22 + $0xa9] sm:$0xff]  ;;  %v10646_v31 = vld [vmem:[%s10538_s22 + $0xb1] sm:$0xff]  ;;  %v10653_v32 = vld [vmem:[%s10538_s22 + $0xb9] sm:$0xff] }
  0x18   : > { %v10656_v33 = vld [vmem:[%s10538_s22 + $0xc1] sm:$0xff]  ;;  %v10663_v34 = vld [vmem:[%s10538_s22 + $0xc9] sm:$0xff]  ;;  %v10666_v35 = vld [vmem:[%s10538_s22 + $0xd1] sm:$0xff] }
  0x19   : > { %v10673_v36 = vld [vmem:[%s10538_s22 + $0xd9] sm:$0xff]  ;;  %v10676_v37 = vld [vmem:[%s10538_s22 + $0xe1] sm:$0xff]  ;;  %v448_v38 = vld [vmem:[%s10538_s22 + $0xe9] sm:$0x7f] }
  0x1a   : > { %8499 = vmatmul.mubr.msk.f32.gmra.mrb[4].mxu0 %vm452_vm0, %v10563_v14  ;;  %v387_v39 = vld [vmem:[%s10538_s22] sm:$0xff]  ;;  %v388_v42 = vld [vmem:[%s10538_s22 + $0x8] sm:$0xff]  ;;  %v389_v43 = vld [vmem:[%s10538_s22 + $0x10] sm:$0xff] }
  0x1b   : > { %8501 = vmatprep.mubr.msk.f32.mxu0 %vm452_vm0, %v10566_v15  ;;  %v390_v45 = vld [vmem:[%s10538_s22 + $0x18] sm:$0xff]  ;;  %v391_v46 = vld [vmem:[%s10538_s22 + $0x20] sm:$0xff]  ;;  %v392_v47 = vld [vmem:[%s10538_s22 + $0x28] sm:$0xff] }
  0x1c   : > { %v393_v48 = vld [vmem:[%s10538_s22 + $0x30] sm:$0xff]  ;;  %v394_v49 = vld [vmem:[%s10538_s22 + $0x38] sm:$0xff]  ;;  %v395_v50 = vld [vmem:[%s10538_s22 + $0x40] sm:$0xff] }
  0x1d   : > { %v396_v51 = vld [vmem:[%s10538_s22 + $0x48] sm:$0xff]  ;;  %v397_v52 = vld [vmem:[%s10538_s22 + $0x50] sm:$0xff]  ;;  %v398_v53 = vld [vmem:[%s10538_s22 + $0x58] sm:$0xff] }
  0x1e   : > { %8502 = vmatmul.mubr.msk.f32.gmra.mrb[6].mxu0 %vm452_vm0, %v10573_v16  ;;  %v399_v54 = vld [vmem:[%s10538_s22 + $0x60] sm:$0xff]  ;;  %v400_v55 = vld [vmem:[%s10538_s22 + $0x68] sm:$0xff]  ;;  %v401_v56 = vld [vmem:[%s10538_s22 + $0x70] sm:$0xff] }
  0x1f   : > { %8504 = vmatprep.mubr.msk.f32.mxu0 %vm452_vm0, %v10576_v17  ;;  %v402_v57 = vld [vmem:[%s10538_s22 + $0x78] sm:$0xff]  ;;  %v403_v58 = vld [vmem:[%s10538_s22 + $0x80] sm:$0xff]  ;;  %v404_v59 = vld [vmem:[%s10538_s22 + $0x88] sm:$0xff] }
  0x20   : > { %v405_v60 = vld [vmem:[%s10538_s22 + $0x90] sm:$0xff]  ;;  %v406_v61 = vld [vmem:[%s10538_s22 + $0x98] sm:$0xff]  ;;  %v407_v62 = vld [vmem:[%s10538_s22 + $0xa0] sm:$0xff] }
  0x21   : > { %v408_v63 = vld [vmem:[%s10538_s22 + $0xa8] sm:$0xff]  ;;  %v409_v0 = vld [vmem:[%s10538_s22 + $0xb0] sm:$0xff]  ;;  %v410_v1 = vld [vmem:[%s10538_s22 + $0xb8] sm:$0xff] }
  0x22   : > { %8505 = vmatmul.mubr.msk.f32.gmra.mrb[8].mxu0 %vm452_vm0, %v10583_v18  ;;  %v411_v2 = vld [vmem:[%s10538_s22 + $0xc0] sm:$0xff]  ;;  %v412_v3 = vld [vmem:[%s10538_s22 + $0xc8] sm:$0xff]  ;;  %v413_v4 = vld [vmem:[%s10538_s22 + $0xd0] sm:$0xff] }
  0x23   : > { %8507 = vmatprep.mubr.msk.f32.mxu0 %vm452_vm0, %v10586_v19  ;;  %v414_v5 = vld [vmem:[%s10538_s22 + $0xd8] sm:$0xff]  ;;  %v415_v6 = vld [vmem:[%s10538_s22 + $0xe0] sm:$0xff]  ;;  %v416_v7 = vld [vmem:[%s10538_s22 + $0xe8] sm:$0x7f] }
  0x24   : > { %v1090_v8 = vld [vmem:[%s10538_s22 + $0xe8] sm:$0xff]  ;;  %v1091_v9 = vld [vmem:[%s10538_s22 + $0xf0] sm:$0xff] }
  0x26   : > { %8508 = vmatmul.mubr.msk.f32.gmra.mrb[10].mxu0 %vm452_vm0, %v10593_v20 }
  0x27   : > { %8510 = vmatprep.mubr.msk.f32.mxu0 %vm452_vm0, %v10596_v21 }
  0x2a   : > { %8511 = vmatmul.mubr.msk.f32.gmra.mrb[12].mxu0 %vm452_vm0, %v10603_v22 }
  0x2b   : > { %8513 = vmatprep.mubr.msk.f32.mxu0 %vm452_vm0, %v10606_v23 }
  0x2e   : > { %8514 = vmatmul.mubr.msk.f32.gmra.mrb[14].mxu0 %vm452_vm0, %v10613_v24 }
  0x2f   : > { %8516 = vmatprep.mubr.msk.f32.mxu0 %vm452_vm0, %v10616_v25 }
  0x32   : > { %8517 = vmatmul.mubr.msk.f32.gmra.mrb[16].mxu0 %vm452_vm0, %v10623_v26 }
  0x33   : > { %8519 = vmatprep.mubr.msk.f32.mxu0 %vm452_vm0, %v10626_v27 }
  0x36   : > { %8520 = vmatmul.mubr.msk.f32.gmra.mrb[18].mxu0 %vm452_vm0, %v10633_v28 }
  0x37   : > { %8522 = vmatprep.mubr.msk.f32.mxu0 %vm452_vm0, %v10636_v29 }
  0x3a   : > { %8523 = vmatmul.mubr.msk.f32.gmra.mrb[20].mxu0 %vm452_vm0, %v10643_v30 }
  0x3b   : > { %8525 = vmatprep.mubr.msk.f32.mxu0 %vm452_vm0, %v10646_v31 }
  0x3e   : > { %8526 = vmatmul.mubr.msk.f32.gmra.mrb[22].mxu0 %vm452_vm0, %v10653_v32 }
  0x3f   : > { %8528 = vmatprep.mubr.msk.f32.mxu0 %vm452_vm0, %v10656_v33 }
  0x42   : > { %8529 = vmatmul.mubr.msk.f32.gmra.mrb[24].mxu0 %vm452_vm0, %v10663_v34 }
  0x43   : > { %8531 = vmatprep.mubr.msk.f32.mxu0 %vm452_vm0, %v10666_v35 }
  0x46   : > { %8532 = vmatmul.mubr.msk.f32.gmra.mrb[26].mxu0 %vm452_vm0, %v10673_v36 }
  0x47   : > { %8534 = vmatprep.mubr.msk.f32.mxu0 %vm452_vm0, %v10676_v37 }
  0x4a   : > { %8535 = vmatmul.mubr.msk.f32.gmra.mrb[28].mxu0 %vm452_vm0, %v448_v38 }
  0x4b   : > { %8541 = vmatprep.mubr.msk.f32.mxu0 %vm452_vm0, %v387_v39 }
  0x4e   : > { %8542 = vmatmul.mubr.msk.f32.vlgmr.msra.gmra.mrb[0].mxu0 %vm452_vm0, %v388_v42 }
  0x4f   : > { %9721 = vmatpush3.bf16.msra.mxu0 %v10545_v11  ;;  %8544 = vmatprep.mubr.msk.f32.mxu0 %vm452_vm0, %v389_v43  ;;  %v1092_v11 = vld [vmem:[%s10538_s22 + $0xf8] sm:$0x7f] }
  0x50   : > { %9723 = vmatprep.subr.bf16.mxu0 %v9722_v44 }
  0x52   : > { %8545 = vmatmul.mubr.msk.f32.gmra.mrb[2].mxu0 %vm452_vm0, %v390_v45 }
  0x53   : > { %8547 = vmatprep.mubr.msk.f32.mxu0 %vm452_vm0, %v391_v46 }
  0x56   : > { %8548 = vmatmul.mubr.msk.f32.gmra.mrb[4].mxu0 %vm452_vm0, %v392_v47 }
  0x57   : > { %8550 = vmatprep.mubr.msk.f32.mxu0 %vm452_vm0, %v393_v48 }
  0x5a   : > { %8551 = vmatmul.mubr.msk.f32.gmra.mrb[6].mxu0 %vm452_vm0, %v394_v49 }
  0x5b   : > { %8553 = vmatprep.mubr.msk.f32.mxu0 %vm452_vm0, %v395_v50 }
  0x5e   : > { %8554 = vmatmul.mubr.msk.f32.gmra.mrb[8].mxu0 %vm452_vm0, %v396_v51 }
  0x5f   : > { %8556 = vmatprep.mubr.msk.f32.mxu0 %vm452_vm0, %v397_v52 }
  0x62   : > { %8557 = vmatmul.mubr.msk.f32.gmra.mrb[10].mxu0 %vm452_vm0, %v398_v53 }
  0x63   : > { %8559 = vmatprep.mubr.msk.f32.mxu0 %vm452_vm0, %v399_v54 }
  0x66   : > { %8560 = vmatmul.mubr.msk.f32.gmra.mrb[12].mxu0 %vm452_vm0, %v400_v55 }
  0x67   : > { %8562 = vmatprep.mubr.msk.f32.mxu0 %vm452_vm0, %v401_v56 }
  0x6a   : > { %8563 = vmatmul.mubr.msk.f32.gmra.mrb[14].mxu0 %vm452_vm0, %v402_v57 }
  0x6b   : > { %8565 = vmatprep.mubr.msk.f32.mxu0 %vm452_vm0, %v403_v58 }
  0x6e   : > { %8566 = vmatmul.mubr.msk.f32.gmra.mrb[16].mxu0 %vm452_vm0, %v404_v59 }
  0x6f   : > { %8568 = vmatprep.mubr.msk.f32.mxu0 %vm452_vm0, %v405_v60 }
  0x72   : > { %8569 = vmatmul.mubr.msk.f32.gmra.mrb[18].mxu0 %vm452_vm0, %v406_v61 }
  0x73   : > { %8571 = vmatprep.mubr.msk.f32.mxu0 %vm452_vm0, %v407_v62 }
  0x76   : > { %8572 = vmatmul.mubr.msk.f32.gmra.mrb[20].mxu0 %vm452_vm0, %v408_v63 }
  0x77   : > { %8574 = vmatprep.mubr.msk.f32.mxu0 %vm452_vm0, %v409_v0 }
  0x7a   : > { %8575 = vmatmul.mubr.msk.f32.gmra.mrb[22].mxu0 %vm452_vm0, %v410_v1 }
  0x7b   : > { %8577 = vmatprep.mubr.msk.f32.mxu0 %vm452_vm0, %v411_v2 }
  0x7e   : > { %8578 = vmatmul.mubr.msk.f32.gmra.mrb[24].mxu0 %vm452_vm0, %v412_v3 }
  0x7f   : > { %8580 = vmatprep.mubr.msk.f32.mxu0 %vm452_vm0, %v413_v4 }
  0x82   : > { %8581 = vmatmul.mubr.msk.f32.gmra.mrb[26].mxu0 %vm452_vm0, %v414_v5 }
  0x83   : > { %8583 = vmatprep.mubr.msk.f32.mxu0 %vm452_vm0, %v415_v6 }
  0x86   : > { %8584 = vmatmul.mubr.msk.f32.gmra.mrb[28].mxu0 %vm452_vm0, %v416_v7 }
  0x87   : > { %8590 = vmatprep.mubr.msk.f32.mxu0 %vm452_vm0, %v389_v43 }
  0x8a   : > { %8591 = vmatmul.mubr.msk.f32.vlgmr.msra.gmra.mrb[0].mxu0 %vm452_vm0, %v390_v45 }
  0x8b   : > { %9725 = vmatpush3.bf16.msra.mxu0 %v9722_v44  ;;  %8593 = vmatprep.mubr.msk.f32.mxu0 %vm452_vm0, %v391_v46 }
  0x8e   : > { %8594 = vmatmul.mubr.msk.f32.gmra.mrb[2].mxu0 %vm452_vm0, %v392_v47 }
  0x8f   : > { %8596 = vmatprep.mubr.msk.f32.mxu0 %vm452_vm0, %v393_v48 }
  0x92   : > { %8597 = vmatmul.mubr.msk.f32.gmra.mrb[4].mxu0 %vm452_vm0, %v394_v49 }
  0x93   : > { %8599 = vmatprep.mubr.msk.f32.mxu0 %vm452_vm0, %v395_v50 }
  0x96   : > { %8600 = vmatmul.mubr.msk.f32.gmra.mrb[6].mxu0 %vm452_vm0, %v396_v51 }
  0x97   : > { %8602 = vmatprep.mubr.msk.f32.mxu0 %vm452_vm0, %v397_v52 }
  0x9a   : > { %8603 = vmatmul.mubr.msk.f32.gmra.mrb[8].mxu0 %vm452_vm0, %v398_v53 }
  0x9b   : > { %8605 = vmatprep.mubr.msk.f32.mxu0 %vm452_vm0, %v399_v54 }
  0x9e   : > { %8606 = vmatmul.mubr.msk.f32.gmra.mrb[10].mxu0 %vm452_vm0, %v400_v55 }
  0x9f   : > { %8608 = vmatprep.mubr.msk.f32.mxu0 %vm452_vm0, %v401_v56 }
  0xa2   : > { %8609 = vmatmul.mubr.msk.f32.gmra.mrb[12].mxu0 %vm452_vm0, %v402_v57 }
  0xa3   : > { %8611 = vmatprep.mubr.msk.f32.mxu0 %vm452_vm0, %v403_v58 }
  0xa6   : > { %8612 = vmatmul.mubr.msk.f32.gmra.mrb[14].mxu0 %vm452_vm0, %v404_v59 }
  0xa7   : > { %8614 = vmatprep.mubr.msk.f32.mxu0 %vm452_vm0, %v405_v60 }
  0xaa   : > { %8615 = vmatmul.mubr.msk.f32.gmra.mrb[16].mxu0 %vm452_vm0, %v406_v61 }
  0xab   : > { %8617 = vmatprep.mubr.msk.f32.mxu0 %vm452_vm0, %v407_v62 }
  0xae   : > { %8618 = vmatmul.mubr.msk.f32.gmra.mrb[18].mxu0 %vm452_vm0, %v408_v63 }
  0xaf   : > { %8620 = vmatprep.mubr.msk.f32.mxu0 %vm452_vm0, %v409_v0 }
  0xb2   : > { %8621 = vmatmul.mubr.msk.f32.gmra.mrb[20].mxu0 %vm452_vm0, %v410_v1 }
  0xb3   : > { %8623 = vmatprep.mubr.msk.f32.mxu0 %vm452_vm0, %v411_v2 }
  0xb6   : > { %8624 = vmatmul.mubr.msk.f32.gmra.mrb[22].mxu0 %vm452_vm0, %v412_v3 }
  0xb7   : > { %8626 = vmatprep.mubr.msk.f32.mxu0 %vm452_vm0, %v413_v4 }
  0xba   : > { %8627 = vmatmul.mubr.msk.f32.gmra.mrb[24].mxu0 %vm452_vm0, %v414_v5 }
  0xbb   : > { %8629 = vmatprep.mubr.msk.f32.mxu0 %vm452_vm0, %v415_v6 }
  0xbe   : > { %8630 = vmatmul.mubr.msk.f32.gmra.mrb[26].mxu0 %vm452_vm0, %v1090_v8 }
  0xbf   : > { %8632 = vmatprep.mubr.msk.f32.mxu0 %vm452_vm0, %v1091_v9 }
  0xc2   : > { %8633 = vmatmul.mubr.msk.f32.gmra.mrb[28].mxu0 %vm452_vm0, %v1092_v11 }
  0xc3   : > { %8639 = vmatprep.mubr.msk.f32.mxu0 %vm452_vm0, %v10543_v10  ;;  %v1458_v10 = vld [vmem:[%s10538_s22 + $0xe9] sm:$0xff] }
  0xc6   : > { %8640 = vmatmul.mubr.msk.f32.vlgmr.msra.gmra.mrb[0].mxu0 %vm452_vm0, %v10552_v12  ;;  %v1459_v12 = vld [vmem:[%s10538_s22 + $0xf1] sm:$0xff] }
  0xc7   : > { %8642 = vmatprep.mubr.msk.f32.mxu0 %vm452_vm0, %v10555_v13  ;;  %v1460_v13 = vld [vmem:[%s10538_s22 + $0xf9] sm:$0x7f] }
  0xca   : > { %8643 = vmatmul.mubr.msk.f32.gmra.mrb[2].mxu0 %vm452_vm0, %v10563_v14  ;;  %v10458_v14 = vmov 0.0  }
  0xcb   : > { %8645 = vmatprep.mubr.msk.f32.mxu0 %vm452_vm0, %v10566_v15  ;;  %8684 = vmatprep.subr.mxu0 %v10458_v14  ;;  %v7596_v15 = vld [vmem:[%s12432_s3 + $0x8] sm:$0xff] }
  0xcc   : > { %9915 = vmatprep.subr.mxu1 %v10458_v14  ;;  %8685 = vmatpush3.msra.mxu0 %v7596_v15 }
  0xcd   : > { %9916 = vmatpush3.msra.mxu1 %v7596_v15  ;;  %8701 = vmatprep.mubr.msk.f32.mxu1 %vm10459_vm1, %v10458_v14 }
  0xce   : > { %8646 = vmatmul.mubr.msk.f32.gmra.mrb[4].mxu0 %vm452_vm0, %v10573_v16  ;;  %8725 = vmatprep.subr.mxu1 %v10458_v14  ;;  %v10857_v16 = vld [vmem:[%s12431_s2] ss:$0 sm:$0xff] }
  0xcf   : > { %8648 = vmatprep.mubr.msk.f32.mxu0 %vm452_vm0, %v10576_v17 }
  0xd2   : > { %8649 = vmatmul.mubr.msk.f32.gmra.mrb[6].mxu0 %vm452_vm0, %v10583_v18 }
  0xd3   : > { %8651 = vmatprep.mubr.msk.f32.mxu0 %vm452_vm0, %v10586_v19 }
  0xd6   : > { %8652 = vmatmul.mubr.msk.f32.gmra.mrb[8].mxu0 %vm452_vm0, %v10593_v20 }
  0xd7   : > { %8654 = vmatprep.mubr.msk.f32.mxu0 %vm452_vm0, %v10596_v21 }
  0xda   : > { %8655 = vmatmul.mubr.msk.f32.gmra.mrb[10].mxu0 %vm452_vm0, %v10603_v22 }
  0xdb   : > { %8657 = vmatprep.mubr.msk.f32.mxu0 %vm452_vm0, %v10606_v23 }
  0xde   : > { %8658 = vmatmul.mubr.msk.f32.gmra.mrb[12].mxu0 %vm452_vm0, %v10613_v24 }
  0xdf   : > { %8660 = vmatprep.mubr.msk.f32.mxu0 %vm452_vm0, %v10616_v25 }
  0xe2   : > { %8661 = vmatmul.mubr.msk.f32.gmra.mrb[14].mxu0 %vm452_vm0, %v10623_v26 }
  0xe3   : > { %8663 = vmatprep.mubr.msk.f32.mxu0 %vm452_vm0, %v10626_v27 }
  0xe6   : > { %8664 = vmatmul.mubr.msk.f32.gmra.mrb[16].mxu0 %vm452_vm0, %v10633_v28 }
  0xe7   : > { %8666 = vmatprep.mubr.msk.f32.mxu0 %vm452_vm0, %v10636_v29 }
  0xea   : > { %8667 = vmatmul.mubr.msk.f32.gmra.mrb[18].mxu0 %vm452_vm0, %v10643_v30 }
  0xeb   : > { %8669 = vmatprep.mubr.msk.f32.mxu0 %vm452_vm0, %v10646_v31 }
  0xee   : > { %8670 = vmatmul.mubr.msk.f32.gmra.mrb[20].mxu0 %vm452_vm0, %v10653_v32 }
  0xef   : > { %8672 = vmatprep.mubr.msk.f32.mxu0 %vm452_vm0, %v10656_v33 }
  0xf2   : > { %8673 = vmatmul.mubr.msk.f32.gmra.mrb[22].mxu0 %vm452_vm0, %v10663_v34 }
  0xf3   : > { %8675 = vmatprep.mubr.msk.f32.mxu0 %vm452_vm0, %v10666_v35 }
  0xf6   : > { %8676 = vmatmul.mubr.msk.f32.gmra.mrb[24].mxu0 %vm452_vm0, %v10673_v36 }
  0xf7   : > { %8678 = vmatprep.mubr.msk.f32.mxu0 %vm452_vm0, %v10676_v37 }
  0xfa   : > { %8679 = vmatmul.mubr.msk.f32.gmra.mrb[26].mxu0 %vm452_vm0, %v1458_v10 }
  0xfb   : > { %8681 = vmatprep.mubr.msk.f32.mxu0 %vm452_vm0, %v1459_v12 }
  0xfe   : > { %8682 = vmatmul.mubr.msk.f32.gmra.mrb[28].mxu0 %vm452_vm0, %v1460_v13 }
  0xff   : > { %8686 = vmatprep.mubr.msk.f32.mxu0 %vm10459_vm1, %v10458_v14 }
 0x199   : > { %v8641_v17 = vpop.f32.mrb[0].mxu0 }
 0x19a   : > { %v1807_v18 = vadd.f32 %v8641_v17, %v10857_v16  ;;  %v1620_v19 = vpop.f32.mrb[1].mxu0 }
 0x19b   : > { %v1806_v20 = vadd.f32 %v10857_v16, %v1620_v19 }
 0x19c   : > { %vm1837_vm2 = vcmp.ge.f32.partialorder %v1807_v18, 0.0  ;;  %v1867_v21 = vmul.f32 0.01, %v1807_v18 }
 0x19d   : > { %vm1836_vm4 = vcmp.ge.f32.partialorder %v1806_v20, 0.0  ;;  %v1866_v22 = vmul.f32 0.01, %v1806_v20  ;;  %v8644_v23 = vpop.f32.mrb[2].mxu0 }
 0x19e   : > { %v1897_v24 = vsel %vm1837_vm2, %v1807_v18, %v1867_v21  ;;  %v1809_v25 = vadd.f32 %v8644_v23, %v10857_v16  ;;  %v1630_v26 = vpop.f32.mrb[3].mxu0 }
 0x19f   : > { %1928 = vst.msk [vmem:[#allocation2 + $0x8] sm:$0xff] %vm1926_vm3, %v1897_v24  ;;  %v1896_v27 = vsel %vm1836_vm4, %v1806_v20, %v1866_v22  ;;  %v1808_v28 = vadd.f32 %v10857_v16, %v1630_v26  ;;  %v1983_v26 = vld [vmem:[%s12432_s3] sm:$0xff] }
 0x1a0   : > { %1927 = vst.msk [vmem:[#allocation2] sm:$0xff] %vm1926_vm3, %v1896_v27  ;;  %vm1839_vm5 = vcmp.ge.f32.partialorder %v1809_v25, 0.0  ;;  %v1869_v29 = vmul.f32 0.01, %v1809_v25 }
 0x1a1   : > { %vm1838_vm6 = vcmp.ge.f32.partialorder %v1808_v28, 0.0  ;;  %v1868_v30 = vmul.f32 0.01, %v1808_v28  ;;  %v8647_v31 = vpop.f32.mrb[4].mxu0 }
 0x1a2   : > { %v1899_v32 = vsel %vm1839_vm5, %v1809_v25, %v1869_v29  ;;  %v1811_v33 = vadd.f32 %v8647_v31, %v10857_v16  ;;  %v1640_v34 = vpop.f32.mrb[5].mxu0 }
 0x1a3   : > { %1930 = vst.msk [vmem:[#allocation2 + $0x18] sm:$0xff] %vm1926_vm3, %v1899_v32  ;;  %v1898_v35 = vsel %vm1838_vm6, %v1808_v28, %v1868_v30  ;;  %v1810_v36 = vadd.f32 %v10857_v16, %v1640_v34 }
 0x1a4   : > { %1929 = vst.msk [vmem:[#allocation2 + $0x10] sm:$0xff] %vm1926_vm3, %v1898_v35  ;;  %vm1841_vm7 = vcmp.ge.f32.partialorder %v1811_v33, 0.0  ;;  %v1871_v37 = vmul.f32 0.01, %v1811_v33 }
 0x1a5   : > { %vm1840_vm8 = vcmp.ge.f32.partialorder %v1810_v36, 0.0  ;;  %v1870_v38 = vmul.f32 0.01, %v1810_v36  ;;  %v8650_v39 = vpop.f32.mrb[6].mxu0 }
 0x1a6   : > { %v1901_v40 = vsel %vm1841_vm7, %v1811_v33, %v1871_v37  ;;  %v1813_v41 = vadd.f32 %v8650_v39, %v10857_v16  ;;  %v1650_v42 = vpop.f32.mrb[7].mxu0 }
 0x1a7   : > { %1932 = vst.msk [vmem:[#allocation2 + $0x28] sm:$0xff] %vm1926_vm3, %v1901_v40  ;;  %v1900_v43 = vsel %vm1840_vm8, %v1810_v36, %v1870_v38  ;;  %v1812_v44 = vadd.f32 %v10857_v16, %v1650_v42  ;;  %v1985_v45 = vld [vmem:[#allocation2 + $0x1] ss:$2 sm:$0xff] }
 0x1a8   : > { %1931 = vst.msk [vmem:[#allocation2 + $0x20] sm:$0xff] %vm1926_vm3, %v1900_v43  ;;  %vm1843_vm9 = vcmp.ge.f32.partialorder %v1813_v41, 0.0  ;;  %v1873_v46 = vmul.f32 0.01, %v1813_v41  ;;  %8687 = vmatmul.mubr.msk.f32.vlgmr.msra.gmra.mrb[30].mxu0 %vm1926_vm3, %v1985_v45 }
 0x1a9   : > { %vm1842_vm10 = vcmp.ge.f32.partialorder %v1812_v44, 0.0  ;;  %v1872_v47 = vmul.f32 0.01, %v1812_v44  ;;  %v8653_v48 = vpop.f32.mrb[8].mxu0  ;;  %8689 = vmatprep.mubr.msk.f32.mxu0 %vm10459_vm1, %v10458_v14 }
 0x1aa   : > { %v1903_v49 = vsel %vm1843_vm9, %v1813_v41, %v1873_v46  ;;  %v1815_v50 = vadd.f32 %v8653_v48, %v10857_v16  ;;  %v1660_v51 = vpop.f32.mrb[9].mxu0 }
 0x1ab   : > { %1934 = vst.msk [vmem:[#allocation2 + $0x38] sm:$0xff] %vm1926_vm3, %v1903_v49  ;;  %v1902_v52 = vsel %vm1842_vm10, %v1812_v44, %v1872_v47  ;;  %v1814_v53 = vadd.f32 %v10857_v16, %v1660_v51  ;;  %v1987_v54 = vld [vmem:[#allocation2 + $0x11] ss:$2 sm:$0xff] }
 0x1ac   : > { %1933 = vst.msk [vmem:[#allocation2 + $0x30] sm:$0xff] %vm1926_vm3, %v1902_v52  ;;  %vm1845_vm11 = vcmp.ge.f32.partialorder %v1815_v50, 0.0  ;;  %v1875_v55 = vmul.f32 0.01, %v1815_v50  ;;  %8690 = vmatmul.mubr.msk.f32.gmra.mrb[32].mxu0 %vm1926_vm3, %v1987_v54 }
 0x1ad   : > { %vm1844_vm12 = vcmp.ge.f32.partialorder %v1814_v53, 0.0  ;;  %v1874_v56 = vmul.f32 0.01, %v1814_v53  ;;  %v8656_v57 = vpop.f32.mrb[10].mxu0  ;;  %8692 = vmatprep.mubr.msk.f32.mxu0 %vm10459_vm1, %v10458_v14 }
 0x1ae   : > { %v1905_v58 = vsel %vm1845_vm11, %v1815_v50, %v1875_v55  ;;  %v1817_v59 = vadd.f32 %v8656_v57, %v10857_v16  ;;  %v1670_v60 = vpop.f32.mrb[11].mxu0 }
 0x1af   : > { %1936 = vst.msk [vmem:[#allocation2 + $0x48] sm:$0xff] %vm1926_vm3, %v1905_v58  ;;  %v1904_v61 = vsel %vm1844_vm12, %v1814_v53, %v1874_v56  ;;  %v1816_v62 = vadd.f32 %v10857_v16, %v1670_v60  ;;  %v1989_v63 = vld [vmem:[#allocation2 + $0x21] ss:$2 sm:$0xff] }
 0x1b0   : > { %1935 = vst.msk [vmem:[#allocation2 + $0x40] sm:$0xff] %vm1926_vm3, %v1904_v61  ;;  %vm1847_vm13 = vcmp.ge.f32.partialorder %v1817_v59, 0.0  ;;  %v1877_v0 = vmul.f32 0.01, %v1817_v59  ;;  %8693 = vmatmul.mubr.msk.f32.gmra.mrb[34].mxu0 %vm1926_vm3, %v1989_v63 }
 0x1b1   : > { %vm1846_vm14 = vcmp.ge.f32.partialorder %v1816_v62, 0.0  ;;  %v1876_v1 = vmul.f32 0.01, %v1816_v62  ;;  %v8659_v2 = vpop.f32.mrb[12].mxu0  ;;  %8695 = vmatprep.mubr.msk.f32.mxu0 %vm10459_vm1, %v10458_v14 }
 0x1b2   : > { %v1907_v3 = vsel %vm1847_vm13, %v1817_v59, %v1877_v0  ;;  %v1819_v4 = vadd.f32 %v8659_v2, %v10857_v16  ;;  %v1680_v5 = vpop.f32.mrb[13].mxu0 }
 0x1b3   : > { %1938 = vst.msk [vmem:[#allocation2 + $0x58] sm:$0xff] %vm1926_vm3, %v1907_v3  ;;  %v1906_v6 = vsel %vm1846_vm14, %v1816_v62, %v1876_v1  ;;  %v1818_v7 = vadd.f32 %v10857_v16, %v1680_v5  ;;  %v1991_v8 = vld [vmem:[#allocation2 + $0x31] ss:$2 sm:$0xff] }
 0x1b4   : > { %1937 = vst.msk [vmem:[#allocation2 + $0x50] sm:$0xff] %vm1926_vm3, %v1906_v6  ;;  %vm1849_vm15 = vcmp.ge.f32.partialorder %v1819_v4, 0.0  ;;  %v1879_v9 = vmul.f32 0.01, %v1819_v4  ;;  %8696 = vmatmul.mubr.msk.f32.gmra.mrb[36].mxu0 %vm1926_vm3, %v1991_v8 }
 0x1b5   : > { %vm1848_vm2 = vcmp.ge.f32.partialorder %v1818_v7, 0.0  ;;  %v1878_v11 = vmul.f32 0.01, %v1818_v7  ;;  %v8662_v10 = vpop.f32.mrb[14].mxu0  ;;  %8698 = vmatprep.mubr.msk.f32.mxu0 %vm10459_vm1, %v10458_v14 }
 0x1b6   : > { %v1909_v12 = vsel %vm1849_vm15, %v1819_v4, %v1879_v9  ;;  %v1821_v13 = vadd.f32 %v8662_v10, %v10857_v16  ;;  %v1690_v15 = vpop.f32.mrb[15].mxu0 }
 0x1b7   : > { %1940 = vst.msk [vmem:[#allocation2 + $0x68] sm:$0xff] %vm1926_vm3, %v1909_v12  ;;  %v1908_v17 = vsel %vm1848_vm2, %v1818_v7, %v1878_v11  ;;  %v1820_v18 = vadd.f32 %v10857_v16, %v1690_v15  ;;  %v1993_v19 = vld [vmem:[#allocation2 + $0x41] ss:$2 sm:$0xff] }
 0x1b8   : > { %1939 = vst.msk [vmem:[#allocation2 + $0x60] sm:$0xff] %vm1926_vm3, %v1908_v17  ;;  %vm1851_vm4 = vcmp.ge.f32.partialorder %v1821_v13, 0.0  ;;  %v1881_v20 = vmul.f32 0.01, %v1821_v13  ;;  %8699 = vmatmul.mubr.msk.f32.gmra.mrb[38].mxu0 %vm1926_vm3, %v1993_v19 }
 0x1b9   : > { %vm1850_vm5 = vcmp.ge.f32.partialorder %v1820_v18, 0.0  ;;  %v1880_v21 = vmul.f32 0.01, %v1820_v18  ;;  %v8665_v22 = vpop.f32.mrb[16].mxu0  ;;  %9057 = vmatprep.mubr.msk.f32.mxu0 %vm10459_vm1, %v10458_v14 }
 0x1ba   : > { %v1911_v23 = vsel %vm1851_vm4, %v1821_v13, %v1881_v20  ;;  %v1823_v24 = vadd.f32 %v8665_v22, %v10857_v16  ;;  %v1700_v25 = vpop.f32.mrb[17].mxu0 }
 0x1bb   : > { %1942 = vst.msk [vmem:[#allocation2 + $0x78] sm:$0xff] %vm1926_vm3, %v1911_v23  ;;  %v1910_v27 = vsel %vm1850_vm5, %v1820_v18, %v1880_v21  ;;  %v1822_v28 = vadd.f32 %v10857_v16, %v1700_v25  ;;  %v1995_v29 = vld [vmem:[#allocation2 + $0x51] ss:$2 sm:$0xff] }
 0x1bc   : > { %1941 = vst.msk [vmem:[#allocation2 + $0x70] sm:$0xff] %vm1926_vm3, %v1910_v27  ;;  %vm1853_vm6 = vcmp.ge.f32.partialorder %v1823_v24, 0.0  ;;  %v1883_v30 = vmul.f32 0.01, %v1823_v24  ;;  %8702 = vmatmul.mubr.msk.f32.vlgmr.msra.gmra.mrb[0].mxu1 %vm1926_vm3, %v1995_v29  ;;  %v1958_v27 = vld [vmem:[#allocation2] ss:$2 sm:$0xff] }
 0x1bd   : > { %vm1852_vm7 = vcmp.ge.f32.partialorder %v1822_v28, 0.0  ;;  %v1882_v31 = vmul.f32 0.01, %v1822_v28  ;;  %8726 = vmatpush3.msra.mxu1 %v1983_v26  ;;  %v8668_v32 = vpop.f32.mrb[18].mxu0  ;;  %8704 = vmatprep.mubr.msk.f32.mxu1 %vm10459_vm1, %v10458_v14  ;;  %v1962_v29 = vld [vmem:[#allocation2 + $0x20] ss:$2 sm:$0xff] }
 0x1be   : > { %v1913_v33 = vsel %vm1853_vm6, %v1823_v24, %v1883_v30  ;;  %v1825_v34 = vadd.f32 %v8668_v32, %v10857_v16  ;;  %v1710_v35 = vpop.f32.mrb[19].mxu0  ;;  %8766 = vmatprep.subr.mxu1 %v10458_v14  ;;  %vm1956_vm6 = vcmask 63488   ;;  %v1964_v30 = vld [vmem:[#allocation2 + $0x30] ss:$2 sm:$0xff] }
 0x1bf   : > { %1944 = vst.msk [vmem:[#allocation2 + $0x88] sm:$0xff] %vm1926_vm3, %v1913_v33  ;;  %v1912_v36 = vsel %vm1852_vm7, %v1822_v28, %v1882_v31  ;;  %v1824_v37 = vadd.f32 %v10857_v16, %v1710_v35  ;;  %v1997_v38 = vld [vmem:[#allocation2 + $0x61] ss:$2 sm:$0xff]  ;;  %v1960_v28 = vld [vmem:[#allocation2 + $0x10] ss:$2 sm:$0xff] }
 0x1c0   : > { %1943 = vst.msk [vmem:[#allocation2 + $0x80] sm:$0xff] %vm1926_vm3, %v1912_v36  ;;  %vm1855_vm8 = vcmp.ge.f32.partialorder %v1825_v34, 0.0  ;;  %v1885_v39 = vmul.f32 0.01, %v1825_v34  ;;  %8705 = vmatmul.mubr.msk.f32.gmra.mrb[2].mxu1 %vm1926_vm3, %v1997_v38  ;;  %v1966_v31 = vld [vmem:[#allocation2 + $0x40] ss:$2 sm:$0xff] }
 0x1c1   : > { %vm1854_vm9 = vcmp.ge.f32.partialorder %v1824_v37, 0.0  ;;  %v1884_v40 = vmul.f32 0.01, %v1824_v37  ;;  %v8671_v41 = vpop.f32.mrb[20].mxu0  ;;  %8707 = vmatprep.mubr.msk.f32.mxu1 %vm10459_vm1, %v10458_v14  ;;  %v1968_v32 = vld [vmem:[#allocation2 + $0x50] ss:$2 sm:$0xff] }
 0x1c2   : > { %v1915_v42 = vsel %vm1855_vm8, %v1825_v34, %v1885_v39  ;;  %v1827_v43 = vadd.f32 %v8671_v41, %v10857_v16  ;;  %v1720_v44 = vpop.f32.mrb[21].mxu0  ;;  %v1970_v33 = vld [vmem:[#allocation2 + $0x60] ss:$2 sm:$0xff] }
 0x1c3   : > { %1946 = vst.msk [vmem:[#allocation2 + $0x98] sm:$0xff] %vm1926_vm3, %v1915_v42  ;;  %v1914_v45 = vsel %vm1854_vm9, %v1824_v37, %v1884_v40  ;;  %v1826_v46 = vadd.f32 %v10857_v16, %v1720_v44  ;;  %v1999_v47 = vld [vmem:[#allocation2 + $0x71] ss:$2 sm:$0xff]  ;;  %v1972_v34 = vld [vmem:[#allocation2 + $0x70] ss:$2 sm:$0xff] }
 0x1c4   : > { %1945 = vst.msk [vmem:[#allocation2 + $0x90] sm:$0xff] %vm1926_vm3, %v1914_v45  ;;  %vm1857_vm10 = vcmp.ge.f32.partialorder %v1827_v43, 0.0  ;;  %v1887_v48 = vmul.f32 0.01, %v1827_v43  ;;  %8708 = vmatmul.mubr.msk.f32.gmra.mrb[4].mxu1 %vm1926_vm3, %v1999_v47  ;;  %v7637_v40 = vld [vmem:[%s12432_s3 + $0x18] sm:$0xff] }
 0x1c5   : > { %vm1856_vm11 = vcmp.ge.f32.partialorder %v1826_v46, 0.0  ;;  %v1886_v49 = vmul.f32 0.01, %v1826_v46  ;;  %v8674_v50 = vpop.f32.mrb[22].mxu0  ;;  %8710 = vmatprep.mubr.msk.f32.mxu1 %vm10459_vm1, %v10458_v14  ;;  %v2351_v41 = vld [vmem:[#allocation2 + $0x2] ss:$2 sm:$0xff] }
 0x1c6   : > { %v1917_v51 = vsel %vm1857_vm10, %v1827_v43, %v1887_v48  ;;  %v1829_v52 = vadd.f32 %v8674_v50, %v10857_v16  ;;  %v1730_v53 = vpop.f32.mrb[23].mxu0  ;;  %v2353_v42 = vld [vmem:[#allocation2 + $0x12] ss:$2 sm:$0xff]  ;;  %v2355_v43 = vld [vmem:[#allocation2 + $0x22] ss:$2 sm:$0xff] }
 0x1c7   : > { %1948 = vst.msk [vmem:[#allocation2 + $0xa8] sm:$0xff] %vm1926_vm3, %v1917_v51  ;;  %v1916_v54 = vsel %vm1856_vm11, %v1826_v46, %v1886_v49  ;;  %v1828_v55 = vadd.f32 %v10857_v16, %v1730_v53  ;;  %v2001_v56 = vld [vmem:[#allocation2 + $0x81] ss:$2 sm:$0xff]  ;;  %v1974_v35 = vld [vmem:[#allocation2 + $0x80] ss:$2 sm:$0xff] }
 0x1c8   : > { %1947 = vst.msk [vmem:[#allocation2 + $0xa0] sm:$0xff] %vm1926_vm3, %v1916_v54  ;;  %vm1859_vm12 = vcmp.ge.f32.partialorder %v1829_v52, 0.0  ;;  %v1889_v57 = vmul.f32 0.01, %v1829_v52  ;;  %8711 = vmatmul.mubr.msk.f32.gmra.mrb[6].mxu1 %vm1926_vm3, %v2001_v56  ;;  %v2357_v44 = vld [vmem:[#allocation2 + $0x32] ss:$2 sm:$0xff] }
 0x1c9   : > { %vm1858_vm13 = vcmp.ge.f32.partialorder %v1828_v55, 0.0  ;;  %v1888_v58 = vmul.f32 0.01, %v1828_v55  ;;  %v8677_v59 = vpop.f32.mrb[24].mxu0  ;;  %8713 = vmatprep.mubr.msk.f32.mxu1 %vm10459_vm1, %v10458_v14  ;;  %v2359_v45 = vld [vmem:[#allocation2 + $0x42] ss:$2 sm:$0xff] }
 0x1ca   : > { %v1919_v60 = vsel %vm1859_vm12, %v1829_v52, %v1889_v57  ;;  %v1831_v61 = vadd.f32 %v8677_v59, %v10857_v16  ;;  %v1740_v62 = vpop.f32.mrb[25].mxu0  ;;  %v2361_v46 = vld [vmem:[#allocation2 + $0x52] ss:$2 sm:$0xff]  ;;  %v2363_v47 = vld [vmem:[#allocation2 + $0x62] ss:$2 sm:$0xff] }
 0x1cb   : > { %1950 = vst.msk [vmem:[#allocation2 + $0xb8] sm:$0xff] %vm1926_vm3, %v1919_v60  ;;  %v1918_v63 = vsel %vm1858_vm13, %v1828_v55, %v1888_v58  ;;  %v1830_v0 = vadd.f32 %v10857_v16, %v1740_v62  ;;  %v2003_v1 = vld [vmem:[#allocation2 + $0x91] ss:$2 sm:$0xff]  ;;  %v1976_v36 = vld [vmem:[#allocation2 + $0x90] ss:$2 sm:$0xff]  ;;  %v7651_v54 = vld [vmem:[%s12432_s3 + $0x20] sm:$0xff] }
 0x1cc   : > { %1949 = vst.msk [vmem:[#allocation2 + $0xb0] sm:$0xff] %vm1926_vm3, %v1918_v63  ;;  %vm1861_vm14 = vcmp.ge.f32.partialorder %v1831_v61, 0.0  ;;  %v1891_v2 = vmul.f32 0.01, %v1831_v61  ;;  %8714 = vmatmul.mubr.msk.f32.gmra.mrb[8].mxu1 %vm1926_vm3, %v2003_v1  ;;  %v2365_v48 = vld [vmem:[#allocation2 + $0x72] ss:$2 sm:$0xff] }
 0x1cd   : > { %vm1860_vm15 = vcmp.ge.f32.partialorder %v1830_v0, 0.0  ;;  %v1890_v3 = vmul.f32 0.01, %v1830_v0  ;;  %v8680_v4 = vpop.f32.mrb[26].mxu0  ;;  %8716 = vmatprep.mubr.msk.f32.mxu1 %vm10459_vm1, %v10458_v14  ;;  %v2367_v49 = vld [vmem:[#allocation2 + $0x82] ss:$2 sm:$0xff] }
 0x1ce   : > { %v1921_v5 = vsel %vm1861_vm14, %v1831_v61, %v1891_v2  ;;  %v1833_v6 = vadd.f32 %v8680_v4, %v10857_v16  ;;  %v1750_v7 = vpop.f32.mrb[27].mxu0  ;;  %v2560_v55 = vld [vmem:[#allocation2 + $0x10] ss:$2 sm:$0xff]  ;;  %v2561_v56 = vld [vmem:[#allocation2 + $0x20] ss:$2 sm:$0xff] }
 0x1cf   : > { %1952 = vst.msk [vmem:[#allocation2 + $0xc8] sm:$0xff] %vm1926_vm3, %v1921_v5  ;;  %v1920_v8 = vsel %vm1860_vm15, %v1830_v0, %v1890_v3  ;;  %v1832_v9 = vadd.f32 %v10857_v16, %v1750_v7  ;;  %v2005_v11 = vld [vmem:[#allocation2 + $0xa1] ss:$2 sm:$0xff]  ;;  %v1978_v37 = vld [vmem:[#allocation2 + $0xa0] ss:$2 sm:$0xff] }
 0x1d0   : > { %1951 = vst.msk [vmem:[#allocation2 + $0xc0] sm:$0xff] %vm1926_vm3, %v1920_v8  ;;  %vm1863_vm2 = vcmp.ge.f32.partialorder %v1833_v6, 0.0  ;;  %v1893_v10 = vmul.f32 0.01, %v1833_v6  ;;  %8717 = vmatmul.mubr.msk.f32.gmra.mrb[10].mxu1 %vm1926_vm3, %v2005_v11  ;;  %v2369_v50 = vld [vmem:[#allocation2 + $0x92] ss:$2 sm:$0xff] }
 0x1d1   : > { %vm1862_vm4 = vcmp.ge.f32.partialorder %v1832_v9, 0.0  ;;  %v1892_v12 = vmul.f32 0.01, %v1832_v9  ;;  %v8683_v13 = vpop.f32.mrb[28].mxu0  ;;  %8719 = vmatprep.mubr.msk.f32.mxu1 %vm10459_vm1, %v10458_v14  ;;  %v2562_v57 = vld [vmem:[#allocation2 + $0x30] ss:$2 sm:$0xff] }
 0x1d2   : > { %v1923_v15 = vsel %vm1863_vm2, %v1833_v6, %v1893_v10  ;;  %v1835_v17 = vadd.f32 %v8683_v13, %v10857_v16  ;;  %v1760_v18 = vpop.f32.mrb[29].mxu0  ;;  %v2563_v58 = vld [vmem:[#allocation2 + $0x40] ss:$2 sm:$0xff]  ;;  %v2564_v59 = vld [vmem:[#allocation2 + $0x50] ss:$2 sm:$0xff] }
 0x1d3   : > { %1954 = vst.msk [vmem:[#allocation2 + $0xd8] sm:$0xff] %vm1926_vm3, %v1923_v15  ;;  %v1922_v19 = vsel %vm1862_vm4, %v1832_v9, %v1892_v12  ;;  %v1834_v20 = vadd.f32 %v10857_v16, %v1760_v18  ;;  %v2007_v21 = vld [vmem:[#allocation2 + $0xb1] ss:$2 sm:$0xff]  ;;  %v1980_v38 = vld [vmem:[#allocation2 + $0xb0] ss:$2 sm:$0xff]  ;;  %v7665_v4 = vld [vmem:[%s12432_s3 + $0x28] sm:$0xff] }
 0x1d4   : > { %1953 = vst.msk [vmem:[#allocation2 + $0xd0] sm:$0xff] %vm1926_vm3, %v1922_v19  ;;  %vm1865_vm5 = vcmp.ge.f32.partialorder %v1835_v17, 0.0  ;;  %v1895_v22 = vmul.f32 0.01, %v1835_v17  ;;  %8720 = vmatmul.mubr.msk.f32.gmra.mrb[12].mxu1 %vm1926_vm3, %v2007_v21  ;;  %v7623_v16 = vld [vmem:[%s12432_s3 + $0x10] sm:$0xff] }
 0x1d5   : > { %vm1864_vm7 = vcmp.ge.f32.partialorder %v1834_v20, 0.0  ;;  %v1894_v23 = vmul.f32 0.01, %v1834_v20  ;;  %8722 = vmatprep.mubr.msk.f32.mxu1 %vm10459_vm1, %v10458_v14  ;;  %v2371_v51 = vld [vmem:[#allocation2 + $0xa2] ss:$2 sm:$0xff] }
 0x1d6   : > { %v1925_v24 = vsel %vm1865_vm5, %v1835_v17, %v1895_v22  ;;  %v2565_v60 = vld [vmem:[#allocation2 + $0x60] ss:$2 sm:$0xff]  ;;  %v2566_v61 = vld [vmem:[#allocation2 + $0x70] ss:$2 sm:$0xff]  ;;  %v2758_v5 = vld [vmem:[#allocation2 + $0x11] ss:$2 sm:$0xff] }
 0x1d7   : > { %1957 = vst.msk [vmem:[#allocation2 + $0xe8] sm:$0x7f] %vm1956_vm6, %v1925_v24  ;;  %v1924_v25 = vsel %vm1864_vm7, %v1834_v20, %v1894_v23  ;;  %v2009_v26 = vld [vmem:[#allocation2 + $0xc1] ss:$2 sm:$0x7f] }
 0x1d8   : > { %1955 = vst.msk [vmem:[#allocation2 + $0xe0] sm:$0xff] %vm1926_vm3, %v1924_v25  ;;  %8723 = vmatmul.mubr.msk.f32.gmra.mrb[14].mxu1 %vm1926_vm3, %v2009_v26  ;;  %v1982_v39 = vld [vmem:[#allocation2 + $0xc0] ss:$2 sm:$0x7f]  ;;  %v2568_v63 = vld [vmem:[#allocation2 + $0x90] ss:$2 sm:$0xff] }
 0x1d9   : > { %8727 = vmatprep.mubr.msk.f32.mxu1 %vm10459_vm1, %v10458_v14  ;;  %v2373_v52 = vld [vmem:[#allocation2 + $0xb2] ss:$2 sm:$0xff]  ;;  %v2375_v53 = vld [vmem:[#allocation2 + $0xc2] ss:$2 sm:$0x7f] }
 0x1da   : > { %v2567_v62 = vld [vmem:[#allocation2 + $0x80] ss:$2 sm:$0xff]  ;;  %v2570_v1 = vld [vmem:[#allocation2 + $0xb0] ss:$2 sm:$0xff]  ;;  %v2759_v7 = vld [vmem:[#allocation2 + $0x21] ss:$2 sm:$0xff] }
 0x1db   : > { %v2569_v0 = vld [vmem:[#allocation2 + $0xa0] ss:$2 sm:$0xff]  ;;  %v2573_v3 = vld [vmem:[#allocation2 + $0xd0] ss:$2 sm:$0x7f] }
 0x1dc   : > { %8728 = vmatmul.mubr.msk.f32.vlgmr.msra.gmra.mrb[16].mxu1 %vm1926_vm3, %v1958_v27  ;;  %v2571_v2 = vld [vmem:[#allocation2 + $0xc0] ss:$2 sm:$0xff]  ;;  %v2760_v11 = vld [vmem:[#allocation2 + $0x31] ss:$2 sm:$0xff]  ;;  %v2761_v13 = vld [vmem:[#allocation2 + $0x41] ss:$2 sm:$0xff] }
 0x1dd   : > { %8767 = vmatpush3.msra.mxu1 %v7623_v16  ;;  %8730 = vmatprep.mubr.msk.f32.mxu1 %vm10459_vm1, %v10458_v14  ;;  %v2762_v18 = vld [vmem:[#allocation2 + $0x51] ss:$2 sm:$0xff]  ;;  %v2763_v21 = vld [vmem:[#allocation2 + $0x61] ss:$2 sm:$0xff] }
 0x1de   : > { %8807 = vmatprep.subr.mxu1 %v10458_v14  ;;  %v2764_v23 = vld [vmem:[#allocation2 + $0x71] ss:$2 sm:$0xff]  ;;  %v2765_v24 = vld [vmem:[#allocation2 + $0x81] ss:$2 sm:$0xff] }
 0x1df   : > { %v2766_v25 = vld [vmem:[#allocation2 + $0x91] ss:$2 sm:$0xff]  ;;  %v2767_v26 = vld [vmem:[#allocation2 + $0xa1] ss:$2 sm:$0xff] }
 0x1e0   : > { %8731 = vmatmul.mubr.msk.f32.gmra.mrb[18].mxu1 %vm1926_vm3, %v1960_v28  ;;  %v2768_v16 = vld [vmem:[#allocation2 + $0xb1] ss:$2 sm:$0xff]  ;;  %v2769_v27 = vld [vmem:[#allocation2 + $0xc1] ss:$2 sm:$0xff] }
 0x1e1   : > { %8733 = vmatprep.mubr.msk.f32.mxu1 %vm10459_vm1, %v10458_v14  ;;  %v2771_v28 = vld [vmem:[#allocation2 + $0xd1] ss:$2 sm:$0x7f] }
 0x1e4   : > { %8734 = vmatmul.mubr.msk.f32.gmra.mrb[20].mxu1 %vm1926_vm3, %v1962_v29  ;;  %v7679_v29 = vld [vmem:[%s12432_s3 + $0x30] sm:$0xff] }
 0x1e5   : > { %8736 = vmatprep.mubr.msk.f32.mxu1 %vm10459_vm1, %v10458_v14 }
 0x1e8   : > { %8737 = vmatmul.mubr.msk.f32.gmra.mrb[22].mxu1 %vm1926_vm3, %v1964_v30  ;;  %v2956_v30 = vld [vmem:[#allocation2 + $0x12] ss:$2 sm:$0xff] }
 0x1e9   : > { %8739 = vmatprep.mubr.msk.f32.mxu1 %vm10459_vm1, %v10458_v14 }
 0x1ec   : > { %8740 = vmatmul.mubr.msk.f32.gmra.mrb[24].mxu1 %vm1926_vm3, %v1966_v31  ;;  %v2957_v31 = vld [vmem:[#allocation2 + $0x22] ss:$2 sm:$0xff] }
 0x1ed   : > { %8742 = vmatprep.mubr.msk.f32.mxu1 %vm10459_vm1, %v10458_v14 }
 0x1f0   : > { %8743 = vmatmul.mubr.msk.f32.gmra.mrb[0].mxu1 %vm1926_vm3, %v1968_v32  ;;  %v2958_v32 = vld [vmem:[#allocation2 + $0x32] ss:$2 sm:$0xff] }
 0x1f1   : > { %8745 = vmatprep.mubr.msk.f32.mxu1 %vm10459_vm1, %v10458_v14 }
 0x1f4   : > { %8746 = vmatmul.mubr.msk.f32.gmra.mrb[2].mxu1 %vm1926_vm3, %v1970_v33  ;;  %v2959_v33 = vld [vmem:[#allocation2 + $0x42] ss:$2 sm:$0xff] }
 0x1f5   : > { %8748 = vmatprep.mubr.msk.f32.mxu1 %vm10459_vm1, %v10458_v14 }
 0x1f8   : > { %8749 = vmatmul.mubr.msk.f32.gmra.mrb[4].mxu1 %vm1926_vm3, %v1972_v34  ;;  %v2960_v34 = vld [vmem:[#allocation2 + $0x52] ss:$2 sm:$0xff] }
 0x1f9   : > { %8751 = vmatprep.mubr.msk.f32.mxu1 %vm10459_vm1, %v10458_v14 }
 0x1fc   : > { %8752 = vmatmul.mubr.msk.f32.gmra.mrb[6].mxu1 %vm1926_vm3, %v1974_v35  ;;  %v2961_v35 = vld [vmem:[#allocation2 + $0x62] ss:$2 sm:$0xff] }
 0x1fd   : > { %8754 = vmatprep.mubr.msk.f32.mxu1 %vm10459_vm1, %v10458_v14 }
 0x200   : > { %8755 = vmatmul.mubr.msk.f32.gmra.mrb[8].mxu1 %vm1926_vm3, %v1976_v36  ;;  %v2962_v36 = vld [vmem:[#allocation2 + $0x72] ss:$2 sm:$0xff] }
 0x201   : > { %8757 = vmatprep.mubr.msk.f32.mxu1 %vm10459_vm1, %v10458_v14 }
 0x204   : > { %8758 = vmatmul.mubr.msk.f32.gmra.mrb[10].mxu1 %vm1926_vm3, %v1978_v37  ;;  %v2963_v37 = vld [vmem:[#allocation2 + $0x82] ss:$2 sm:$0xff] }
 0x205   : > { %8760 = vmatprep.mubr.msk.f32.mxu1 %vm10459_vm1, %v10458_v14 }
 0x208   : > { %8761 = vmatmul.mubr.msk.f32.gmra.mrb[12].mxu1 %vm1926_vm3, %v1980_v38  ;;  %v2964_v38 = vld [vmem:[#allocation2 + $0x92] ss:$2 sm:$0xff] }
 0x209   : > { %8763 = vmatprep.mubr.msk.f32.mxu1 %vm10459_vm1, %v10458_v14 }
 0x20c   : > { %8764 = vmatmul.mubr.msk.f32.gmra.mrb[14].mxu1 %vm1926_vm3, %v1982_v39  ;;  %v2965_v39 = vld [vmem:[#allocation2 + $0xa2] ss:$2 sm:$0xff] }
 0x20d   : > { %8768 = vmatprep.mubr.msk.f32.mxu1 %vm10459_vm1, %v10458_v14 }
 0x210   : > { %8769 = vmatmul.mubr.msk.f32.vlgmr.msra.gmra.mrb[16].mxu1 %vm1926_vm3, %v2351_v41  ;;  %v2967_v41 = vld [vmem:[#allocation2 + $0xc2] ss:$2 sm:$0xff] }
 0x211   : > { %8808 = vmatpush3.msra.mxu1 %v7637_v40  ;;  %8771 = vmatprep.mubr.msk.f32.mxu1 %vm10459_vm1, %v10458_v14  ;;  %v2966_v40 = vld [vmem:[#allocation2 + $0xb2] ss:$2 sm:$0xff] }
 0x212   : > { %8848 = vmatprep.subr.mxu1 %v10458_v14 }
 0x214   : > { %8772 = vmatmul.mubr.msk.f32.gmra.mrb[18].mxu1 %vm1926_vm3, %v2353_v42  ;;  %v2969_v42 = vld [vmem:[#allocation2 + $0xd2] ss:$2 sm:$0x7f] }
 0x215   : > { %8774 = vmatprep.mubr.msk.f32.mxu1 %vm10459_vm1, %v10458_v14 }
 0x218   : > { %8775 = vmatmul.mubr.msk.f32.gmra.mrb[20].mxu1 %vm1926_vm3, %v2355_v43  ;;  %v7693_v43 = vld [vmem:[%s12432_s3 + $0x38] sm:$0xff] }
 0x219   : > { %8777 = vmatprep.mubr.msk.f32.mxu1 %vm10459_vm1, %v10458_v14 }
 0x21c   : > { %8778 = vmatmul.mubr.msk.f32.gmra.mrb[22].mxu1 %vm1926_vm3, %v2357_v44  ;;  %v3154_v44 = vld [vmem:[#allocation2 + $0x20] ss:$2 sm:$0xff] }
 0x21d   : > { %8780 = vmatprep.mubr.msk.f32.mxu1 %vm10459_vm1, %v10458_v14 }
 0x220   : > { %8781 = vmatmul.mubr.msk.f32.gmra.mrb[24].mxu1 %vm1926_vm3, %v2359_v45  ;;  %v3155_v45 = vld [vmem:[#allocation2 + $0x30] ss:$2 sm:$0xff] }
 0x221   : > { %8783 = vmatprep.mubr.msk.f32.mxu1 %vm10459_vm1, %v10458_v14 }
 0x224   : > { %8784 = vmatmul.mubr.msk.f32.gmra.mrb[0].mxu1 %vm1926_vm3, %v2361_v46  ;;  %v3156_v46 = vld [vmem:[#allocation2 + $0x40] ss:$2 sm:$0xff] }
 0x225   : > { %8786 = vmatprep.mubr.msk.f32.mxu1 %vm10459_vm1, %v10458_v14 }
 0x228   : > { %8787 = vmatmul.mubr.msk.f32.gmra.mrb[2].mxu1 %vm1926_vm3, %v2363_v47  ;;  %v3157_v47 = vld [vmem:[#allocation2 + $0x50] ss:$2 sm:$0xff] }
 0x229   : > { %8789 = vmatprep.mubr.msk.f32.mxu1 %vm10459_vm1, %v10458_v14 }
 0x22c   : > { %8790 = vmatmul.mubr.msk.f32.gmra.mrb[4].mxu1 %vm1926_vm3, %v2365_v48  ;;  %v3158_v48 = vld [vmem:[#allocation2 + $0x60] ss:$2 sm:$0xff] }
 0x22d   : > { %8792 = vmatprep.mubr.msk.f32.mxu1 %vm10459_vm1, %v10458_v14 }
 0x230   : > { %8793 = vmatmul.mubr.msk.f32.gmra.mrb[6].mxu1 %vm1926_vm3, %v2367_v49  ;;  %v3159_v49 = vld [vmem:[#allocation2 + $0x70] ss:$2 sm:$0xff] }
 0x231   : > { %8795 = vmatprep.mubr.msk.f32.mxu1 %vm10459_vm1, %v10458_v14 }
 0x234   : > { %8796 = vmatmul.mubr.msk.f32.gmra.mrb[8].mxu1 %vm1926_vm3, %v2369_v50  ;;  %v3160_v50 = vld [vmem:[#allocation2 + $0x80] ss:$2 sm:$0xff] }
 0x235   : > { %8798 = vmatprep.mubr.msk.f32.mxu1 %vm10459_vm1, %v10458_v14 }
 0x238   : > { %8799 = vmatmul.mubr.msk.f32.gmra.mrb[10].mxu1 %vm1926_vm3, %v2371_v51  ;;  %v3161_v51 = vld [vmem:[#allocation2 + $0x90] ss:$2 sm:$0xff] }
 0x239   : > { %8801 = vmatprep.mubr.msk.f32.mxu1 %vm10459_vm1, %v10458_v14 }
 0x23c   : > { %8802 = vmatmul.mubr.msk.f32.gmra.mrb[12].mxu1 %vm1926_vm3, %v2373_v52  ;;  %v3162_v52 = vld [vmem:[#allocation2 + $0xa0] ss:$2 sm:$0xff] }
 0x23d   : > { %8804 = vmatprep.mubr.msk.f32.mxu1 %vm10459_vm1, %v10458_v14 }
 0x240   : > { %8805 = vmatmul.mubr.msk.f32.gmra.mrb[14].mxu1 %vm1926_vm3, %v2375_v53  ;;  %v3163_v53 = vld [vmem:[#allocation2 + $0xb0] ss:$2 sm:$0xff] }
 0x241   : > { %8809 = vmatprep.mubr.msk.f32.mxu1 %vm10459_vm1, %v10458_v14 }
 0x244   : > { %8810 = vmatmul.mubr.msk.f32.vlgmr.msra.gmra.mrb[16].mxu1 %vm1926_vm3, %v2560_v55  ;;  %v3165_v55 = vld [vmem:[#allocation2 + $0xd0] ss:$2 sm:$0xff] }
 0x245   : > { %8849 = vmatpush3.msra.mxu1 %v7651_v54  ;;  %8812 = vmatprep.mubr.msk.f32.mxu1 %vm10459_vm1, %v10458_v14  ;;  %v3164_v54 = vld [vmem:[#allocation2 + $0xc0] ss:$2 sm:$0xff] }
 0x246   : > { %8889 = vmatprep.subr.mxu1 %v10458_v14 }
 0x248   : > { %8813 = vmatmul.mubr.msk.f32.gmra.mrb[18].mxu1 %vm1926_vm3, %v2561_v56  ;;  %v3167_v56 = vld [vmem:[#allocation2 + $0xe0] ss:$2 sm:$0x7f] }
 0x249   : > { %8815 = vmatprep.mubr.msk.f32.mxu1 %vm10459_vm1, %v10458_v14 }
 0x24c   : > { %8816 = vmatmul.mubr.msk.f32.gmra.mrb[20].mxu1 %vm1926_vm3, %v2562_v57  ;;  %v7707_v57 = vld [vmem:[%s12432_s3 + $0x40] sm:$0xff] }
 0x24d   : > { %8818 = vmatprep.mubr.msk.f32.mxu1 %vm10459_vm1, %v10458_v14 }
 0x250   : > { %8819 = vmatmul.mubr.msk.f32.gmra.mrb[22].mxu1 %vm1926_vm3, %v2563_v58  ;;  %v3352_v58 = vld [vmem:[#allocation2 + $0x21] ss:$2 sm:$0xff] }
 0x251   : > { %8821 = vmatprep.mubr.msk.f32.mxu1 %vm10459_vm1, %v10458_v14 }
 0x254   : > { %8822 = vmatmul.mubr.msk.f32.gmra.mrb[24].mxu1 %vm1926_vm3, %v2564_v59  ;;  %v3353_v59 = vld [vmem:[#allocation2 + $0x31] ss:$2 sm:$0xff] }
 0x255   : > { %8824 = vmatprep.mubr.msk.f32.mxu1 %vm10459_vm1, %v10458_v14 }
 0x258   : > { %8825 = vmatmul.mubr.msk.f32.gmra.mrb[0].mxu1 %vm1926_vm3, %v2565_v60  ;;  %v3354_v60 = vld [vmem:[#allocation2 + $0x41] ss:$2 sm:$0xff] }
 0x259   : > { %8827 = vmatprep.mubr.msk.f32.mxu1 %vm10459_vm1, %v10458_v14 }
 0x25c   : > { %8828 = vmatmul.mubr.msk.f32.gmra.mrb[2].mxu1 %vm1926_vm3, %v2566_v61  ;;  %v3355_v61 = vld [vmem:[#allocation2 + $0x51] ss:$2 sm:$0xff] }
 0x25d   : > { %8830 = vmatprep.mubr.msk.f32.mxu1 %vm10459_vm1, %v10458_v14 }
 0x260   : > { %8831 = vmatmul.mubr.msk.f32.gmra.mrb[4].mxu1 %vm1926_vm3, %v2567_v62  ;;  %v3356_v62 = vld [vmem:[#allocation2 + $0x61] ss:$2 sm:$0xff] }
 0x261   : > { %8833 = vmatprep.mubr.msk.f32.mxu1 %vm10459_vm1, %v10458_v14 }
 0x264   : > { %8834 = vmatmul.mubr.msk.f32.gmra.mrb[6].mxu1 %vm1926_vm3, %v2568_v63  ;;  %v3357_v63 = vld [vmem:[#allocation2 + $0x71] ss:$2 sm:$0xff] }
 0x265   : > { %8836 = vmatprep.mubr.msk.f32.mxu1 %vm10459_vm1, %v10458_v14 }
 0x268   : > { %8837 = vmatmul.mubr.msk.f32.gmra.mrb[8].mxu1 %vm1926_vm3, %v2569_v0  ;;  %v3358_v0 = vld [vmem:[#allocation2 + $0x81] ss:$2 sm:$0xff] }
 0x269   : > { %8839 = vmatprep.mubr.msk.f32.mxu1 %vm10459_vm1, %v10458_v14 }
 0x26c   : > { %8840 = vmatmul.mubr.msk.f32.gmra.mrb[10].mxu1 %vm1926_vm3, %v2570_v1  ;;  %v3359_v1 = vld [vmem:[#allocation2 + $0x91] ss:$2 sm:$0xff] }
 0x26d   : > { %8842 = vmatprep.mubr.msk.f32.mxu1 %vm10459_vm1, %v10458_v14 }
 0x270   : > { %8843 = vmatmul.mubr.msk.f32.gmra.mrb[12].mxu1 %vm1926_vm3, %v2571_v2  ;;  %v3360_v2 = vld [vmem:[#allocation2 + $0xa1] ss:$2 sm:$0xff] }
 0x271   : > { %8845 = vmatprep.mubr.msk.f32.mxu1 %vm10459_vm1, %v10458_v14 }
 0x274   : > { %8846 = vmatmul.mubr.msk.f32.gmra.mrb[14].mxu1 %vm1926_vm3, %v2573_v3  ;;  %v3361_v3 = vld [vmem:[#allocation2 + $0xb1] ss:$2 sm:$0xff] }
 0x275   : > { %8850 = vmatprep.mubr.msk.f32.mxu1 %vm10459_vm1, %v10458_v14 }
 0x278   : > { %8851 = vmatmul.mubr.msk.f32.vlgmr.msra.gmra.mrb[16].mxu1 %vm1926_vm3, %v2758_v5  ;;  %v3363_v5 = vld [vmem:[#allocation2 + $0xd1] ss:$2 sm:$0xff] }
 0x279   : > { %8890 = vmatpush3.msra.mxu1 %v7665_v4  ;;  %8853 = vmatprep.mubr.msk.f32.mxu1 %vm10459_vm1, %v10458_v14  ;;  %v3362_v4 = vld [vmem:[#allocation2 + $0xc1] ss:$2 sm:$0xff] }
 0x27a   : > { %8930 = vmatprep.subr.mxu1 %v10458_v14 }
 0x27b   : > { %v11097_v6 = vpop.f32.mrb[30].mxu0 }
 0x27c   : > { %v8688_v8 = vpop.f32.mrb[31].mxu0  ;;  %8854 = vmatmul.mubr.msk.f32.gmra.mrb[18].mxu1 %vm1926_vm3, %v2759_v7  ;;  %v3365_v7 = vld [vmem:[#allocation2 + $0xe1] ss:$2 sm:$0x7f] }
 0x27d   : > { %8856 = vmatprep.mubr.msk.f32.mxu1 %vm10459_vm1, %v10458_v14  ;;  %v3550_v8 = vld [vmem:[#allocation2 + $0x22] ss:$2 sm:$0xff] }
 0x27f   : > { %v11102_v9 = vpop.f32.mrb[32].mxu0 }
 0x280   : > { %v8691_v10 = vpop.f32.mrb[33].mxu0  ;;  %8857 = vmatmul.mubr.msk.f32.gmra.mrb[20].mxu1 %vm1926_vm3, %v2760_v11  ;;  %v3551_v11 = vld [vmem:[#allocation2 + $0x32] ss:$2 sm:$0xff] }
 0x281   : > { %8859 = vmatprep.mubr.msk.f32.mxu1 %vm10459_vm1, %v10458_v14  ;;  %v3552_v10 = vld [vmem:[#allocation2 + $0x42] ss:$2 sm:$0xff] }
 0x283   : > { %v11107_v12 = vpop.f32.mrb[34].mxu0 }
 0x284   : > { %v8694_v15 = vpop.f32.mrb[35].mxu0  ;;  %8860 = vmatmul.mubr.msk.f32.gmra.mrb[22].mxu1 %vm1926_vm3, %v2761_v13  ;;  %v3553_v13 = vld [vmem:[#allocation2 + $0x52] ss:$2 sm:$0xff] }
 0x285   : > { %8862 = vmatprep.mubr.msk.f32.mxu1 %vm10459_vm1, %v10458_v14  ;;  %v3554_v15 = vld [vmem:[#allocation2 + $0x62] ss:$2 sm:$0xff] }
 0x287   : > { %v11112_v17 = vpop.f32.mrb[36].mxu0 }
 0x288   : > { %v8697_v19 = vpop.f32.mrb[37].mxu0  ;;  %8863 = vmatmul.mubr.msk.f32.gmra.mrb[24].mxu1 %vm1926_vm3, %v2762_v18  ;;  %v3555_v18 = vld [vmem:[#allocation2 + $0x72] ss:$2 sm:$0xff] }
 0x289   : > { %8865 = vmatprep.mubr.msk.f32.mxu1 %vm10459_vm1, %v10458_v14  ;;  %v3556_v19 = vld [vmem:[#allocation2 + $0x82] ss:$2 sm:$0xff] }
 0x28b   : > { %v11117_v20 = vpop.f32.mrb[38].mxu0 }
 0x28c   : > { %v8700_v22 = vpop.f32.mrb[39].mxu0  ;;  %8866 = vmatmul.mubr.msk.f32.gmra.mrb[0].mxu1 %vm1926_vm3, %v2763_v21  ;;  %v3557_v21 = vld [vmem:[#allocation2 + $0x92] ss:$2 sm:$0xff] }
 0x28d   : > { %8868 = vmatprep.mubr.msk.f32.mxu1 %vm10459_vm1, %v10458_v14  ;;  %v3558_v22 = vld [vmem:[#allocation2 + $0xa2] ss:$2 sm:$0xff] }
 0x290   : > { %8869 = vmatmul.mubr.msk.f32.gmra.mrb[2].mxu1 %vm1926_vm3, %v2764_v23  ;;  %v3559_v23 = vld [vmem:[#allocation2 + $0xb2] ss:$2 sm:$0xff] }
 0x291   : > { %8871 = vmatprep.mubr.msk.f32.mxu1 %vm10459_vm1, %v10458_v14 }
 0x294   : > { %8872 = vmatmul.mubr.msk.f32.gmra.mrb[4].mxu1 %vm1926_vm3, %v2765_v24  ;;  %v3560_v24 = vld [vmem:[#allocation2 + $0xc2] ss:$2 sm:$0xff] }
 0x295   : > { %8874 = vmatprep.mubr.msk.f32.mxu1 %vm10459_vm1, %v10458_v14 }
 0x298   : > { %8875 = vmatmul.mubr.msk.f32.gmra.mrb[6].mxu1 %vm1926_vm3, %v2766_v25  ;;  %v3561_v25 = vld [vmem:[#allocation2 + $0xd2] ss:$2 sm:$0xff] }
 0x299   : > { %8877 = vmatprep.mubr.msk.f32.mxu1 %vm10459_vm1, %v10458_v14 }
 0x29c   : > { %8878 = vmatmul.mubr.msk.f32.gmra.mrb[8].mxu1 %vm1926_vm3, %v2767_v26  ;;  %v3563_v26 = vld [vmem:[#allocation2 + $0xe2] ss:$2 sm:$0x7f] }
 0x29d   : > { %8880 = vmatprep.mubr.msk.f32.mxu1 %vm10459_vm1, %v10458_v14 }
 0x2a0   : > { %8881 = vmatmul.mubr.msk.f32.gmra.mrb[10].mxu1 %vm1926_vm3, %v2768_v16  ;;  %v7721_v16 = vld [vmem:[%s12433_s4 + $0x10] sm:$0xff] }
 0x2a1   : > { %8883 = vmatprep.mubr.msk.f32.mxu1 %vm10459_vm1, %v10458_v14 }
 0x2a4   : > { %8884 = vmatmul.mubr.msk.f32.gmra.mrb[12].mxu1 %vm1926_vm3, %v2769_v27  ;;  %v7722_v27 = vld [vmem:[%s12433_s4 + $0x18] sm:$0xff] }
 0x2a5   : > { %8886 = vmatprep.mubr.msk.f32.mxu1 %vm10459_vm1, %v10458_v14 }
 0x2a8   : > { %8887 = vmatmul.mubr.msk.f32.gmra.mrb[14].mxu1 %vm1926_vm3, %v2771_v28  ;;  %v10460_v28 = vmov 0.0|0.0  }
 0x2a9   : > { %8891 = vmatprep.mubr.msk.f32.mxu1 %vm10459_vm1, %v10458_v14  ;;  %9726 = vmatprep.subr.bf16.mxu0 %v10460_v28 }
 0x2ac   : > { %8892 = vmatmul.mubr.msk.f32.vlgmr.msra.gmra.mrb[16].mxu1 %vm1926_vm3, %v2956_v30 }
 0x2ad   : > { %8931 = vmatpush3.msra.mxu1 %v7679_v29  ;;  %8894 = vmatprep.mubr.msk.f32.mxu1 %vm10459_vm1, %v10458_v14  ;;  %v9727_v29 = vpack.c.bf16 %v7722_v27, %v7721_v16 }
 0x2ae   : > { %8971 = vmatprep.subr.mxu1 %v10458_v14 }
 0x2af   : > { %9728 = vmatpush3.bf16.msra.mxu0 %v9727_v29 }
 0x2b0   : > { %8895 = vmatmul.mubr.msk.f32.gmra.mrb[18].mxu1 %vm1926_vm3, %v2957_v31  ;;  %9729 = vmatprep.subr.bf16.mxu0 %v10460_v28 }
 0x2b1   : > { %8897 = vmatprep.mubr.msk.f32.mxu1 %vm10459_vm1, %v10458_v14 }
 0x2b4   : > { %8898 = vmatmul.mubr.msk.f32.gmra.mrb[20].mxu1 %vm1926_vm3, %v2958_v32 }
 0x2b5   : > { %8900 = vmatprep.mubr.msk.f32.mxu1 %vm10459_vm1, %v10458_v14 }
 0x2b8   : > { %8901 = vmatmul.mubr.msk.f32.gmra.mrb[22].mxu1 %vm1926_vm3, %v2959_v33 }
 0x2b9   : > { %8903 = vmatprep.mubr.msk.f32.mxu1 %vm10459_vm1, %v10458_v14 }
 0x2bc   : > { %8904 = vmatmul.mubr.msk.f32.gmra.mrb[24].mxu1 %vm1926_vm3, %v2960_v34 }
 0x2bd   : > { %8906 = vmatprep.mubr.msk.f32.mxu1 %vm10459_vm1, %v10458_v14 }
 0x2c0   : > { %8907 = vmatmul.mubr.msk.f32.gmra.mrb[0].mxu1 %vm1926_vm3, %v2961_v35 }
 0x2c1   : > { %8909 = vmatprep.mubr.msk.f32.mxu1 %vm10459_vm1, %v10458_v14 }
 0x2c4   : > { %8910 = vmatmul.mubr.msk.f32.gmra.mrb[2].mxu1 %vm1926_vm3, %v2962_v36 }
 0x2c5   : > { %8912 = vmatprep.mubr.msk.f32.mxu1 %vm10459_vm1, %v10458_v14 }
 0x2c8   : > { %8913 = vmatmul.mubr.msk.f32.gmra.mrb[4].mxu1 %vm1926_vm3, %v2963_v37 }
 0x2c9   : > { %8915 = vmatprep.mubr.msk.f32.mxu1 %vm10459_vm1, %v10458_v14 }
 0x2cc   : > { %8916 = vmatmul.mubr.msk.f32.gmra.mrb[6].mxu1 %vm1926_vm3, %v2964_v38 }
 0x2cd   : > { %8918 = vmatprep.mubr.msk.f32.mxu1 %vm10459_vm1, %v10458_v14 }
 0x2d0   : > { %8919 = vmatmul.mubr.msk.f32.gmra.mrb[8].mxu1 %vm1926_vm3, %v2965_v39 }
 0x2d1   : > { %8921 = vmatprep.mubr.msk.f32.mxu1 %vm10459_vm1, %v10458_v14 }
 0x2d4   : > { %8922 = vmatmul.mubr.msk.f32.gmra.mrb[10].mxu1 %vm1926_vm3, %v2966_v40 }
 0x2d5   : > { %8924 = vmatprep.mubr.msk.f32.mxu1 %vm10459_vm1, %v10458_v14 }
 0x2d8   : > { %8925 = vmatmul.mubr.msk.f32.gmra.mrb[12].mxu1 %vm1926_vm3, %v2967_v41 }
 0x2d9   : > { %8927 = vmatprep.mubr.msk.f32.mxu1 %vm10459_vm1, %v10458_v14 }
 0x2dc   : > { %8928 = vmatmul.mubr.msk.f32.gmra.mrb[14].mxu1 %vm1926_vm3, %v2969_v42 }
 0x2dd   : > { %8932 = vmatprep.mubr.msk.f32.mxu1 %vm10459_vm1, %v10458_v14 }
 0x2e0   : > { %8933 = vmatmul.mubr.msk.f32.vlgmr.msra.gmra.mrb[16].mxu1 %vm1926_vm3, %v3154_v44 }
 0x2e1   : > { %8972 = vmatpush3.msra.mxu1 %v7693_v43  ;;  %8935 = vmatprep.mubr.msk.f32.mxu1 %vm10459_vm1, %v10458_v14 }
 0x2e2   : > { %9012 = vmatprep.subr.mxu1 %v10458_v14 }
 0x2e4   : > { %8936 = vmatmul.mubr.msk.f32.gmra.mrb[18].mxu1 %vm1926_vm3, %v3155_v45 }
 0x2e5   : > { %8938 = vmatprep.mubr.msk.f32.mxu1 %vm10459_vm1, %v10458_v14 }
 0x2e8   : > { %8939 = vmatmul.mubr.msk.f32.gmra.mrb[20].mxu1 %vm1926_vm3, %v3156_v46 }
 0x2e9   : > { %8941 = vmatprep.mubr.msk.f32.mxu1 %vm10459_vm1, %v10458_v14 }
 0x2ec   : > { %8942 = vmatmul.mubr.msk.f32.gmra.mrb[22].mxu1 %vm1926_vm3, %v3157_v47 }
 0x2ed   : > { %8944 = vmatprep.mubr.msk.f32.mxu1 %vm10459_vm1, %v10458_v14 }
 0x2f0   : > { %8945 = vmatmul.mubr.msk.f32.gmra.mrb[24].mxu1 %vm1926_vm3, %v3158_v48 }
 0x2f1   : > { %8947 = vmatprep.mubr.msk.f32.mxu1 %vm10459_vm1, %v10458_v14 }
 0x2f4   : > { %8948 = vmatmul.mubr.msk.f32.gmra.mrb[0].mxu1 %vm1926_vm3, %v3159_v49 }
 0x2f5   : > { %8950 = vmatprep.mubr.msk.f32.mxu1 %vm10459_vm1, %v10458_v14 }
 0x2f8   : > { %8951 = vmatmul.mubr.msk.f32.gmra.mrb[2].mxu1 %vm1926_vm3, %v3160_v50 }
 0x2f9   : > { %8953 = vmatprep.mubr.msk.f32.mxu1 %vm10459_vm1, %v10458_v14 }
 0x2fc   : > { %8954 = vmatmul.mubr.msk.f32.gmra.mrb[4].mxu1 %vm1926_vm3, %v3161_v51 }
 0x2fd   : > { %8956 = vmatprep.mubr.msk.f32.mxu1 %vm10459_vm1, %v10458_v14 }
 0x300   : > { %8957 = vmatmul.mubr.msk.f32.gmra.mrb[6].mxu1 %vm1926_vm3, %v3162_v52 }
 0x301   : > { %8959 = vmatprep.mubr.msk.f32.mxu1 %vm10459_vm1, %v10458_v14 }
 0x304   : > { %8960 = vmatmul.mubr.msk.f32.gmra.mrb[8].mxu1 %vm1926_vm3, %v3163_v53 }
 0x305   : > { %8962 = vmatprep.mubr.msk.f32.mxu1 %vm10459_vm1, %v10458_v14 }
 0x308   : > { %8963 = vmatmul.mubr.msk.f32.gmra.mrb[10].mxu1 %vm1926_vm3, %v3164_v54 }
 0x309   : > { %8965 = vmatprep.mubr.msk.f32.mxu1 %vm10459_vm1, %v10458_v14 }
 0x30c   : > { %8966 = vmatmul.mubr.msk.f32.gmra.mrb[12].mxu1 %vm1926_vm3, %v3165_v55 }
 0x30d   : > { %8968 = vmatprep.mubr.msk.f32.mxu1 %vm10459_vm1, %v10458_v14 }
 0x310   : > { %8969 = vmatmul.mubr.msk.f32.gmra.mrb[14].mxu1 %vm1926_vm3, %v3167_v56 }
 0x311   : > { %8973 = vmatprep.mubr.msk.f32.mxu1 %vm10459_vm1, %v10458_v14 }
 0x314   : > { %8974 = vmatmul.mubr.msk.f32.vlgmr.msra.gmra.mrb[16].mxu1 %vm1926_vm3, %v3352_v58 }
 0x315   : > { %9013 = vmatpush3.msra.mxu1 %v7707_v57  ;;  %8976 = vmatprep.mubr.msk.f32.mxu1 %vm10459_vm1, %v10458_v14 }
 0x316   : > { %9917 = vmatprep.subr.bf16.mxu1 %v10460_v28 }
 0x318   : > { %8977 = vmatmul.mubr.msk.f32.gmra.mrb[18].mxu1 %vm1926_vm3, %v3353_v59 }
 0x319   : > { %8979 = vmatprep.mubr.msk.f32.mxu1 %vm10459_vm1, %v10458_v14 }
 0x31c   : > { %8980 = vmatmul.mubr.msk.f32.gmra.mrb[20].mxu1 %vm1926_vm3, %v3354_v60 }
 0x31d   : > { %8982 = vmatprep.mubr.msk.f32.mxu1 %vm10459_vm1, %v10458_v14 }
 0x320   : > { %8983 = vmatmul.mubr.msk.f32.gmra.mrb[22].mxu1 %vm1926_vm3, %v3355_v61 }
 0x321   : > { %8985 = vmatprep.mubr.msk.f32.mxu1 %vm10459_vm1, %v10458_v14 }
 0x324   : > { %8986 = vmatmul.mubr.msk.f32.gmra.mrb[24].mxu1 %vm1926_vm3, %v3356_v62 }
 0x325   : > { %8988 = vmatprep.mubr.msk.f32.mxu1 %vm10459_vm1, %v10458_v14 }
 0x328   : > { %8989 = vmatmul.mubr.msk.f32.gmra.mrb[0].mxu1 %vm1926_vm3, %v3357_v63 }
 0x329   : > { %8991 = vmatprep.mubr.msk.f32.mxu1 %vm10459_vm1, %v10458_v14 }
 0x32c   : > { %8992 = vmatmul.mubr.msk.f32.gmra.mrb[2].mxu1 %vm1926_vm3, %v3358_v0 }
 0x32d   : > { %8994 = vmatprep.mubr.msk.f32.mxu1 %vm10459_vm1, %v10458_v14 }
 0x330   : > { %8995 = vmatmul.mubr.msk.f32.gmra.mrb[4].mxu1 %vm1926_vm3, %v3359_v1 }
 0x331   : > { %8997 = vmatprep.mubr.msk.f32.mxu1 %vm10459_vm1, %v10458_v14 }
 0x334   : > { %8998 = vmatmul.mubr.msk.f32.gmra.mrb[6].mxu1 %vm1926_vm3, %v3360_v2 }
 0x335   : > { %9000 = vmatprep.mubr.msk.f32.mxu1 %vm10459_vm1, %v10458_v14 }
 0x338   : > { %9001 = vmatmul.mubr.msk.f32.gmra.mrb[8].mxu1 %vm1926_vm3, %v3361_v3 }
 0x339   : > { %9003 = vmatprep.mubr.msk.f32.mxu1 %vm10459_vm1, %v10458_v14 }
 0x33c   : > { %9004 = vmatmul.mubr.msk.f32.gmra.mrb[10].mxu1 %vm1926_vm3, %v3362_v4 }
 0x33d   : > { %9006 = vmatprep.mubr.msk.f32.mxu1 %vm10459_vm1, %v10458_v14 }
 0x340   : > { %9007 = vmatmul.mubr.msk.f32.gmra.mrb[12].mxu1 %vm1926_vm3, %v3363_v5 }
 0x341   : > { %9009 = vmatprep.mubr.msk.f32.mxu1 %vm10459_vm1, %v10458_v14 }
 0x344   : > { %9010 = vmatmul.mubr.msk.f32.gmra.mrb[14].mxu1 %vm1926_vm3, %v3365_v7 }
 0x345   : > { %9014 = vmatprep.mubr.msk.f32.mxu1 %vm10459_vm1, %v10458_v14 }
 0x348   : > { %9015 = vmatmul.mubr.msk.f32.vlgmr.msra.gmra.mrb[16].mxu1 %vm1926_vm3, %v3550_v8 }
 0x349   : > { %9017 = vmatprep.mubr.msk.f32.mxu1 %vm10459_vm1, %v10458_v14 }
 0x34c   : > { %9018 = vmatmul.mubr.msk.f32.gmra.mrb[18].mxu1 %vm1926_vm3, %v3551_v11 }
 0x34d   : > { %9020 = vmatprep.mubr.msk.f32.mxu1 %vm10459_vm1, %v10458_v14 }
 0x350   : > { %9021 = vmatmul.mubr.msk.f32.gmra.mrb[20].mxu1 %vm1926_vm3, %v3552_v10 }
 0x351   : > { %9023 = vmatprep.mubr.msk.f32.mxu1 %vm10459_vm1, %v10458_v14 }
 0x354   : > { %9024 = vmatmul.mubr.msk.f32.gmra.mrb[22].mxu1 %vm1926_vm3, %v3553_v13 }
 0x355   : > { %9026 = vmatprep.mubr.msk.f32.mxu1 %vm10459_vm1, %v10458_v14 }
 0x358   : > { %9027 = vmatmul.mubr.msk.f32.gmra.mrb[24].mxu1 %vm1926_vm3, %v3554_v15 }
 0x359   : > { %9029 = vmatprep.mubr.msk.f32.mxu1 %vm10459_vm1, %v10458_v14 }
 0x35c   : > { %9030 = vmatmul.mubr.msk.f32.gmra.mrb[0].mxu1 %vm1926_vm3, %v3555_v18 }
 0x35d   : > { %9032 = vmatprep.mubr.msk.f32.mxu1 %vm10459_vm1, %v10458_v14 }
 0x360   : > { %9033 = vmatmul.mubr.msk.f32.gmra.mrb[2].mxu1 %vm1926_vm3, %v3556_v19 }
 0x361   : > { %9035 = vmatprep.mubr.msk.f32.mxu1 %vm10459_vm1, %v10458_v14 }
 0x364   : > { %9036 = vmatmul.mubr.msk.f32.gmra.mrb[4].mxu1 %vm1926_vm3, %v3557_v21 }
 0x365   : > { %9038 = vmatprep.mubr.msk.f32.mxu1 %vm10459_vm1, %v10458_v14 }
 0x368   : > { %9039 = vmatmul.mubr.msk.f32.gmra.mrb[6].mxu1 %vm1926_vm3, %v3558_v22 }
 0x369   : > { %9041 = vmatprep.mubr.msk.f32.mxu1 %vm10459_vm1, %v10458_v14 }
 0x36c   : > { %9042 = vmatmul.mubr.msk.f32.gmra.mrb[8].mxu1 %vm1926_vm3, %v3559_v23 }
 0x36d   : > { %9044 = vmatprep.mubr.msk.f32.mxu1 %vm10459_vm1, %v10458_v14 }
 0x370   : > { %9045 = vmatmul.mubr.msk.f32.gmra.mrb[10].mxu1 %vm1926_vm3, %v3560_v24 }
 0x371   : > { %9047 = vmatprep.mubr.msk.f32.mxu1 %vm10459_vm1, %v10458_v14 }
 0x374   : > { %9048 = vmatmul.mubr.msk.f32.gmra.mrb[12].mxu1 %vm1926_vm3, %v3561_v25 }
 0x375   : > { %9050 = vmatprep.mubr.msk.f32.mxu1 %vm10459_vm1, %v10458_v14 }
 0x378   : > { %9051 = vmatmul.mubr.msk.f32.gmra.mrb[14].mxu1 %vm1926_vm3, %v3563_v26  ;;  %vm3748_vm3 = vcmask 129024  }
 0x379   : > { %9450 = vmatprep.mubr.msk.f32.mxu1 %vm10459_vm1, %v10458_v14 }
 0x41b   : > { %v3671_v30 = vpop.f32.mrb[16].mxu1 }
 0x41c   : > { %v11320_v31 = vadd.f32 %v3671_v30, %v11097_v6  ;;  %v9016_v32 = vpop.f32.mrb[17].mxu1 }
 0x41e   : > { %v3749_v33 = vsel %vm3748_vm3, %v11320_v31, 0.0 }
 0x41f   : > { %v3750_v34 = vrot.slane %v3749_v33, 4  ;;  %v3676_v35 = vpop.f32.mrb[18].mxu1 }
 0x420   : > { %v11325_v36 = vadd.f32 %v3676_v35, %v11102_v9  ;;  %v9019_v37 = vpop.f32.mrb[19].mxu1 }
 0x421   : > { %v3751_v38 = vadd.f32 %v3750_v34, %v3749_v33 }
 0x423   : > { %v3681_v39 = vpop.f32.mrb[20].mxu1  ;;  %v3752_v42 = vrot.slane %v3751_v38, 2 }
 0x424   : > { %v11328_v40 = vadd.f32 %v3681_v39, %v11107_v12  ;;  %v9022_v41 = vpop.f32.mrb[21].mxu1 }
 0x425   : > { %v3753_v47 = vadd.f32 %v3752_v42, %v3751_v38 }
 0x426   : > { %v3757_v6 = vsel %vm3748_vm3, %v11328_v40, 0.0 }
 0x427   : > { %v3758_v43 = vrot.slane %v3757_v6, 4  ;;  %v3686_v44 = vpop.f32.mrb[22].mxu1  ;;  %v3754_v51 = vrot.slane %v3753_v47, 1 }
 0x428   : > { %v11333_v45 = vadd.f32 %v3686_v44, %v11112_v17  ;;  %v9025_v46 = vpop.f32.mrb[23].mxu1 }
 0x429   : > { %v3759_v9 = vadd.f32 %v3758_v43, %v3757_v6  ;;  %v3755_v57 = vadd.f32 %v3754_v51, %v3753_v47 }
 0x42b   : > { %v3760_v48 = vrot.slane %v3759_v9, 2  ;;  %v3691_v49 = vpop.f32.mrb[24].mxu1 }
 0x42c   : > { %v11336_v50 = vadd.f32 %v3691_v49, %v11117_v20  ;;  %v9028_v12 = vpop.f32.mrb[25].mxu1 }
 0x42d   : > { %v3761_v52 = vadd.f32 %v3760_v48, %v3759_v9 }
 0x42e   : > { %v3765_v53 = vsel %vm3748_vm3, %v11336_v50, 0.0 }
 0x42f   : > { %v3762_v54 = vrot.slane %v3761_v52, 1  ;;  %v3766_v55 = vrot.slane %v3765_v53, 4  ;;  %v11340_v56 = vpop.f32.mrb[0].mxu1 }
 0x430   : > { %v9031_v17 = vpop.f32.mrb[1].mxu1 }
 0x431   : > { %v3763_v58 = vadd.f32 %v3762_v54, %v3761_v52  ;;  %v3767_v59 = vadd.f32 %v3766_v55, %v3765_v53 }
 0x433   : > { %v3764_v60 = vadd.f32 %v3763_v58, %v3755_v57  ;;  %v3768_v61 = vrot.slane %v3767_v59, 2  ;;  %v3701_v62 = vpop.f32.mrb[2].mxu1 }
 0x434   : > { %v3773_v20 = vsel %vm3748_vm3, %v3701_v62, 0.0  ;;  %v9034_v63 = vpop.f32.mrb[3].mxu1 }
 0x435   : > { %v3769_v0 = vadd.f32 %v3768_v61, %v3767_v59  ;;  %v3774_v1 = vrot.slane %v3773_v20, 4 }
 0x437   : > { %v3770_v2 = vrot.slane %v3769_v0, 1  ;;  %v3775_v3 = vadd.f32 %v3774_v1, %v3773_v20  ;;  %v11343_v4 = vpop.f32.mrb[4].mxu1 }
 0x438   : > { %v9037_v5 = vpop.f32.mrb[5].mxu1 }
 0x439   : > { %v3771_v7 = vadd.f32 %v3770_v2, %v3769_v0  ;;  %v3776_v8 = vrot.slane %v3775_v3, 2 }
 0x43b   : > { %v3772_v11 = vadd.f32 %v3771_v7, %v3764_v60  ;;  %v3777_v10 = vadd.f32 %v3776_v8, %v3775_v3  ;;  %v3711_v13 = vpop.f32.mrb[6].mxu1 }
 0x43c   : > { %v3781_v15 = vsel %vm3748_vm3, %v3711_v13, 0.0  ;;  %v9040_v18 = vpop.f32.mrb[7].mxu1 }
 0x43d   : > { %v3778_v19 = vrot.slane %v3777_v10, 1  ;;  %v3782_v21 = vrot.slane %v3781_v15, 4 }
 0x43f   : > { %v3779_v22 = vadd.f32 %v3778_v19, %v3777_v10  ;;  %v3783_v23 = vadd.f32 %v3782_v21, %v3781_v15  ;;  %v11346_v24 = vpop.f32.mrb[8].mxu1 }
 0x440   : > { %v9043_v25 = vpop.f32.mrb[9].mxu1 }
 0x441   : > { %v3780_v26 = vadd.f32 %v3779_v22, %v3772_v11  ;;  %v3784_v16 = vrot.slane %v3783_v23, 2 }
 0x443   : > { %v3785_v27 = vadd.f32 %v3784_v16, %v3783_v23  ;;  %v3721_v29 = vpop.f32.mrb[10].mxu1 }
 0x444   : > { %v3789_v30 = vsel %vm3748_vm3, %v3721_v29, 0.0  ;;  %v9046_v32 = vpop.f32.mrb[11].mxu1 }
 0x445   : > { %v3786_v33 = vrot.slane %v3785_v27, 1  ;;  %v3790_v34 = vrot.slane %v3789_v30, 4 }
 0x447   : > { %v3787_v35 = vadd.f32 %v3786_v33, %v3785_v27  ;;  %v3791_v37 = vadd.f32 %v3790_v34, %v3789_v30  ;;  %v11349_v38 = vpop.f32.mrb[12].mxu1 }
 0x448   : > { %v9049_v39 = vpop.f32.mrb[13].mxu1 }
 0x449   : > { %v3788_v41 = vadd.f32 %v3787_v35, %v3780_v26  ;;  %v3792_v42 = vrot.slane %v3791_v37, 2 }
 0x44b   : > { %v3793_v6 = vadd.f32 %v3792_v42, %v3791_v37  ;;  %v3731_v43 = vpop.f32.mrb[14].mxu1 }
 0x44c   : > { %v3797_v44 = vsel %vm3748_vm3, %v3731_v43, 0.0  ;;  %v9052_v46 = vpop.f32.mrb[15].mxu1 }
 0x44d   : > { %v3794_v47 = vrot.slane %v3793_v6, 1  ;;  %v3798_v9 = vrot.slane %v3797_v44, 4 }
 0x44f   : > { %v3795_v48 = vadd.f32 %v3794_v47, %v3793_v6  ;;  %v3799_v49 = vadd.f32 %v3798_v9, %v3797_v44 }
 0x451   : > { %v3796_v12 = vadd.f32 %v3795_v48, %v3788_v41  ;;  %v3800_v51 = vrot.slane %v3799_v49, 2 }
 0x453   : > { %v3801_v52 = vadd.f32 %v3800_v51, %v3799_v49 }
 0x455   : > { %v3802_v53 = vrot.slane %v3801_v52, 1 }
 0x457   : > { %v3803_v54 = vadd.f32 %v3802_v53, %v3801_v52 }
 0x459   : > { %v3804_v55 = vadd.f32 %v3803_v54, %v3796_v12 }
 0x45b   : > { %v11352_v17 = vmul.f32 0.020408163, %v3804_v55 }
 0x45d   : > { %v11356_v57 = vsub.f32 %v11320_v31, %v11352_v17  ;;  %v11360_v58 = vsub.f32 %v11328_v40, %v11352_v17  ;;  %v11364_v59 = vsub.f32 %v11336_v50, %v11352_v17  ;;  %v11367_v60 = vsub.f32 %v3701_v62, %v11352_v17 }
 0x45e   : > { %v11370_v61 = vsub.f32 %v3711_v13, %v11352_v17  ;;  %v11373_v20 = vsub.f32 %v3721_v29, %v11352_v17  ;;  %v11376_v31 = vsub.f32 %v3731_v43, %v11352_v17  ;;  %v3878_v40 = vsub.f32 %v11325_v36, %v11352_v17 }
 0x45f   : > { %v3808_v63 = vmul.f32 %v11356_v57, %v11356_v57  ;;  %v3818_v50 = vmul.f32 %v11360_v58, %v11360_v58  ;;  %v3828_v62 = vmul.f32 %v11364_v59, %v11364_v59  ;;  %v3838_v0 = vmul.f32 %v11367_v60, %v11367_v60 }
 0x460   : > { %v3848_v1 = vmul.f32 %v11370_v61, %v11370_v61  ;;  %v3858_v2 = vmul.f32 %v11373_v20, %v11373_v20  ;;  %v3868_v3 = vmul.f32 %v11376_v31, %v11376_v31  ;;  %v3879_v5 = vsub.f32 %v11333_v45, %v11352_v17 }
 0x461   : > { %v3809_v7 = vsel %vm3748_vm3, %v3808_v63, 0.0  ;;  %v3819_v8 = vsel %vm3748_vm3, %v3818_v50, 0.0  ;;  %v3829_v11 = vsel %vm3748_vm3, %v3828_v62, 0.0  ;;  %v3839_v10 = vsel %vm3748_vm3, %v3838_v0, 0.0 }
 0x462   : > { %v3810_v13 = vrot.slane %v3809_v7, 4  ;;  %v3820_v15 = vrot.slane %v3819_v8, 4  ;;  %v3830_v18 = vrot.slane %v3829_v11, 4  ;;  %v3840_v19 = vrot.slane %v3839_v10, 4 }
 0x463   : > { %v3849_v21 = vsel %vm3748_vm3, %v3848_v1, 0.0  ;;  %v3859_v22 = vsel %vm3748_vm3, %v3858_v2, 0.0  ;;  %v3869_v23 = vsel %vm3748_vm3, %v3868_v3, 0.0  ;;  %v3880_v25 = vsub.f32 %v11340_v56, %v11352_v17 }
 0x464   : > { %v3811_v26 = vadd.f32 %v3810_v13, %v3809_v7  ;;  %v3821_v16 = vadd.f32 %v3820_v15, %v3819_v8  ;;  %v3831_v27 = vadd.f32 %v3830_v18, %v3829_v11  ;;  %v3841_v29 = vadd.f32 %v3840_v19, %v3839_v10 }
 0x465   : > { %v3850_v30 = vrot.slane %v3849_v21, 4  ;;  %v3860_v32 = vrot.slane %v3859_v22, 4  ;;  %v3870_v33 = vrot.slane %v3869_v23, 4  ;;  %v3881_v34 = vsub.f32 %v11343_v4, %v11352_v17 }
 0x466   : > { %v3812_v35 = vrot.slane %v3811_v26, 2  ;;  %v3822_v37 = vrot.slane %v3821_v16, 2  ;;  %v3832_v39 = vrot.slane %v3831_v27, 2  ;;  %v3842_v41 = vrot.slane %v3841_v29, 2 }
 0x467   : > { %v3851_v42 = vadd.f32 %v3850_v30, %v3849_v21  ;;  %v3861_v6 = vadd.f32 %v3860_v32, %v3859_v22  ;;  %v3871_v43 = vadd.f32 %v3870_v33, %v3869_v23  ;;  %v3882_v44 = vsub.f32 %v11346_v24, %v11352_v17 }
 0x468   : > { %v3813_v46 = vadd.f32 %v3812_v35, %v3811_v26  ;;  %v3823_v47 = vadd.f32 %v3822_v37, %v3821_v16  ;;  %v3833_v9 = vadd.f32 %v3832_v39, %v3831_v27  ;;  %v3843_v48 = vadd.f32 %v3842_v41, %v3841_v29 }
 0x469   : > { %v3852_v49 = vrot.slane %v3851_v42, 2  ;;  %v3862_v12 = vrot.slane %v3861_v6, 2  ;;  %v3883_v51 = vsub.f32 %v11349_v38, %v11352_v17  ;;  %v3872_v55 = vrot.slane %v3871_v43, 2 }
 0x46a   : > { %v3814_v52 = vrot.slane %v3813_v46, 1  ;;  %v3824_v53 = vrot.slane %v3823_v47, 1  ;;  %v3834_v54 = vrot.slane %v3833_v9, 1  ;;  %v3844_v0 = vrot.slane %v3843_v48, 1 }
 0x46b   : > { %v3853_v63 = vadd.f32 %v3852_v49, %v3851_v42  ;;  %v3863_v1 = vadd.f32 %v3862_v12, %v3861_v6  ;;  %v3873_v8 = vadd.f32 %v3872_v55, %v3871_v43 }
 0x46c   : > { %v3815_v50 = vadd.f32 %v3814_v52, %v3813_v46  ;;  %v3825_v62 = vadd.f32 %v3824_v53, %v3823_v47  ;;  %v3835_v3 = vadd.f32 %v3834_v54, %v3833_v9  ;;  %v3845_v10 = vadd.f32 %v3844_v0, %v3843_v48 }
 0x46d   : > { %v3854_v7 = vrot.slane %v3853_v63, 1  ;;  %v3864_v13 = vrot.slane %v3863_v1, 1  ;;  %v3874_v19 = vrot.slane %v3873_v8, 1 }
 0x46e   : > { %v3826_v2 = vadd.f32 %v3825_v62, %v3815_v50 }
 0x46f   : > { %v3855_v18 = vadd.f32 %v3854_v7, %v3853_v63  ;;  %v3865_v22 = vadd.f32 %v3864_v13, %v3863_v1  ;;  %v3875_v26 = vadd.f32 %v3874_v19, %v3873_v8  ;;  %v3961_v63 = vld [vmem:[%s12433_s4 + $0x8] sm:$0xff]  ;;  %v7733_v7 = vld [vmem:[%s12433_s4 + $0x20] sm:$0xff] }
 0x470   : > { %v3836_v11 = vadd.f32 %v3835_v3, %v3826_v2  ;;  %v7734_v8 = vld [vmem:[%s12433_s4 + $0x28] sm:$0xff] }
 0x472   : > { %v3846_v15 = vadd.f32 %v3845_v10, %v3836_v11  ;;  %v9733_v10 = vpack.c.bf16 %v7734_v8, %v7733_v7  ;;  %v7782_v7 = vld [vmem:[%s12434_s5 + $0x20] sm:$0xff]  ;;  %v7783_v8 = vld [vmem:[%s12434_s5 + $0x28] sm:$0xff] }
 0x474   : > { %v3856_v21 = vadd.f32 %v3855_v18, %v3846_v15 }
 0x476   : > { %v3866_v23 = vadd.f32 %v3865_v22, %v3856_v21  ;;  %v7740_v21 = vld [vmem:[%s12433_s4 + $0x30] sm:$0xff]  ;;  %v7741_v22 = vld [vmem:[%s12433_s4 + $0x38] sm:$0xff] }
 0x478   : > { %v3876_v16 = vadd.f32 %v3875_v26, %v3866_v23  ;;  %v9736_v26 = vpack.c.bf16 %v7741_v22, %v7740_v21 }
 0x47a   : > { %v3877_v27 = vmul.f32 0.020408163, %v3876_v16 }
 0x47c   : > { %v3884_v29 = vadd.f32 1e-05, %v3877_v27 }
 0x47e   : > { %10436 = vrsqrt.f32 %v3884_v29 }
 0x488   : > { %v10437_v30 = vpop.eup %10436 }
 0x489   : > { %v3886_v32 = vmul.f32 %v10437_v30, %v11356_v57  ;;  %v3888_v33 = vmul.f32 %v10437_v30, %v11360_v58  ;;  %v3890_v35 = vmul.f32 %v10437_v30, %v11364_v59  ;;  %v3892_v37 = vmul.f32 %v10437_v30, %v11367_v60 }
 0x48a   : > { %v3894_v39 = vmul.f32 %v10437_v30, %v11370_v61  ;;  %v3896_v41 = vmul.f32 %v10437_v30, %v11373_v20  ;;  %v3898_v42 = vmul.f32 %v10437_v30, %v11376_v31  ;;  %v3887_v6 = vmul.f32 %v10437_v30, %v3878_v40 }
 0x48b   : > { %vm3899_vm8 = vcmp.ge.f32.partialorder %v3886_v32, 0.0  ;;  %vm3903_vm9 = vcmp.ge.f32.partialorder %v3890_v35, 0.0  ;;  %vm3905_vm10 = vcmp.ge.f32.partialorder %v3892_v37, 0.0  ;;  %v3912_v57 = vmul.f32 0.01, %v3886_v32 }
 0x48c   : > { %vm3907_vm11 = vcmp.ge.f32.partialorder %v3894_v39, 0.0  ;;  %vm3909_vm12 = vcmp.ge.f32.partialorder %v3896_v41, 0.0  ;;  %vm3911_vm13 = vcmp.ge.f32.partialorder %v3898_v42, 0.0  ;;  %v3914_v58 = vmul.f32 0.01, %v3888_v33 }
 0x48d   : > { %v3916_v59 = vmul.f32 0.01, %v3890_v35  ;;  %v3918_v60 = vmul.f32 0.01, %v3892_v37  ;;  %v3920_v43 = vmul.f32 0.01, %v3894_v39  ;;  %v3925_v61 = vsel %vm3899_vm8, %v3886_v32, %v3912_v57 }
 0x48e   : > { %v3922_v46 = vmul.f32 0.01, %v3896_v41  ;;  %v3924_v20 = vmul.f32 0.01, %v3898_v42  ;;  %3938 = vst.msk [vmem:[#allocation3] sm:$0xff] %vm452_vm0, %v3925_v61  ;;  %vm3900_vm14 = vcmp.ge.f32.partialorder %v3887_v6, 0.0  ;;  %v3889_v36 = vmul.f32 %v10437_v30, %v3879_v5 }
 0x48f   : > { %v3931_v31 = vsel %vm3905_vm10, %v3892_v37, %v3918_v60  ;;  %v3933_v40 = vsel %vm3907_vm11, %v3894_v39, %v3920_v43  ;;  %v3913_v47 = vmul.f32 0.01, %v3887_v6  ;;  %vm3901_vm15 = vcmp.ge.f32.partialorder %v3888_v33, 0.0  ;;  %v7747_v32 = vld [vmem:[%s12433_s4 + $0x40] sm:$0xff]  ;;  %v7754_v57 = vld [vmem:[%s12433_s4 + $0x50] sm:$0xff] }
 0x490   : > { %v3935_v9 = vsel %vm3909_vm12, %v3896_v41, %v3922_v46  ;;  %v3937_v48 = vsel %vm3911_vm13, %v3898_v42, %v3924_v20  ;;  %3946 = vst.msk [vmem:[#allocation3 + $0x40] sm:$0xff] %vm452_vm0, %v3933_v40  ;;  %3944 = vst.msk [vmem:[#allocation3 + $0x30] sm:$0xff] %vm452_vm0, %v3931_v31  ;;  %vm3902_vm2 = vcmp.ge.f32.partialorder %v3889_v36, 0.0  ;;  %v3915_v49 = vmul.f32 0.01, %v3889_v36  ;;  %v7762_v31 = vld [vmem:[%s12433_s4 + $0x68] sm:$0xff] }
 0x491   : > { %3948 = vst.msk [vmem:[#allocation3 + $0x50] sm:$0xff] %vm452_vm0, %v3935_v9  ;;  %v3926_v45 = vsel %vm3900_vm14, %v3887_v6, %v3913_v47  ;;  %v3927_v5 = vsel %vm3901_vm15, %v3888_v33, %v3914_v58  ;;  %v3891_v12 = vmul.f32 %v10437_v30, %v3880_v25  ;;  %v3929_v52 = vsel %vm3903_vm9, %v3890_v35, %v3916_v59  ;;  %v3960_v25 = vld [vmem:[%s12433_s4] sm:$0xff]  ;;  %v7748_v33 = vld [vmem:[%s12433_s4 + $0x48] sm:$0xff]  ;;  %v7755_v58 = vld [vmem:[%s12433_s4 + $0x58] sm:$0xff] }
 0x492   : > { %3950 = vst.msk [vmem:[#allocation3 + $0x60] sm:$0x7f] %vm3748_vm3, %v3937_v48  ;;  %v3928_v53 = vsel %vm3902_vm2, %v3889_v36, %v3915_v49  ;;  %v3893_v54 = vmul.f32 %v10437_v30, %v3881_v34  ;;  %v3895_v55 = vmul.f32 %v10437_v30, %v3882_v44  ;;  %v3897_v56 = vmul.f32 %v10437_v30, %v3883_v51  ;;  %v7761_v36 = vld [vmem:[%s12433_s4 + $0x60] sm:$0xff] }
 0x493   : > { %3939 = vst.msk [vmem:[#allocation3 + $0x8] sm:$0xff] %vm452_vm0, %v3926_v45  ;;  %3940 = vst.msk [vmem:[#allocation3 + $0x10] sm:$0xff] %vm452_vm0, %v3927_v5  ;;  %vm3904_vm4 = vcmp.ge.f32.partialorder %v3891_v12, 0.0  ;;  %v3917_v4 = vmul.f32 0.01, %v3891_v12  ;;  %v9730_v50 = vpack.c.bf16 %v3961_v63, %v3960_v25  ;;  %v9739_v37 = vpack.c.bf16 %v7748_v33, %v7747_v32  ;;  %v7768_v5 = vld [vmem:[%s12433_s4 + $0x70] sm:$0xff] }
 0x494   : > { %3942 = vst.msk [vmem:[#allocation3 + $0x20] sm:$0xff] %vm452_vm0, %v3929_v52  ;;  %3941 = vst.msk [vmem:[#allocation3 + $0x18] sm:$0xff] %vm452_vm0, %v3928_v53  ;;  %vm3906_vm5 = vcmp.ge.f32.partialorder %v3893_v54, 0.0  ;;  %v3919_v34 = vmul.f32 0.01, %v3893_v54  ;;  %vm3908_vm6 = vcmp.ge.f32.partialorder %v3895_v55, 0.0  ;;  %v9742_v60 = vpack.c.bf16 %v7755_v58, %v7754_v57 }
 0x495   : > { %v3921_v24 = vmul.f32 0.01, %v3895_v55  ;;  %v3930_v44 = vsel %vm3904_vm4, %v3891_v12, %v3917_v4  ;;  %vm3910_vm7 = vcmp.ge.f32.partialorder %v3897_v56, 0.0  ;;  %v3923_v38 = vmul.f32 0.01, %v3897_v56  ;;  %v7769_v12 = vld [vmem:[%s12433_s4 + $0x78] sm:$0xff] }
 0x496   : > { %3943 = vst.msk [vmem:[#allocation3 + $0x28] sm:$0xff] %vm452_vm0, %v3930_v44  ;;  %v3932_v17 = vsel %vm3906_vm5, %v3893_v54, %v3919_v34  ;;  %v9745_v47 = vpack.c.bf16 %v7762_v31, %v7761_v36  ;;  %v9748_v53 = vpack.c.bf16 %v7769_v12, %v7768_v5  ;;  %v7775_v63 = vld [vmem:[%s12433_s4 + $0x80] sm:$0xff]  ;;  %v7776_v4 = vld [vmem:[%s12433_s4 + $0x88] sm:$0xff]  ;;  %vm5022_vm3 = vcmask 261120  }
 0x497   : > { %v3934_v51 = vsel %vm3908_vm6, %v3895_v55, %v3921_v24  ;;  %3945 = vst.msk [vmem:[#allocation3 + $0x38] sm:$0xff] %vm452_vm0, %v3932_v17  ;;  %v3936_v62 = vsel %vm3910_vm7, %v3897_v56, %v3923_v38  ;;  %v3971_v11 = vld [vmem:[#allocation3 + $0x41] ss:$2 sm:$0x7]  ;;  %v9751_v24 = vpack.c.bf16 %v7776_v4, %v7775_v63  ;;  %vm6193_vm2 = vcmask 523264  }
 0x498   : > { %3947 = vst.msk [vmem:[#allocation3 + $0x48] sm:$0xff] %vm452_vm0, %v3934_v51  ;;  %3949 = vst.msk [vmem:[#allocation3 + $0x58] sm:$0xff] %vm452_vm0, %v3936_v62  ;;  %v3959_v23 = vld [vmem:[#allocation3 + $0x40] ss:$2 sm:$0x7]  ;;  %vm6203_vm4 = vcmask 518144  }
 0x499   : > { %v4194_v35 = vld [vmem:[#allocation3 + $0x42] ss:$2 sm:$0x7]  ;;  %v4313_v59 = vld [vmem:[#allocation3 + $0x50] ss:$2 sm:$0x7] }
 0x49a   : > { %v3963_v0 = vld [vmem:[#allocation3 + $0x1] ss:$2 sm:$0xff]  ;;  %v3951_v13 = vld [vmem:[#allocation3] ss:$2 sm:$0xff]  ;;  %5025 = vst.msk [vmem:[#allocation4 + $0x10] sm:$0xff] %vm5022_vm3, %v10458_v14  ;;  %5026 = vst.msk [vmem:[#allocation4 + $0x18] sm:$0xff] %vm5022_vm3, %v10458_v14 }
 0x49b   : > { %9058 = vmatmul.mubr.msk.f32.vlgmr.msra.gmra.mrb[40].mxu0 %vm452_vm0, %v3963_v0  ;;  %v3965_v1 = vld [vmem:[#allocation3 + $0x11] ss:$2 sm:$0xff]  ;;  %v3953_v15 = vld [vmem:[#allocation3 + $0x10] ss:$2 sm:$0xff]  ;;  %5027 = vst.msk [vmem:[#allocation4 + $0x20] sm:$0xff] %vm5022_vm3, %v10458_v14  ;;  %5028 = vst.msk [vmem:[#allocation4 + $0x28] sm:$0xff] %vm5022_vm3, %v10458_v14 }
 0x49c   : > { %9731 = vmatpush3.bf16.msra.mxu0 %v9730_v50  ;;  %9060 = vmatprep.mubr.msk.f32.mxu0 %vm10459_vm1, %v10458_v14  ;;  %v4186_v16 = vld [vmem:[#allocation3 + $0x2] ss:$2 sm:$0xff]  ;;  %v4188_v27 = vld [vmem:[#allocation3 + $0x12] ss:$2 sm:$0xff]  ;;  %v4427_v43 = vld [vmem:[#allocation3 + $0x11] ss:$2 sm:$0xff] }
 0x49d   : > { %9732 = vmatprep.subr.bf16.mxu0 %v10460_v28  ;;  %v3967_v2 = vld [vmem:[#allocation3 + $0x21] ss:$2 sm:$0xff]  ;;  %v3955_v18 = vld [vmem:[#allocation3 + $0x20] ss:$2 sm:$0xff]  ;;  %v4308_v39 = vld [vmem:[#allocation3 + $0x10] ss:$2 sm:$0xff] }
 0x49e   : > { %v3969_v3 = vld [vmem:[#allocation3 + $0x31] ss:$2 sm:$0xff]  ;;  %v3957_v19 = vld [vmem:[#allocation3 + $0x30] ss:$2 sm:$0xff]  ;;  %v4309_v41 = vld [vmem:[#allocation3 + $0x20] ss:$2 sm:$0xff] }
 0x49f   : > { %9061 = vmatmul.mubr.msk.f32.gmra.mrb[42].mxu0 %vm452_vm0, %v3965_v1  ;;  %v4190_v29 = vld [vmem:[#allocation3 + $0x22] ss:$2 sm:$0xff]  ;;  %v4192_v30 = vld [vmem:[#allocation3 + $0x32] ss:$2 sm:$0xff]  ;;  %v4428_v61 = vld [vmem:[#allocation3 + $0x21] ss:$2 sm:$0xff] }
 0x4a0   : > { %9063 = vmatprep.mubr.msk.f32.mxu0 %vm10459_vm1, %v10458_v14  ;;  %v4310_v42 = vld [vmem:[#allocation3 + $0x30] ss:$2 sm:$0xff]  ;;  %v4311_v6 = vld [vmem:[#allocation3 + $0x40] ss:$2 sm:$0xff]  ;;  %v4429_v46 = vld [vmem:[#allocation3 + $0x31] ss:$2 sm:$0xff] }
 0x4a1   : > { %v4430_v20 = vld [vmem:[#allocation3 + $0x41] ss:$2 sm:$0xff]  ;;  %v4432_v40 = vld [vmem:[#allocation3 + $0x51] ss:$2 sm:$0x7]  ;;  %5029 = vst.msk [vmem:[#allocation4 + $0x30] sm:$0xff] %vm5022_vm3, %v10458_v14 }
 0x4a2   : > { %v4546_v9 = vld [vmem:[#allocation3 + $0x12] ss:$2 sm:$0xff]  ;;  %v4547_v48 = vld [vmem:[#allocation3 + $0x22] ss:$2 sm:$0xff]  ;;  %v4784_v44 = vld [vmem:[#allocation3 + $0x21] ss:$2 sm:$0xff] }
 0x4a3   : > { %9064 = vmatmul.mubr.msk.f32.gmra.mrb[44].mxu0 %vm452_vm0, %v3967_v2  ;;  %v4548_v49 = vld [vmem:[#allocation3 + $0x32] ss:$2 sm:$0xff]  ;;  %v4549_v45 = vld [vmem:[#allocation3 + $0x42] ss:$2 sm:$0xff]  ;;  %v4785_v38 = vld [vmem:[#allocation3 + $0x31] ss:$2 sm:$0xff] }
 0x4a4   : > { %9066 = vmatprep.mubr.msk.f32.mxu0 %vm10459_vm1, %v10458_v14  ;;  %v4551_v52 = vld [vmem:[#allocation3 + $0x52] ss:$2 sm:$0x7]  ;;  %v4665_v54 = vld [vmem:[#allocation3 + $0x20] ss:$2 sm:$0xff]  ;;  %5023 = vst.msk [vmem:[#allocation4] sm:$0xff] %vm5022_vm3, %v10458_v14 }
 0x4a5   : > { %v4666_v55 = vld [vmem:[#allocation3 + $0x30] ss:$2 sm:$0xff]  ;;  %v4667_v56 = vld [vmem:[#allocation3 + $0x40] ss:$2 sm:$0xff]  ;;  %v4786_v17 = vld [vmem:[#allocation3 + $0x41] ss:$2 sm:$0xff] }
 0x4a6   : > { %v4668_v25 = vld [vmem:[#allocation3 + $0x50] ss:$2 sm:$0xff]  ;;  %v4670_v34 = vld [vmem:[#allocation3 + $0x60] ss:$2 sm:$0x7]  ;;  %5024 = vst.msk [vmem:[#allocation4 + $0x8] sm:$0xff] %vm5022_vm3, %v10458_v14 }
 0x4a7   : > { %9067 = vmatmul.mubr.msk.f32.gmra.mrb[46].mxu0 %vm452_vm0, %v3969_v3  ;;  %v4787_v51 = vld [vmem:[#allocation3 + $0x51] ss:$2 sm:$0xff]  ;;  %v4789_v50 = vld [vmem:[#allocation3 + $0x61] ss:$2 sm:$0x7]  ;;  %5030 = vst.msk [vmem:[#allocation4 + $0x38] sm:$0xff] %vm5022_vm3, %v10458_v14 }
 0x4a8   : > { %9069 = vmatprep.mubr.msk.f32.mxu0 %vm10459_vm1, %v10458_v14  ;;  %v4903_v62 = vld [vmem:[#allocation3 + $0x22] ss:$2 sm:$0xff]  ;;  %v4904_v0 = vld [vmem:[#allocation3 + $0x32] ss:$2 sm:$0xff]  ;;  %5031 = vst.msk [vmem:[#allocation4 + $0x40] sm:$0xff] %vm5022_vm3, %v10458_v14 }
 0x4a9   : > { %v4905_v1 = vld [vmem:[#allocation3 + $0x42] ss:$2 sm:$0xff]  ;;  %v4906_v2 = vld [vmem:[#allocation3 + $0x52] ss:$2 sm:$0xff]  ;;  %6199 = vst.msk [vmem:[#allocation5 + $0x28] sm:$0xff] %vm6193_vm2, %v10458_v14  ;;  %6200 = vst.msk [vmem:[#allocation5 + $0x30] sm:$0xff] %vm6193_vm2, %v10458_v14 }
 0x4aa   : > { %v4908_v3 = vld [vmem:[#allocation3 + $0x62] ss:$2 sm:$0x7]  ;;  %6194 = vst.msk [vmem:[#allocation5] sm:$0xff] %vm6193_vm2, %v10458_v14  ;;  %6195 = vst.msk [vmem:[#allocation5 + $0x8] sm:$0xff] %vm6193_vm2, %v10458_v14 }
 0x4ab   : > { %9070 = vmatmul.mubr.msk.f32.gmra.mrb[48].mxu0 %vm452_vm0, %v3971_v11  ;;  %v7784_v11 = vld [vmem:[%s12434_s5 + $0x30] sm:$0xff]  ;;  %6196 = vst.msk [vmem:[#allocation5 + $0x10] sm:$0xff] %vm6193_vm2, %v10458_v14  ;;  %6197 = vst.msk [vmem:[#allocation5 + $0x18] sm:$0xff] %vm6193_vm2, %v10458_v14 }
 0x4ac   : > { %9076 = vmatprep.mubr.msk.f32.mxu0 %vm10459_vm1, %v10458_v14  ;;  %6198 = vst.msk [vmem:[#allocation5 + $0x20] sm:$0xff] %vm6193_vm2, %v10458_v14  ;;  %6201 = vst.msk [vmem:[#allocation5 + $0x38] sm:$0xff] %vm6193_vm2, %v10458_v14 }
 0x4ad   : > { %v5133_v21 = vld [vmem:[#allocation4 + $0x1] sm:$0xff]  ;;  %6202 = vst.msk [vmem:[#allocation5 + $0x40] sm:$0xff] %vm6193_vm2, %v10458_v14 }
 0x4af   : > { %9077 = vmatmul.mubr.msk.f32.vlgmr.msra.gmra.mrb[40].mxu0 %vm452_vm0, %v3951_v13  ;;  %v7785_v13 = vld [vmem:[%s12434_s5 + $0x38] sm:$0xff] }
 0x4b0   : > { %9734 = vmatpush3.bf16.msra.mxu0 %v9733_v10  ;;  %9079 = vmatprep.mubr.msk.f32.mxu0 %vm10459_vm1, %v10458_v14  ;;  %v9754_v10 = vpack.c.bf16 %v7783_v8, %v7782_v7 }
 0x4b1   : > { %9735 = vmatprep.subr.bf16.mxu0 %v10460_v28 }
 0x4b3   : > { %9080 = vmatmul.mubr.msk.f32.gmra.mrb[42].mxu0 %vm452_vm0, %v3953_v15  ;;  %v9757_v15 = vpack.c.bf16 %v7785_v13, %v7784_v11 }
 0x4b4   : > { %9082 = vmatprep.mubr.msk.f32.mxu0 %vm10459_vm1, %v10458_v14 }
 0x4b7   : > { %9083 = vmatmul.mubr.msk.f32.gmra.mrb[44].mxu0 %vm452_vm0, %v3955_v18  ;;  %v5129_v18 = vld [vmem:[%s12434_s5] sm:$0xff] }
 0x4b8   : > { %9085 = vmatprep.mubr.msk.f32.mxu0 %vm10459_vm1, %v10458_v14 }
 0x4bb   : > { %9086 = vmatmul.mubr.msk.f32.gmra.mrb[46].mxu0 %vm452_vm0, %v3957_v19  ;;  %v5130_v19 = vld [vmem:[%s12434_s5 + $0x8] sm:$0xff] }
 0x4bc   : > { %9088 = vmatprep.mubr.msk.f32.mxu0 %vm10459_vm1, %v10458_v14  ;;  %v9760_v22 = vpack.c.bf16 %v5130_v19, %v5129_v18 }
 0x4bf   : > { %9089 = vmatmul.mubr.msk.f32.gmra.mrb[48].mxu0 %vm452_vm0, %v3959_v23  ;;  %v5131_v23 = vld [vmem:[%s12434_s5 + $0x10] sm:$0xff] }
 0x4c0   : > { %9095 = vmatprep.mubr.msk.f32.mxu0 %vm10459_vm1, %v10458_v14 }
 0x4c3   : > { %9096 = vmatmul.mubr.msk.f32.vlgmr.msra.gmra.mrb[40].mxu0 %vm452_vm0, %v4186_v16  ;;  %v5134_v16 = vld [vmem:[#allocation4 + $0x9] sm:$0xff] }
 0x4c4   : > { %9737 = vmatpush3.bf16.msra.mxu0 %v9736_v26  ;;  %9098 = vmatprep.mubr.msk.f32.mxu0 %vm10459_vm1, %v10458_v14  ;;  %v5132_v26 = vld [vmem:[%s12434_s5 + $0x18] sm:$0xff] }
 0x4c5   : > { %9738 = vmatprep.subr.bf16.mxu0 %v10460_v28 }
 0x4c7   : > { %9099 = vmatmul.mubr.msk.f32.gmra.mrb[42].mxu0 %vm452_vm0, %v4188_v27  ;;  %v9763_v27 = vpack.c.bf16 %v5132_v26, %v5131_v23 }
 0x4c8   : > { %9101 = vmatprep.mubr.msk.f32.mxu0 %vm10459_vm1, %v10458_v14 }
 0x4cb   : > { %9102 = vmatmul.mubr.msk.f32.gmra.mrb[44].mxu0 %vm452_vm0, %v4190_v29 }
 0x4cc   : > { %9104 = vmatprep.mubr.msk.f32.mxu0 %vm10459_vm1, %v10458_v14 }
 0x4cf   : > { %9105 = vmatmul.mubr.msk.f32.gmra.mrb[46].mxu0 %vm452_vm0, %v4192_v30 }
 0x4d0   : > { %9107 = vmatprep.mubr.msk.f32.mxu0 %vm10459_vm1, %v10458_v14 }
 0x4d3   : > { %9108 = vmatmul.mubr.msk.f32.gmra.mrb[48].mxu0 %vm452_vm0, %v4194_v35 }
 0x4d4   : > { %9114 = vmatprep.mubr.msk.f32.mxu0 %vm10459_vm1, %v10458_v14 }
 0x4d7   : > { %9115 = vmatmul.mubr.msk.f32.vlgmr.msra.gmra.mrb[40].mxu0 %vm452_vm0, %v4308_v39 }
 0x4d8   : > { %9740 = vmatpush3.bf16.msra.mxu0 %v9739_v37  ;;  %9117 = vmatprep.mubr.msk.f32.mxu0 %vm10459_vm1, %v10458_v14 }
 0x4d9   : > { %9741 = vmatprep.subr.bf16.mxu0 %v10460_v28 }
 0x4db   : > { %9118 = vmatmul.mubr.msk.f32.gmra.mrb[42].mxu0 %vm452_vm0, %v4309_v41 }
 0x4dc   : > { %9120 = vmatprep.mubr.msk.f32.mxu0 %vm10459_vm1, %v10458_v14 }
 0x4df   : > { %9121 = vmatmul.mubr.msk.f32.gmra.mrb[44].mxu0 %vm452_vm0, %v4310_v42 }
 0x4e0   : > { %9123 = vmatprep.mubr.msk.f32.mxu0 %vm10459_vm1, %v10458_v14 }
 0x4e3   : > { %9124 = vmatmul.mubr.msk.f32.gmra.mrb[46].mxu0 %vm452_vm0, %v4311_v6 }
 0x4e4   : > { %9126 = vmatprep.mubr.msk.f32.mxu0 %vm10459_vm1, %v10458_v14 }
 0x4e7   : > { %9127 = vmatmul.mubr.msk.f32.gmra.mrb[48].mxu0 %vm452_vm0, %v4313_v59 }
 0x4e8   : > { %9133 = vmatprep.mubr.msk.f32.mxu0 %vm10459_vm1, %v10458_v14 }
 0x4eb   : > { %9134 = vmatmul.mubr.msk.f32.vlgmr.msra.gmra.mrb[40].mxu0 %vm452_vm0, %v4427_v43 }
 0x4ec   : > { %9743 = vmatpush3.bf16.msra.mxu0 %v9742_v60  ;;  %9136 = vmatprep.mubr.msk.f32.mxu0 %vm10459_vm1, %v10458_v14 }
 0x4ed   : > { %9744 = vmatprep.subr.bf16.mxu0 %v10460_v28 }
 0x4ef   : > { %9137 = vmatmul.mubr.msk.f32.gmra.mrb[42].mxu0 %vm452_vm0, %v4428_v61 }
 0x4f0   : > { %9139 = vmatprep.mubr.msk.f32.mxu0 %vm10459_vm1, %v10458_v14 }
 0x4f3   : > { %9140 = vmatmul.mubr.msk.f32.gmra.mrb[44].mxu0 %vm452_vm0, %v4429_v46 }
 0x4f4   : > { %9142 = vmatprep.mubr.msk.f32.mxu0 %vm10459_vm1, %v10458_v14 }
 0x4f7   : > { %9143 = vmatmul.mubr.msk.f32.gmra.mrb[46].mxu0 %vm452_vm0, %v4430_v20 }
 0x4f8   : > { %9145 = vmatprep.mubr.msk.f32.mxu0 %vm10459_vm1, %v10458_v14 }
 0x4fb   : > { %9146 = vmatmul.mubr.msk.f32.gmra.mrb[48].mxu0 %vm452_vm0, %v4432_v40 }
 0x4fc   : > { %9152 = vmatprep.mubr.msk.f32.mxu0 %vm10459_vm1, %v10458_v14 }
 0x4ff   : > { %9153 = vmatmul.mubr.msk.f32.vlgmr.msra.gmra.mrb[40].mxu0 %vm452_vm0, %v4546_v9 }
 0x500   : > { %9746 = vmatpush3.bf16.msra.mxu0 %v9745_v47  ;;  %9155 = vmatprep.mubr.msk.f32.mxu0 %vm10459_vm1, %v10458_v14 }
 0x501   : > { %9747 = vmatprep.subr.bf16.mxu0 %v10460_v28 }
 0x503   : > { %9156 = vmatmul.mubr.msk.f32.gmra.mrb[42].mxu0 %vm452_vm0, %v4547_v48 }
 0x504   : > { %9158 = vmatprep.mubr.msk.f32.mxu0 %vm10459_vm1, %v10458_v14 }
 0x507   : > { %9159 = vmatmul.mubr.msk.f32.gmra.mrb[44].mxu0 %vm452_vm0, %v4548_v49 }
 0x508   : > { %9161 = vmatprep.mubr.msk.f32.mxu0 %vm10459_vm1, %v10458_v14 }
 0x50b   : > { %9162 = vmatmul.mubr.msk.f32.gmra.mrb[46].mxu0 %vm452_vm0, %v4549_v45 }
 0x50c   : > { %9164 = vmatprep.mubr.msk.f32.mxu0 %vm10459_vm1, %v10458_v14 }
 0x50f   : > { %9165 = vmatmul.mubr.msk.f32.gmra.mrb[48].mxu0 %vm452_vm0, %v4551_v52 }
 0x510   : > { %9171 = vmatprep.mubr.msk.f32.mxu0 %vm10459_vm1, %v10458_v14 }
 0x513   : > { %9172 = vmatmul.mubr.msk.f32.vlgmr.msra.gmra.mrb[40].mxu0 %vm452_vm0, %v4665_v54 }
 0x514   : > { %9749 = vmatpush3.bf16.msra.mxu0 %v9748_v53  ;;  %9174 = vmatprep.mubr.msk.f32.mxu0 %vm10459_vm1, %v10458_v14 }
 0x515   : > { %9750 = vmatprep.subr.bf16.mxu0 %v10460_v28 }
 0x517   : > { %9175 = vmatmul.mubr.msk.f32.gmra.mrb[42].mxu0 %vm452_vm0, %v4666_v55 }
 0x518   : > { %9177 = vmatprep.mubr.msk.f32.mxu0 %vm10459_vm1, %v10458_v14 }
 0x51b   : > { %9178 = vmatmul.mubr.msk.f32.gmra.mrb[44].mxu0 %vm452_vm0, %v4667_v56 }
 0x51c   : > { %9180 = vmatprep.mubr.msk.f32.mxu0 %vm10459_vm1, %v10458_v14 }
 0x51f   : > { %9181 = vmatmul.mubr.msk.f32.gmra.mrb[46].mxu0 %vm452_vm0, %v4668_v25 }
 0x520   : > { %9183 = vmatprep.mubr.msk.f32.mxu0 %vm10459_vm1, %v10458_v14 }
 0x523   : > { %9184 = vmatmul.mubr.msk.f32.gmra.mrb[48].mxu0 %vm452_vm0, %v4670_v34 }
 0x524   : > { %9190 = vmatprep.mubr.msk.f32.mxu0 %vm10459_vm1, %v10458_v14 }
 0x527   : > { %9191 = vmatmul.mubr.msk.f32.vlgmr.msra.gmra.mrb[40].mxu0 %vm452_vm0, %v4784_v44 }
 0x528   : > { %9752 = vmatpush3.bf16.msra.mxu0 %v9751_v24  ;;  %9193 = vmatprep.mubr.msk.f32.mxu0 %vm10459_vm1, %v10458_v14 }
 0x529   : > { %9753 = vmatprep.subr.bf16.mxu0 %v10460_v28 }
 0x52b   : > { %9194 = vmatmul.mubr.msk.f32.gmra.mrb[42].mxu0 %vm452_vm0, %v4785_v38 }
 0x52c   : > { %9196 = vmatprep.mubr.msk.f32.mxu0 %vm10459_vm1, %v10458_v14 }
 0x52f   : > { %9197 = vmatmul.mubr.msk.f32.gmra.mrb[44].mxu0 %vm452_vm0, %v4786_v17 }
 0x530   : > { %9199 = vmatprep.mubr.msk.f32.mxu0 %vm10459_vm1, %v10458_v14 }
 0x533   : > { %9200 = vmatmul.mubr.msk.f32.gmra.mrb[46].mxu0 %vm452_vm0, %v4787_v51 }
 0x534   : > { %9202 = vmatprep.mubr.msk.f32.mxu0 %vm10459_vm1, %v10458_v14 }
 0x537   : > { %9203 = vmatmul.mubr.msk.f32.gmra.mrb[48].mxu0 %vm452_vm0, %v4789_v50 }
 0x538   : > { %9209 = vmatprep.mubr.msk.f32.mxu0 %vm10459_vm1, %v10458_v14 }
 0x53b   : > { %9210 = vmatmul.mubr.msk.f32.vlgmr.msra.gmra.mrb[40].mxu0 %vm452_vm0, %v4903_v62 }
 0x53c   : > { %9212 = vmatprep.mubr.msk.f32.mxu0 %vm10459_vm1, %v10458_v14  ;;  %9755 = vmatpush3.bf16.msra.mxu0 %v9754_v10 }
 0x53d   : > { %9756 = vmatprep.subr.bf16.mxu0 %v10460_v28 }
 0x53f   : > { %9213 = vmatmul.mubr.msk.f32.gmra.mrb[42].mxu0 %vm452_vm0, %v4904_v0 }
 0x540   : > { %9215 = vmatprep.mubr.msk.f32.mxu0 %vm10459_vm1, %v10458_v14  ;;  %9758 = vmatpush3.bf16.msra.mxu0 %v9757_v15 }
 0x541   : > { %9759 = vmatprep.subr.bf16.mxu0 %v10460_v28 }
 0x543   : > { %9216 = vmatmul.mubr.msk.f32.gmra.mrb[44].mxu0 %vm452_vm0, %v4905_v1 }
 0x544   : > { %9218 = vmatprep.mubr.msk.f32.mxu0 %vm10459_vm1, %v10458_v14 }
 0x547   : > { %9219 = vmatmul.mubr.msk.f32.gmra.mrb[46].mxu0 %vm452_vm0, %v4906_v2 }
 0x548   : > { %9221 = vmatprep.mubr.msk.f32.mxu0 %vm10459_vm1, %v10458_v14 }
 0x54b   : > { %9222 = vmatmul.mubr.msk.f32.gmra.mrb[48].mxu0 %vm452_vm0, %v4908_v3  ;;  %vm5032_vm0 = vcmask 256000  }
 0x54c   : > { %9232 = vmatprep.mubr.msk.f32.mxu0 %vm10459_vm1, %v10458_v14 }
 0x54f   : > { %9233 = vmatmul.mubr.msk.f32.vlgmr.msra.gmra.mrb[50].mxu0 %vm5022_vm3, %v5133_v21 }
 0x550   : > { %9761 = vmatpush3.bf16.msra.mxu0 %v9760_v22  ;;  %9235 = vmatprep.mubr.msk.f32.mxu0 %vm10459_vm1, %v10458_v14 }
 0x551   : > { %9762 = vmatprep.subr.bf16.mxu0 %v10460_v28 }
 0x553   : > { %9236 = vmatmul.mubr.msk.f32.gmra.mrb[52].mxu0 %vm5022_vm3, %v5134_v16 }
 0x554   : > { %9238 = vmatprep.mubr.msk.f32.mxu0 %vm10459_vm1, %v10458_v14  ;;  %9764 = vmatpush3.bf16.msra.mxu0 %v9763_v27 }
 0x555   : > { %9765 = vmatprep.subr.bf16.mxu0 %v10460_v28 }
 0x60e   : > { %v4993_v29 = vpop.f32.mrb[40].mxu0 }
 0x60f   : > { %v5033_v30 = vsel %vm5032_vm0, %v4993_v29, 0.0  ;;  %v9211_v32 = vpop.f32.mrb[41].mxu0 }
 0x610   : > { %v5034_v33 = vrot.slane %v5033_v30, 4  ;;  %v306_v32 = vlaneseq }
 0x612   : > { %v5035_v35 = vadd.f32 %v5034_v33, %v5033_v30  ;;  %v11696_v37 = vpop.f32.mrb[42].mxu0 }
 0x613   : > { %v9214_v39 = vpop.f32.mrb[43].mxu0 }
 0x614   : > { %v5036_v41 = vrot.slane %v5035_v35, 2 }
 0x616   : > { %v5003_v42 = vpop.f32.mrb[44].mxu0  ;;  %v5037_v59 = vadd.f32 %v5036_v41, %v5035_v35 }
 0x617   : > { %v5041_v6 = vsel %vm5032_vm0, %v5003_v42, 0.0  ;;  %v9217_v57 = vpop.f32.mrb[45].mxu0 }
 0x618   : > { %v5042_v58 = vrot.slane %v5041_v6, 4  ;;  %v5038_v20 = vrot.slane %v5037_v59, 1 }
 0x61a   : > { %v5043_v60 = vadd.f32 %v5042_v58, %v5041_v6  ;;  %v11699_v43 = vpop.f32.mrb[46].mxu0  ;;  %v5039_v49 = vadd.f32 %v5038_v20, %v5037_v59 }
 0x61b   : > { %v9220_v61 = vpop.f32.mrb[47].mxu0 }
 0x61c   : > { %v5044_v46 = vrot.slane %v5043_v60, 2 }
 0x61e   : > { %v5045_v36 = vadd.f32 %v5044_v46, %v5043_v60  ;;  %v5013_v31 = vpop.f32.mrb[48].mxu0 }
 0x61f   : > { %v5049_v40 = vsel %vm5032_vm0, %v5013_v31, 0.0  ;;  %v9223_v47 = vpop.f32.mrb[49].mxu0 }
 0x620   : > { %v5046_v9 = vrot.slane %v5045_v36, 1  ;;  %v5050_v48 = vrot.slane %v5049_v40, 4 }
 0x622   : > { %v5047_v45 = vadd.f32 %v5046_v9, %v5045_v36  ;;  %v5051_v5 = vadd.f32 %v5050_v48, %v5049_v40 }
 0x624   : > { %v5048_v12 = vadd.f32 %v5047_v45, %v5039_v49  ;;  %v5052_v52 = vrot.slane %v5051_v5, 2 }
 0x626   : > { %v5053_v53 = vadd.f32 %v5052_v52, %v5051_v5 }
 0x628   : > { %v5054_v54 = vrot.slane %v5053_v53, 1 }
 0x62a   : > { %v5055_v55 = vadd.f32 %v5054_v54, %v5053_v53 }
 0x62c   : > { %v5056_v56 = vadd.f32 %v5055_v55, %v5048_v12 }
 0x62e   : > { %v5058_v25 = vmul.f32 0.11111111, %v5056_v56 }
 0x630   : > { %v5059_v63 = vsub.f32 %v4993_v29, %v5058_v25  ;;  %v5069_v4 = vsub.f32 %v5003_v42, %v5058_v25  ;;  %v5079_v34 = vsub.f32 %v5013_v31, %v5058_v25  ;;  %v5090_v24 = vsub.f32 %v11696_v37, %v5058_v25 }
 0x631   : > { %v5091_v44 = vsub.f32 %v11699_v43, %v5058_v25  ;;  %v307_v37 = vshrl.u32 %v306_v32, 7  ;;  %v7816_v32 = vld [vmem:[%s12434_s5 + $0x90] sm:$0xff] }
 0x632   : > { %v5060_v38 = vmul.f32 %v5059_v63, %v5059_v63  ;;  %v5070_v17 = vmul.f32 %v5069_v4, %v5069_v4  ;;  %v5080_v51 = vmul.f32 %v5079_v34, %v5079_v34 }
 0x633   : > { %v309_v41 = vadd.s32 16, %v307_v37  ;;  %v311_v42 = vadd.s32 32, %v307_v37  ;;  %v316_v6 = vand.u32 15, %v307_v37 }
 0x634   : > { %v5061_v50 = vsel %vm5032_vm0, %v5060_v38, 0.0  ;;  %v5071_v62 = vsel %vm5032_vm0, %v5070_v17, 0.0  ;;  %v5081_v0 = vsel %vm5032_vm0, %v5080_v51, 0.0  ;;  %v7797_v38 = vld [vmem:[%s12434_s5 + $0x48] sm:$0xff]  ;;  %v5124_v51 = vld [vmem:[#allocation4] sm:$0xff] }
 0x635   : > { %v5062_v1 = vrot.slane %v5061_v50, 4  ;;  %v5072_v2 = vrot.slane %v5071_v62, 4  ;;  %v5082_v3 = vrot.slane %v5081_v0, 4  ;;  %v330_v57 = vand.u32 15, %v309_v41  ;;  %v7823_v41 = vld [vmem:[%s12434_s5 + $0xa0] sm:$0xff] }
 0x636   : > { %v344_v58 = vand.u32 15, %v311_v42  ;;  %vm372_vm8 = vcmp.lt.s32.totalorder %v316_v6, 3  ;;  %v7824_v42 = vld [vmem:[%s12434_s5 + $0xa8] sm:$0xff] }
 0x637   : > { %v5063_v7 = vadd.f32 %v5062_v1, %v5061_v50  ;;  %v5073_v8 = vadd.f32 %v5072_v2, %v5071_v62  ;;  %v5083_v11 = vadd.f32 %v5082_v3, %v5081_v0  ;;  %vm374_vm9 = vcmp.lt.s32.totalorder %v330_v57, 3  ;;  %v7798_v62 = vld [vmem:[%s12434_s5 + $0x50] sm:$0xff]  ;;  %v7799_v0 = vld [vmem:[%s12434_s5 + $0x58] sm:$0xff]  ;;  %v5125_v1 = vld [vmem:[#allocation4 + $0x8] sm:$0xff] }
 0x638   : > { %vm376_vm10 = vcmp.lt.s32.totalorder %v344_v58, 3  ;;  %v11708_v20 = vsel %vm372_vm8, 1.0, %v10458_v14  ;;  %v11711_v36 = vsel %vm374_vm9, 1.0, %v10458_v14  ;;  %v9769_v2 = vpack.c.bf16 %v7799_v0, %v7798_v62  ;;  %v7825_v58 = vld [vmem:[%s12434_s5 + $0xb0] sm:$0xff] }
 0x639   : > { %v5064_v10 = vrot.slane %v5063_v7, 2  ;;  %v5074_v13 = vrot.slane %v5073_v8, 2  ;;  %v5084_v15 = vrot.slane %v5083_v11, 2  ;;  %v11714_v40 = vsel %vm376_vm10, 1.0, %v10458_v14 }
 0x63a   : > { %v9784_v57 = vpack.c.bf16 %v7824_v42, %v7823_v41  ;;  %v6303_v41 = vld [vmem:[%s12435_s6 + $0x20] sm:$0xff]  ;;  %v6304_v42 = vld [vmem:[%s12435_s6 + $0x28] sm:$0xff]  ;;  %vm7375_vm8 = vcmask 1045504   ;;  %vm7400_vm9 = vcmask 24576   ;;  %vm7398_vm10 = vcmask 31744  }
 0x63b   : > { %v5065_v18 = vadd.f32 %v5064_v10, %v5063_v7  ;;  %v5075_v19 = vadd.f32 %v5074_v13, %v5073_v8  ;;  %v5085_v21 = vadd.f32 %v5084_v15, %v5083_v11  ;;  %v7805_v8 = vld [vmem:[%s12434_s5 + $0x60] sm:$0xff]  ;;  %v7806_v11 = vld [vmem:[%s12434_s5 + $0x68] sm:$0xff] }
 0x63c   : > { %v5353_v13 = vld [vmem:[#allocation4 + $0x2] sm:$0xff]  ;;  %v9772_v15 = vpack.c.bf16 %v7806_v11, %v7805_v8 }
 0x63d   : > { %v5066_v22 = vrot.slane %v5065_v18, 1  ;;  %v5076_v23 = vrot.slane %v5075_v19, 1  ;;  %v5086_v26 = vrot.slane %v5085_v21, 1  ;;  %v6077_v8 = vld [vmem:[#allocation4 + $0x42] sm:$0x7] }
 0x63e   : > { %v7859_v11 = vld [vmem:[%s12435_s6 + $0x40] sm:$0xff] }
 0x63f   : > { %v5067_v16 = vadd.f32 %v5066_v22, %v5065_v18  ;;  %v5077_v27 = vadd.f32 %v5076_v23, %v5075_v19  ;;  %v5087_v30 = vadd.f32 %v5086_v26, %v5085_v21  ;;  %v7807_v18 = vld [vmem:[%s12434_s5 + $0x70] sm:$0xff]  ;;  %v7808_v19 = vld [vmem:[%s12434_s5 + $0x78] sm:$0xff] }
 0x640   : > { %v9775_v21 = vpack.c.bf16 %v7808_v19, %v7807_v18  ;;  %v7862_v18 = vld [vmem:[%s12435_s6 + $0x58] sm:$0xff] }
 0x641   : > { %v5078_v29 = vadd.f32 %v5077_v27, %v5067_v16  ;;  %v7814_v16 = vld [vmem:[%s12434_s5 + $0x80] sm:$0xff]  ;;  %v7815_v27 = vld [vmem:[%s12434_s5 + $0x88] sm:$0xff] }
 0x643   : > { %v5088_v33 = vadd.f32 %v5087_v30, %v5078_v29  ;;  %v9778_v30 = vpack.c.bf16 %v7815_v27, %v7814_v16  ;;  %v7866_v16 = vld [vmem:[%s12435_s6 + $0x78] sm:$0xff] }
 0x645   : > { %v5089_v35 = vmul.f32 0.11111111, %v5088_v33  ;;  %v7817_v33 = vld [vmem:[%s12434_s5 + $0x98] sm:$0xff] }
 0x647   : > { %v5092_v39 = vadd.f32 1e-05, %v5089_v35  ;;  %v9781_v35 = vpack.c.bf16 %v7817_v33, %v7816_v32  ;;  %v6308_v32 = vld [vmem:[#allocation5 + $0x9] sm:$0xff] }
 0x649   : > { %10438 = vrsqrt.f32 %v5092_v39 }
 0x653   : > { %v10439_v59 = vpop.eup %10438 }
 0x654   : > { %v5094_v60 = vmul.f32 %v10439_v59, %v5059_v63  ;;  %v5095_v43 = vmul.f32 %v10439_v59, %v5090_v24  ;;  %v5096_v61 = vmul.f32 %v10439_v59, %v5069_v4  ;;  %v5097_v46 = vmul.f32 %v10439_v59, %v5091_v44  ;;  %v7796_v44 = vld [vmem:[%s12434_s5 + $0x40] sm:$0xff] }
 0x655   : > { %v5098_v31 = vmul.f32 %v10439_v59, %v5079_v34  ;;  %v9766_v50 = vpack.c.bf16 %v7797_v38, %v7796_v44  ;;  %v7826_v59 = vld [vmem:[%s12434_s5 + $0xb8] sm:$0xff]  ;;  %v7850_v44 = vld [vmem:[%s12434_s5 + $0x100] sm:$0xff]  ;;  %v7851_v38 = vld [vmem:[%s12434_s5 + $0x108] sm:$0xff] }
 0x656   : > { %vm5099_vm11 = vcmp.ge.f32.partialorder %v5094_v60, 0.0  ;;  %vm5100_vm12 = vcmp.ge.f32.partialorder %v5095_v43, 0.0  ;;  %vm5101_vm13 = vcmp.ge.f32.partialorder %v5096_v61, 0.0  ;;  %vm5102_vm14 = vcmp.ge.f32.partialorder %v5097_v46, 0.0 }
 0x657   : > { %vm5103_vm15 = vcmp.ge.f32.partialorder %v5098_v31, 0.0  ;;  %v5104_v47 = vmul.f32 0.01, %v5094_v60  ;;  %v5105_v9 = vmul.f32 0.01, %v5095_v43 }
 0x658   : > { %v5106_v48 = vmul.f32 0.01, %v5096_v61  ;;  %v5107_v49 = vmul.f32 0.01, %v5097_v46  ;;  %v5108_v45 = vmul.f32 0.01, %v5098_v31 }
 0x659   : > { %v5109_v5 = vsel %vm5099_vm11, %v5094_v60, %v5104_v47  ;;  %v5110_v12 = vsel %vm5100_vm12, %v5095_v43, %v5105_v9  ;;  %v9787_v60 = vpack.c.bf16 %v7826_v59, %v7825_v58  ;;  %v6306_v58 = vld [vmem:[%s12435_s6 + $0x38] sm:$0xff] }
 0x65a   : > { %v5111_v52 = vsel %vm5101_vm13, %v5096_v61, %v5106_v48  ;;  %v5112_v53 = vsel %vm5102_vm14, %v5097_v46, %v5107_v49  ;;  %v5113_v54 = vsel %vm5103_vm15, %v5098_v31, %v5108_v45  ;;  %v5114_v55 = vmul.f32 %v11708_v20, %v5109_v5  ;;  %v7832_v46 = vld [vmem:[%s12434_s5 + $0xc0] sm:$0xff]  ;;  %v7833_v31 = vld [vmem:[%s12434_s5 + $0xc8] sm:$0xff]  ;;  %v7834_v48 = vld [vmem:[%s12434_s5 + $0xd0] sm:$0xff] }
 0x65b   : > { %v5115_v56 = vmul.f32 0.0, %v5110_v12  ;;  %v5116_v25 = vmul.f32 %v11711_v36, %v5111_v52  ;;  %v5117_v63 = vmul.f32 0.0, %v5112_v53  ;;  %v5118_v4 = vmul.f32 %v11714_v40, %v5113_v54  ;;  %v7835_v49 = vld [vmem:[%s12434_s5 + $0xd8] sm:$0xff]  ;;  %v7841_v52 = vld [vmem:[%s12434_s5 + $0xe0] sm:$0xff]  ;;  %v7842_v53 = vld [vmem:[%s12434_s5 + $0xe8] sm:$0xff] }
 0x65c   : > { %5119 = vst.msk [vmem:[#allocation4 + $0x11] sm:$0xff] %vm5022_vm3, %v5114_v55  ;;  %v9790_v9 = vpack.c.bf16 %v7833_v31, %v7832_v46  ;;  %v9793_v45 = vpack.c.bf16 %v7835_v49, %v7834_v48  ;;  %v9796_v55 = vpack.c.bf16 %v7842_v53, %v7841_v52 }
 0x65d   : > { %5121 = vst.msk [vmem:[#allocation4 + $0x21] sm:$0xff] %vm5022_vm3, %v5116_v25  ;;  %5122 = vst.msk [vmem:[#allocation4 + $0x29] sm:$0xff] %vm5022_vm3, %v5117_v63  ;;  %v7844_v25 = vld [vmem:[%s12434_s5 + $0xf8] sm:$0xff] }
 0x65e   : > { %5123 = vst.msk [vmem:[#allocation4 + $0x31] sm:$0x7] %vm5032_vm0, %v5118_v4 }
 0x65f   : > { %5120 = vst.msk [vmem:[#allocation4 + $0x19] sm:$0xff] %vm5022_vm3, %v5115_v56  ;;  %v7843_v56 = vld [vmem:[%s12434_s5 + $0xf0] sm:$0xff] }
 0x660   : > { %v9799_v63 = vpack.c.bf16 %v7844_v25, %v7843_v56 }
 0x663   : > { %v11724_v34 = vld [vmem:[#allocation4 + $0x11] sm:$0xff] }
 0x664   : > { %9239 = vmatmul.mubr.msk.f32.gmra.mrb[54].mxu0 %vm5022_vm3, %v11724_v34  ;;  %v5137_v17 = vld [vmem:[#allocation4 + $0x21] sm:$0x7]  ;;  %v5126_v3 = vld [vmem:[#allocation4 + $0x10] sm:$0xff]  ;;  %v5476_v39 = vld [vmem:[#allocation4 + $0x28] sm:$0xff] }
 0x665   : > { %9241 = vmatprep.mubr.msk.f32.mxu0 %vm10459_vm1, %v10458_v14  ;;  %v5354_v22 = vld [vmem:[#allocation4 + $0xa] sm:$0xff]  ;;  %v5357_v29 = vld [vmem:[#allocation4 + $0x22] sm:$0x7]  ;;  %v5717_v54 = vld [vmem:[#allocation4 + $0x32] sm:$0x7] }
 0x666   : > { %v11730_v24 = vld [vmem:[#allocation4 + $0x19] sm:$0xff]  ;;  %v5477_v6 = vld [vmem:[#allocation4 + $0x30] sm:$0x7]  ;;  %v5595_v43 = vld [vmem:[#allocation4 + $0x21] sm:$0xff] }
 0x667   : > { %v5127_v7 = vld [vmem:[#allocation4 + $0x18] sm:$0xff]  ;;  %v5128_v10 = vld [vmem:[#allocation4 + $0x20] sm:$0x7]  ;;  %v5596_v61 = vld [vmem:[#allocation4 + $0x29] sm:$0xff] }
 0x668   : > { %9242 = vmatmul.mubr.msk.f32.gmra.mrb[56].mxu0 %vm5022_vm3, %v11730_v24  ;;  %v5355_v23 = vld [vmem:[#allocation4 + $0x12] sm:$0xff]  ;;  %v5356_v26 = vld [vmem:[#allocation4 + $0x1a] sm:$0xff]  ;;  %v5715_v5 = vld [vmem:[#allocation4 + $0x22] sm:$0xff] }
 0x669   : > { %9244 = vmatprep.mubr.msk.f32.mxu0 %vm10459_vm1, %v10458_v14  ;;  %v5475_v37 = vld [vmem:[#allocation4 + $0x20] sm:$0xff]  ;;  %v5597_v47 = vld [vmem:[#allocation4 + $0x31] sm:$0x7] }
 0x66a   : > { %v5716_v12 = vld [vmem:[#allocation4 + $0x2a] sm:$0xff] }
 0x66b   : > { %v5835_v4 = vld [vmem:[#allocation4 + $0x30] sm:$0xff] }
 0x66c   : > { %9245 = vmatmul.mubr.msk.f32.gmra.mrb[58].mxu0 %vm5022_vm3, %v5137_v17  ;;  %v9802_v17 = vpack.c.bf16 %v7851_v38, %v7850_v44  ;;  %v5955_v0 = vld [vmem:[#allocation4 + $0x31] sm:$0xff] }
 0x66d   : > { %9255 = vmatprep.mubr.msk.f32.mxu0 %vm10459_vm1, %v10458_v14 }
 0x670   : > { %9256 = vmatmul.mubr.msk.f32.vlgmr.msra.gmra.mrb[50].mxu0 %vm5022_vm3, %v5124_v51  ;;  %v7852_v51 = vld [vmem:[%s12434_s5 + $0x110] sm:$0xff] }
 0x671   : > { %9767 = vmatpush3.bf16.msra.mxu0 %v9766_v50  ;;  %9258 = vmatprep.mubr.msk.f32.mxu0 %vm10459_vm1, %v10458_v14  ;;  %v7853_v50 = vld [vmem:[%s12434_s5 + $0x118] sm:$0xff] }
 0x672   : > { %9768 = vmatprep.subr.bf16.mxu0 %v10460_v28  ;;  %v9805_v62 = vpack.c.bf16 %v7853_v50, %v7852_v51 }
 0x674   : > { %9259 = vmatmul.mubr.msk.f32.gmra.mrb[52].mxu0 %vm5022_vm3, %v5125_v1  ;;  %v5956_v1 = vld [vmem:[#allocation4 + $0x39] sm:$0xff] }
 0x675   : > { %9261 = vmatprep.mubr.msk.f32.mxu0 %vm10459_vm1, %v10458_v14  ;;  %9770 = vmatpush3.bf16.msra.mxu0 %v9769_v2  ;;  %v5957_v2 = vld [vmem:[#allocation4 + $0x41] sm:$0x7] }
 0x676   : > { %9771 = vmatprep.subr.bf16.mxu0 %v10460_v28 }
 0x678   : > { %9262 = vmatmul.mubr.msk.f32.gmra.mrb[54].mxu0 %vm5022_vm3, %v5126_v3 }
 0x679   : > { %9264 = vmatprep.mubr.msk.f32.mxu0 %vm10459_vm1, %v10458_v14 }
 0x67c   : > { %9265 = vmatmul.mubr.msk.f32.gmra.mrb[56].mxu0 %vm5022_vm3, %v5127_v7 }
 0x67d   : > { %9267 = vmatprep.mubr.msk.f32.mxu0 %vm10459_vm1, %v10458_v14 }
 0x680   : > { %9268 = vmatmul.mubr.msk.f32.gmra.mrb[58].mxu0 %vm5022_vm3, %v5128_v10  ;;  %v7860_v10 = vld [vmem:[%s12435_s6 + $0x48] sm:$0xff] }
 0x681   : > { %9278 = vmatprep.mubr.msk.f32.mxu0 %vm10459_vm1, %v10458_v14 }
 0x684   : > { %9279 = vmatmul.mubr.msk.f32.vlgmr.msra.gmra.mrb[50].mxu0 %vm5022_vm3, %v5353_v13  ;;  %v7861_v13 = vld [vmem:[%s12435_s6 + $0x50] sm:$0xff] }
 0x685   : > { %9773 = vmatpush3.bf16.msra.mxu0 %v9772_v15  ;;  %9281 = vmatprep.mubr.msk.f32.mxu0 %vm10459_vm1, %v10458_v14  ;;  %v9808_v15 = vpack.c.bf16 %v7860_v10, %v7859_v11  ;;  %v9811_v19 = vpack.c.bf16 %v7862_v18, %v7861_v13 }
 0x686   : > { %9774 = vmatprep.subr.bf16.mxu0 %v10460_v28 }
 0x687   : > { %9921 = vmatpush3.bf16.msra.mxu1 %v9808_v15 }
 0x688   : > { %9282 = vmatmul.mubr.msk.f32.gmra.mrb[52].mxu0 %vm5022_vm3, %v5354_v22  ;;  %9918 = vmatprep.subr.bf16.mxu1 %v10460_v28  ;;  %v7864_v22 = vld [vmem:[%s12435_s6 + $0x68] sm:$0xff] }
 0x689   : > { %9284 = vmatprep.mubr.msk.f32.mxu0 %vm10459_vm1, %v10458_v14  ;;  %9776 = vmatpush3.bf16.msra.mxu0 %v9775_v21  ;;  %v7863_v21 = vld [vmem:[%s12435_s6 + $0x60] sm:$0xff] }
 0x68a   : > { %9777 = vmatprep.subr.bf16.mxu0 %v10460_v28 }
 0x68b   : > { %9922 = vmatpush3.bf16.msra.mxu1 %v9811_v19 }
 0x68c   : > { %9285 = vmatmul.mubr.msk.f32.gmra.mrb[54].mxu0 %vm5022_vm3, %v5355_v23  ;;  %9919 = vmatprep.subr.bf16.mxu1 %v10460_v28 }
 0x68d   : > { %9287 = vmatprep.mubr.msk.f32.mxu0 %vm10459_vm1, %v10458_v14 }
 0x690   : > { %9288 = vmatmul.mubr.msk.f32.gmra.mrb[56].mxu0 %vm5022_vm3, %v5356_v26 }
 0x691   : > { %9290 = vmatprep.mubr.msk.f32.mxu0 %vm10459_vm1, %v10458_v14 }
 0x694   : > { %9291 = vmatmul.mubr.msk.f32.gmra.mrb[58].mxu0 %vm5022_vm3, %v5357_v29  ;;  %v6299_v29 = vld [vmem:[%s12435_s6] sm:$0xff] }
 0x695   : > { %9301 = vmatprep.mubr.msk.f32.mxu0 %vm10459_vm1, %v10458_v14 }
 0x698   : > { %9302 = vmatmul.mubr.msk.f32.vlgmr.msra.gmra.mrb[50].mxu0 %vm5022_vm3, %v5126_v3  ;;  %v6075_v3 = vld [vmem:[#allocation4 + $0x32] sm:$0xff] }
 0x699   : > { %9779 = vmatpush3.bf16.msra.mxu0 %v9778_v30  ;;  %9304 = vmatprep.mubr.msk.f32.mxu0 %vm10459_vm1, %v10458_v14  ;;  %v6300_v30 = vld [vmem:[%s12435_s6 + $0x8] sm:$0xff] }
 0x69a   : > { %9780 = vmatprep.subr.bf16.mxu0 %v10460_v28  ;;  %v9820_v33 = vpack.c.bf16 %v6300_v30, %v6299_v29 }
 0x69c   : > { %9305 = vmatmul.mubr.msk.f32.gmra.mrb[52].mxu0 %vm5022_vm3, %v5127_v7  ;;  %v6076_v7 = vld [vmem:[#allocation4 + $0x3a] sm:$0xff] }
 0x69d   : > { %9307 = vmatprep.mubr.msk.f32.mxu0 %vm10459_vm1, %v10458_v14  ;;  %9782 = vmatpush3.bf16.msra.mxu0 %v9781_v35  ;;  %v6301_v35 = vld [vmem:[%s12435_s6 + $0x10] sm:$0xff] }
 0x69e   : > { %9783 = vmatprep.subr.bf16.mxu0 %v10460_v28 }
 0x6a0   : > { %9308 = vmatmul.mubr.msk.f32.gmra.mrb[54].mxu0 %vm5022_vm3, %v5475_v37 }
 0x6a1   : > { %9310 = vmatprep.mubr.msk.f32.mxu0 %vm10459_vm1, %v10458_v14 }
 0x6a4   : > { %9311 = vmatmul.mubr.msk.f32.gmra.mrb[56].mxu0 %vm5022_vm3, %v5476_v39 }
 0x6a5   : > { %9313 = vmatprep.mubr.msk.f32.mxu0 %vm10459_vm1, %v10458_v14 }
 0x6a8   : > { %9314 = vmatmul.mubr.msk.f32.gmra.mrb[58].mxu0 %vm5022_vm3, %v5477_v6  ;;  %v9826_v6 = vpack.c.bf16 %v6304_v42, %v6303_v41 }
 0x6a9   : > { %9324 = vmatprep.mubr.msk.f32.mxu0 %vm10459_vm1, %v10458_v14 }
 0x6ac   : > { %9325 = vmatmul.mubr.msk.f32.vlgmr.msra.gmra.mrb[50].mxu0 %vm5022_vm3, %v11724_v34  ;;  %v5836_v34 = vld [vmem:[#allocation4 + $0x38] sm:$0xff] }
 0x6ad   : > { %9785 = vmatpush3.bf16.msra.mxu0 %v9784_v57  ;;  %9327 = vmatprep.mubr.msk.f32.mxu0 %vm10459_vm1, %v10458_v14  ;;  %v6305_v57 = vld [vmem:[%s12435_s6 + $0x30] sm:$0xff] }
 0x6ae   : > { %9786 = vmatprep.subr.bf16.mxu0 %v10460_v28  ;;  %v9829_v59 = vpack.c.bf16 %v6306_v58, %v6305_v57 }
 0x6b0   : > { %9328 = vmatmul.mubr.msk.f32.gmra.mrb[52].mxu0 %vm5022_vm3, %v11730_v24  ;;  %v5837_v24 = vld [vmem:[#allocation4 + $0x40] sm:$0x7] }
 0x6b1   : > { %9330 = vmatprep.mubr.msk.f32.mxu0 %vm10459_vm1, %v10458_v14  ;;  %9788 = vmatpush3.bf16.msra.mxu0 %v9787_v60 }
 0x6b2   : > { %9789 = vmatprep.subr.bf16.mxu0 %v10460_v28 }
 0x6b4   : > { %9331 = vmatmul.mubr.msk.f32.gmra.mrb[54].mxu0 %vm5022_vm3, %v5595_v43 }
 0x6b5   : > { %9333 = vmatprep.mubr.msk.f32.mxu0 %vm10459_vm1, %v10458_v14 }
 0x6b8   : > { %9334 = vmatmul.mubr.msk.f32.gmra.mrb[56].mxu0 %vm5022_vm3, %v5596_v61 }
 0x6b9   : > { %9336 = vmatprep.mubr.msk.f32.mxu0 %vm10459_vm1, %v10458_v14 }
 0x6bc   : > { %9337 = vmatmul.mubr.msk.f32.gmra.mrb[58].mxu0 %vm5022_vm3, %v5597_v47 }
 0x6bd   : > { %9347 = vmatprep.mubr.msk.f32.mxu0 %vm10459_vm1, %v10458_v14 }
 0x6c0   : > { %9348 = vmatmul.mubr.msk.f32.vlgmr.msra.gmra.mrb[50].mxu0 %vm5022_vm3, %v5355_v23  ;;  %v9814_v23 = vpack.c.bf16 %v7864_v22, %v7863_v21 }
 0x6c1   : > { %9791 = vmatpush3.bf16.msra.mxu0 %v9790_v9  ;;  %9350 = vmatprep.mubr.msk.f32.mxu0 %vm10459_vm1, %v10458_v14 }
 0x6c2   : > { %9792 = vmatprep.subr.bf16.mxu0 %v10460_v28  ;;  %9923 = vmatpush3.bf16.msra.mxu1 %v9814_v23 }
 0x6c3   : > { %9920 = vmatprep.subr.bf16.mxu1 %v10460_v28 }
 0x6c4   : > { %9351 = vmatmul.mubr.msk.f32.gmra.mrb[52].mxu0 %vm5022_vm3, %v5356_v26  ;;  %v7865_v26 = vld [vmem:[%s12435_s6 + $0x70] sm:$0xff] }
 0x6c5   : > { %9353 = vmatprep.mubr.msk.f32.mxu0 %vm10459_vm1, %v10458_v14  ;;  %9794 = vmatpush3.bf16.msra.mxu0 %v9793_v45  ;;  %v9817_v27 = vpack.c.bf16 %v7866_v16, %v7865_v26 }
 0x6c6   : > { %9795 = vmatprep.subr.bf16.mxu0 %v10460_v28 }
 0x6c7   : > { %9924 = vmatpush3.bf16.msra.mxu1 %v9817_v27 }
 0x6c8   : > { %9354 = vmatmul.mubr.msk.f32.gmra.mrb[54].mxu0 %vm5022_vm3, %v5715_v5  ;;  %9819 = vmatprep.subr.bf16.mxu1 %v10460_v28 }
 0x6c9   : > { %9356 = vmatprep.mubr.msk.f32.mxu0 %vm10459_vm1, %v10458_v14 }
 0x6ca   : > { %9451 = vmatmul.mubr.msk.f32.vlgmr.msra.gmra.mrb[26].mxu1 %vm6193_vm2, %v6308_v32 }
 0x6cb   : > { %9821 = vmatpush3.bf16.msra.mxu1 %v9820_v33  ;;  %9453 = vmatprep.mubr.msk.f32.mxu1 %vm10459_vm1, %v10458_v14 }
 0x6cc   : > { %9357 = vmatmul.mubr.msk.f32.gmra.mrb[56].mxu0 %vm5022_vm3, %v5716_v12  ;;  %9822 = vmatprep.subr.bf16.mxu1 %v10460_v28 }
 0x6cd   : > { %9359 = vmatprep.mubr.msk.f32.mxu0 %vm10459_vm1, %v10458_v14 }
 0x6d0   : > { %9360 = vmatmul.mubr.msk.f32.gmra.mrb[58].mxu0 %vm5022_vm3, %v5717_v54 }
 0x6d1   : > { %9370 = vmatprep.mubr.msk.f32.mxu0 %vm10459_vm1, %v10458_v14 }
 0x6d4   : > { %9371 = vmatmul.mubr.msk.f32.vlgmr.msra.gmra.mrb[50].mxu0 %vm5022_vm3, %v5475_v37  ;;  %v6302_v37 = vld [vmem:[%s12435_s6 + $0x18] sm:$0xff] }
 0x6d5   : > { %9797 = vmatpush3.bf16.msra.mxu0 %v9796_v55  ;;  %9373 = vmatprep.mubr.msk.f32.mxu0 %vm10459_vm1, %v10458_v14 }
 0x6d6   : > { %9798 = vmatprep.subr.bf16.mxu0 %v10460_v28 }
 0x6d8   : > { %9374 = vmatmul.mubr.msk.f32.gmra.mrb[52].mxu0 %vm5022_vm3, %v5476_v39  ;;  %v9823_v39 = vpack.c.bf16 %v6302_v37, %v6301_v35 }
 0x6d9   : > { %9376 = vmatprep.mubr.msk.f32.mxu0 %vm10459_vm1, %v10458_v14  ;;  %9800 = vmatpush3.bf16.msra.mxu0 %v9799_v63 }
 0x6da   : > { %9801 = vmatprep.subr.bf16.mxu0 %v10460_v28  ;;  %9824 = vmatpush3.bf16.msra.mxu1 %v9823_v39 }
 0x6db   : > { %9825 = vmatprep.subr.bf16.mxu1 %v10460_v28 }
 0x6dc   : > { %9377 = vmatmul.mubr.msk.f32.gmra.mrb[54].mxu0 %vm5022_vm3, %v5835_v4 }
 0x6dd   : > { %9379 = vmatprep.mubr.msk.f32.mxu0 %vm10459_vm1, %v10458_v14 }
 0x6de   : > { %9827 = vmatpush3.bf16.msra.mxu1 %v9826_v6 }
 0x6df   : > { %9828 = vmatprep.subr.bf16.mxu1 %v10460_v28 }
 0x6e0   : > { %9380 = vmatmul.mubr.msk.f32.gmra.mrb[56].mxu0 %vm5022_vm3, %v5836_v34 }
 0x6e1   : > { %9382 = vmatprep.mubr.msk.f32.mxu0 %vm10459_vm1, %v10458_v14 }
 0x6e2   : > { %9830 = vmatpush3.bf16.msra.mxu1 %v9829_v59 }
 0x6e3   : > { %9831 = vmatprep.subr.bf16.mxu1 %v10460_v28 }
 0x6e4   : > { %9383 = vmatmul.mubr.msk.f32.gmra.mrb[58].mxu0 %vm5022_vm3, %v5837_v24 }
 0x6e5   : > { %9393 = vmatprep.mubr.msk.f32.mxu0 %vm10459_vm1, %v10458_v14 }
 0x6e8   : > { %9394 = vmatmul.mubr.msk.f32.vlgmr.msra.gmra.mrb[50].mxu0 %vm5022_vm3, %v5595_v43 }
 0x6e9   : > { %9803 = vmatpush3.bf16.msra.mxu0 %v9802_v17  ;;  %9396 = vmatprep.mubr.msk.f32.mxu0 %vm10459_vm1, %v10458_v14 }
 0x6ea   : > { %9804 = vmatprep.subr.bf16.mxu0 %v10460_v28 }
 0x6ec   : > { %9397 = vmatmul.mubr.msk.f32.gmra.mrb[52].mxu0 %vm5022_vm3, %v5596_v61 }
 0x6ed   : > { %9399 = vmatprep.mubr.msk.f32.mxu0 %vm10459_vm1, %v10458_v14  ;;  %9806 = vmatpush3.bf16.msra.mxu0 %v9805_v62 }
 0x6ee   : > { %9807 = vmatprep.subr.bf16.mxu0 %v10460_v28 }
 0x6f0   : > { %9400 = vmatmul.mubr.msk.f32.gmra.mrb[54].mxu0 %vm5022_vm3, %v5955_v0 }
 0x6f1   : > { %9402 = vmatprep.mubr.msk.f32.mxu0 %vm10459_vm1, %v10458_v14 }
 0x6f4   : > { %9403 = vmatmul.mubr.msk.f32.gmra.mrb[56].mxu0 %vm5022_vm3, %v5956_v1 }
 0x6f5   : > { %9405 = vmatprep.mubr.msk.f32.mxu0 %vm10459_vm1, %v10458_v14 }
 0x6f8   : > { %9406 = vmatmul.mubr.msk.f32.gmra.mrb[58].mxu0 %vm5022_vm3, %v5957_v2 }
 0x6f9   : > { %9416 = vmatprep.mubr.msk.f32.mxu0 %vm10459_vm1, %v10458_v14 }
 0x6fc   : > { %9417 = vmatmul.mubr.msk.f32.vlgmr.msra.gmra.mrb[50].mxu0 %vm5022_vm3, %v5715_v5 }
 0x6fd   : > { %9419 = vmatprep.mubr.msk.f32.mxu0 %vm10459_vm1, %v10458_v14  ;;  %9809 = vmatpush3.bf16.msra.mxu0 %v9808_v15 }
 0x6fe   : > { %9810 = vmatprep.subr.bf16.mxu0 %v10460_v28 }
 0x700   : > { %9420 = vmatmul.mubr.msk.f32.gmra.mrb[52].mxu0 %vm5022_vm3, %v5716_v12 }
 0x701   : > { %9422 = vmatprep.mubr.msk.f32.mxu0 %vm10459_vm1, %v10458_v14  ;;  %9812 = vmatpush3.bf16.msra.mxu0 %v9811_v19 }
 0x702   : > { %9813 = vmatprep.subr.bf16.mxu0 %v10460_v28 }
 0x704   : > { %9423 = vmatmul.mubr.msk.f32.gmra.mrb[54].mxu0 %vm5022_vm3, %v6075_v3 }
 0x705   : > { %9425 = vmatprep.mubr.msk.f32.mxu0 %vm10459_vm1, %v10458_v14  ;;  %9815 = vmatpush3.bf16.msra.mxu0 %v9814_v23 }
 0x706   : > { %9816 = vmatprep.subr.bf16.mxu0 %v10460_v28 }
 0x708   : > { %9426 = vmatmul.mubr.msk.f32.gmra.mrb[56].mxu0 %vm5022_vm3, %v6076_v7 }
 0x709   : > { %9428 = vmatprep.mubr.msk.f32.mxu0 %vm10459_vm1, %v10458_v14  ;;  %9818 = vmatpush3.bf16.msra.mxu0 %v9817_v27 }
 0x70c   : > { %9429 = vmatmul.mubr.msk.f32.gmra.mrb[58].mxu0 %vm5022_vm3, %v6077_v8 }
 0x70d   : > { %9447 = vmatprep.mubr.msk.f32.mxu0 %vm10459_vm1, %v10458_v14 }
 0x7cf   : > { %v6164_v60 = vpop.f32.mrb[50].mxu0 }
 0x7d0   : > { %v6204_v43 = vsel %vm6203_vm4, %v6164_v60, 0.0  ;;  %v9418_v61 = vpop.f32.mrb[51].mxu0 }
 0x7d1   : > { %v6205_v46 = vrot.slane %v6204_v43, 4 }
 0x7d3   : > { %v6206_v31 = vadd.f32 %v6205_v46, %v6204_v43  ;;  %v12040_v47 = vpop.f32.mrb[52].mxu0 }
 0x7d4   : > { %v9421_v9 = vpop.f32.mrb[53].mxu0 }
 0x7d5   : > { %v6207_v48 = vrot.slane %v6206_v31, 2 }
 0x7d7   : > { %v6174_v49 = vpop.f32.mrb[54].mxu0  ;;  %v6208_v52 = vadd.f32 %v6207_v48, %v6206_v31 }
 0x7d8   : > { %v6212_v45 = vsel %vm6203_vm4, %v6174_v49, 0.0  ;;  %v9424_v5 = vpop.f32.mrb[55].mxu0 }
 0x7d9   : > { %v6213_v12 = vrot.slane %v6212_v45, 4  ;;  %v6209_v25 = vrot.slane %v6208_v52, 1 }
 0x7db   : > { %v6214_v53 = vadd.f32 %v6213_v12, %v6212_v45  ;;  %v6179_v54 = vpop.f32.mrb[56].mxu0  ;;  %v6210_v17 = vadd.f32 %v6209_v25, %v6208_v52 }
 0x7dc   : > { %v9427_v55 = vpop.f32.mrb[57].mxu0 }
 0x7dd   : > { %v6215_v56 = vrot.slane %v6214_v53, 2 }
 0x7df   : > { %v6216_v63 = vadd.f32 %v6215_v56, %v6214_v53  ;;  %v6184_v4 = vpop.f32.mrb[58].mxu0 }
 0x7e0   : > { %v6220_v34 = vsel %vm6203_vm4, %v6184_v4, 0.0  ;;  %v9430_v24 = vpop.f32.mrb[59].mxu0 }
 0x7e1   : > { %v6217_v44 = vrot.slane %v6216_v63, 1  ;;  %v6221_v38 = vrot.slane %v6220_v34, 4 }
 0x7e3   : > { %v6218_v51 = vadd.f32 %v6217_v44, %v6216_v63  ;;  %v6222_v50 = vadd.f32 %v6221_v38, %v6220_v34 }
 0x7e5   : > { %v6219_v62 = vadd.f32 %v6218_v51, %v6210_v17  ;;  %v6223_v0 = vrot.slane %v6222_v50, 2 }
 0x7e7   : > { %v6224_v1 = vadd.f32 %v6223_v0, %v6222_v50 }
 0x7e9   : > { %v6225_v2 = vrot.slane %v6224_v1, 1 }
 0x7eb   : > { %v6226_v3 = vadd.f32 %v6225_v2, %v6224_v1 }
 0x7ed   : > { %v6227_v7 = vadd.f32 %v6226_v3, %v6219_v62  ;;  %v6294_v3 = vld [vmem:[#allocation5] sm:$0xff] }
 0x7ef   : > { %v6228_v8 = vmul.f32 0.11111111, %v6227_v7 }
 0x7f1   : > { %v6229_v11 = vsub.f32 %v6164_v60, %v6228_v8  ;;  %v6239_v10 = vsub.f32 %v6174_v49, %v6228_v8  ;;  %v6249_v13 = vsub.f32 %v6184_v4, %v6228_v8  ;;  %v6260_v15 = vsub.f32 %v12040_v47, %v6228_v8 }
 0x7f2   : > { %v6261_v18 = vsub.f32 %v6179_v54, %v6228_v8  ;;  %v7879_v8 = vld [vmem:[%s12435_s6 + $0x90] sm:$0xff] }
 0x7f3   : > { %v6230_v19 = vmul.f32 %v6229_v11, %v6229_v11  ;;  %v6240_v21 = vmul.f32 %v6239_v10, %v6239_v10  ;;  %v6250_v22 = vmul.f32 %v6249_v13, %v6249_v13 }
 0x7f5   : > { %v6231_v23 = vsel %vm6203_vm4, %v6230_v19, 0.0  ;;  %v6241_v26 = vsel %vm6203_vm4, %v6240_v21, 0.0  ;;  %v6251_v16 = vsel %vm6203_vm4, %v6250_v22, 0.0  ;;  %v7883_v21 = vld [vmem:[%s12435_s6 + $0xb0] sm:$0xff]  ;;  %v7884_v22 = vld [vmem:[%s12435_s6 + $0xb8] sm:$0xff] }
 0x7f6   : > { %v6232_v27 = vrot.slane %v6231_v23, 4  ;;  %v6242_v29 = vrot.slane %v6241_v26, 4  ;;  %v6252_v30 = vrot.slane %v6251_v16, 4 }
 0x7f8   : > { %v6233_v32 = vadd.f32 %v6232_v27, %v6231_v23  ;;  %v6243_v33 = vadd.f32 %v6242_v29, %v6241_v26  ;;  %v6253_v35 = vadd.f32 %v6252_v30, %v6251_v16  ;;  %v9841_v26 = vpack.c.bf16 %v7884_v22, %v7883_v21  ;;  %v6307_v16 = vld [vmem:[#allocation5 + $0x1] sm:$0xff]  ;;  %v7890_v29 = vld [vmem:[%s12435_s6 + $0xc0] sm:$0xff]  ;;  %v6407_v21 = vpop.f32.mrb[26].mxu1 }
 0x7f9   : > { %9448 = vmatmul.mubr.msk.f32.vlgmr.msra.gmra.mrb[60].mxu0 %vm6193_vm2, %v6307_v16  ;;  %v7891_v30 = vld [vmem:[%s12435_s6 + $0xc8] sm:$0xff]  ;;  %v9452_v22 = vpop.f32.mrb[27].mxu1  ;;  %v7936_v16 = vld [vmem:[%s12435_s6 + $0x1b8] sm:$0xff] }
 0x7fa   : > { %v6234_v37 = vrot.slane %v6233_v32, 2  ;;  %v6244_v39 = vrot.slane %v6243_v33, 2  ;;  %v6254_v41 = vrot.slane %v6253_v35, 2 }
 0x7fc   : > { %v6235_v42 = vadd.f32 %v6234_v37, %v6233_v32  ;;  %v6245_v6 = vadd.f32 %v6244_v39, %v6243_v33  ;;  %v6255_v57 = vadd.f32 %v6254_v41, %v6253_v35  ;;  %v6527_v33 = vld [vmem:[#allocation5 + $0x2] sm:$0xff]  ;;  %v9844_v35 = vpack.c.bf16 %v7891_v30, %v7890_v29  ;;  %v7893_v39 = vld [vmem:[%s12435_s6 + $0xd8] sm:$0xff] }
 0x7fd   : > { %v7892_v37 = vld [vmem:[%s12435_s6 + $0xd0] sm:$0xff] }
 0x7fe   : > { %v6236_v58 = vrot.slane %v6235_v42, 1  ;;  %v6246_v59 = vrot.slane %v6245_v6, 1  ;;  %v6256_v60 = vrot.slane %v6255_v57, 1  ;;  %v9847_v41 = vpack.c.bf16 %v7893_v39, %v7892_v37  ;;  %v7944_v39 = vld [vmem:[%s12435_s6 + $0x1d0] sm:$0xff] }
 0x800   : > { %v6237_v43 = vadd.f32 %v6236_v58, %v6235_v42  ;;  %v6247_v61 = vadd.f32 %v6246_v59, %v6245_v6  ;;  %v6257_v31 = vadd.f32 %v6256_v60, %v6255_v57  ;;  %v7894_v42 = vld [vmem:[%s12435_s6 + $0xe0] sm:$0xff]  ;;  %v7895_v6 = vld [vmem:[%s12435_s6 + $0xe8] sm:$0xff]  ;;  %v7896_v59 = vld [vmem:[%s12435_s6 + $0xf0] sm:$0xff] }
 0x801   : > { %v9850_v58 = vpack.c.bf16 %v7895_v6, %v7894_v42  ;;  %v7897_v60 = vld [vmem:[%s12435_s6 + $0xf8] sm:$0xff]  ;;  %v7946_v6 = vld [vmem:[%s12435_s6 + $0x1e0] sm:$0xff] }
 0x802   : > { %v6248_v46 = vadd.f32 %v6247_v61, %v6237_v43  ;;  %v9853_v61 = vpack.c.bf16 %v7897_v60, %v7896_v59  ;;  %v7948_v59 = vld [vmem:[%s12435_s6 + $0x1f0] sm:$0xff]  ;;  %v7949_v60 = vld [vmem:[%s12435_s6 + $0x1f8] sm:$0xff] }
 0x804   : > { %v6258_v47 = vadd.f32 %v6257_v31, %v6248_v46  ;;  %v7903_v31 = vld [vmem:[%s12435_s6 + $0x100] sm:$0xff] }
 0x806   : > { %v6259_v9 = vmul.f32 0.11111111, %v6258_v47  ;;  %v7904_v47 = vld [vmem:[%s12435_s6 + $0x108] sm:$0xff] }
 0x808   : > { %v6262_v48 = vadd.f32 1e-05, %v6259_v9 }
 0x80a   : > { %10440 = vrsqrt.f32 %v6262_v48  ;;  %v9856_v48 = vpack.c.bf16 %v7904_v47, %v7903_v31  ;;  %v7011_v31 = vld [vmem:[#allocation5 + $0x40] sm:$0x7]  ;;  %v7955_v47 = vld [vmem:[%s12435_s6 + $0x200] sm:$0xff] }
 0x814   : > { %v10441_v49 = vpop.eup %10440 }
 0x815   : > { %v6264_v45 = vmul.f32 %v10441_v49, %v6229_v11  ;;  %v6265_v5 = vmul.f32 %v10441_v49, %v6260_v15  ;;  %v6266_v12 = vmul.f32 %v10441_v49, %v6239_v10  ;;  %v6267_v52 = vmul.f32 %v10441_v49, %v6261_v18  ;;  %v7880_v11 = vld [vmem:[%s12435_s6 + $0x98] sm:$0xff]  ;;  %v6295_v10 = vld [vmem:[#allocation5 + $0x8] sm:$0xff]  ;;  %v7881_v15 = vld [vmem:[%s12435_s6 + $0xa0] sm:$0xff] }
 0x816   : > { %v6268_v53 = vmul.f32 %v10441_v49, %v6249_v13  ;;  %v9835_v13 = vpack.c.bf16 %v7880_v11, %v7879_v8  ;;  %v7882_v18 = vld [vmem:[%s12435_s6 + $0xa8] sm:$0xff]  ;;  %v7905_v49 = vld [vmem:[%s12435_s6 + $0x110] sm:$0xff] }
 0x817   : > { %vm6269_vm5 = vcmp.ge.f32.partialorder %v6264_v45, 0.0  ;;  %vm6270_vm6 = vcmp.ge.f32.partialorder %v6265_v5, 0.0  ;;  %vm6271_vm7 = vcmp.ge.f32.partialorder %v6266_v12, 0.0  ;;  %vm6272_vm3 = vcmp.ge.f32.partialorder %v6267_v52, 0.0 }
 0x818   : > { %vm6273_vm0 = vcmp.ge.f32.partialorder %v6268_v53, 0.0  ;;  %v6274_v54 = vmul.f32 0.01, %v6264_v45  ;;  %v6275_v55 = vmul.f32 0.01, %v6265_v5  ;;  %v9838_v19 = vpack.c.bf16 %v7882_v18, %v7881_v15  ;;  %v7933_v18 = vld [vmem:[%s12435_s6 + $0x1a0] sm:$0xff] }
 0x819   : > { %v6276_v56 = vmul.f32 0.01, %v6266_v12  ;;  %v6277_v25 = vmul.f32 0.01, %v6267_v52  ;;  %v6278_v63 = vmul.f32 0.01, %v6268_v53 }
 0x81a   : > { %v6279_v4 = vsel %vm6269_vm5, %v6264_v45, %v6274_v54  ;;  %v6280_v34 = vsel %vm6270_vm6, %v6265_v5, %v6275_v55  ;;  %v7906_v45 = vld [vmem:[%s12435_s6 + $0x118] sm:$0xff]  ;;  %v7909_v54 = vld [vmem:[%s12435_s6 + $0x130] sm:$0xff] }
 0x81b   : > { %v6281_v24 = vsel %vm6271_vm7, %v6266_v12, %v6276_v56  ;;  %v6282_v44 = vsel %vm6272_vm3, %v6267_v52, %v6277_v25  ;;  %v6283_v38 = vsel %vm6273_vm0, %v6268_v53, %v6278_v63  ;;  %v6284_v17 = vmul.f32 %v11708_v20, %v6279_v4  ;;  %v7907_v12 = vld [vmem:[%s12435_s6 + $0x120] sm:$0xff]  ;;  %v7908_v52 = vld [vmem:[%s12435_s6 + $0x128] sm:$0xff]  ;;  %v7910_v55 = vld [vmem:[%s12435_s6 + $0x138] sm:$0xff] }
 0x81c   : > { %v6285_v51 = vmul.f32 0.0, %v6280_v34  ;;  %v6286_v50 = vmul.f32 %v11711_v36, %v6281_v24  ;;  %v6287_v62 = vmul.f32 0.0, %v6282_v44  ;;  %v6288_v0 = vmul.f32 %v11714_v40, %v6283_v38  ;;  %v7877_v36 = vld [vmem:[%s12435_s6 + $0x80] sm:$0xff]  ;;  %v7878_v40 = vld [vmem:[%s12435_s6 + $0x88] sm:$0xff]  ;;  %v7918_v38 = vld [vmem:[%s12435_s6 + $0x150] sm:$0xff] }
 0x81d   : > { %6289 = vst.msk [vmem:[#allocation5 + $0x11] sm:$0xff] %vm6193_vm2, %v6284_v17  ;;  %v9832_v7 = vpack.c.bf16 %v7878_v40, %v7877_v36  ;;  %v9859_v5 = vpack.c.bf16 %v7906_v45, %v7905_v49  ;;  %v9862_v53 = vpack.c.bf16 %v7908_v52, %v7907_v12  ;;  %v9865_v25 = vpack.c.bf16 %v7910_v55, %v7909_v54  ;;  %v7916_v4 = vld [vmem:[%s12435_s6 + $0x140] sm:$0xff]  ;;  %v7917_v34 = vld [vmem:[%s12435_s6 + $0x148] sm:$0xff]  ;;  %v7919_v17 = vld [vmem:[%s12435_s6 + $0x158] sm:$0xff] }
 0x81e   : > { %6292 = vst.msk [vmem:[#allocation5 + $0x29] sm:$0xff] %vm6193_vm2, %v6287_v62  ;;  %6290 = vst.msk [vmem:[#allocation5 + $0x19] sm:$0xff] %vm6193_vm2, %v6285_v51  ;;  %v9868_v44 = vpack.c.bf16 %v7917_v34, %v7916_v4  ;;  %v9871_v51 = vpack.c.bf16 %v7919_v17, %v7918_v38  ;;  %v7921_v62 = vld [vmem:[%s12435_s6 + $0x168] sm:$0xff]  ;;  %v7923_v36 = vld [vmem:[%s12435_s6 + $0x178] sm:$0xff] }
 0x81f   : > { %6293 = vst.msk [vmem:[#allocation5 + $0x31] sm:$0x7] %vm6203_vm4, %v6288_v0  ;;  %v7957_v49 = vld [vmem:[%s12435_s6 + $0x210] sm:$0xff]  ;;  %v7958_v45 = vld [vmem:[%s12435_s6 + $0x218] sm:$0xff]  ;;  %v7959_v12 = vld [vmem:[%s12435_s6 + $0x220] sm:$0xff] }
 0x820   : > { %6291 = vst.msk [vmem:[#allocation5 + $0x21] sm:$0xff] %vm6193_vm2, %v6286_v50  ;;  %v7920_v50 = vld [vmem:[%s12435_s6 + $0x160] sm:$0xff]  ;;  %v7960_v52 = vld [vmem:[%s12435_s6 + $0x228] sm:$0xff]  ;;  %v7961_v54 = vld [vmem:[%s12435_s6 + $0x230] sm:$0xff] }
 0x821   : > { %v9874_v0 = vpack.c.bf16 %v7921_v62, %v7920_v50  ;;  %v7962_v55 = vld [vmem:[%s12435_s6 + $0x238] sm:$0xff]  ;;  %v7131_v4 = vld [vmem:[#allocation5 + $0x41] sm:$0x7] }
 0x822   : > { %v7250_v34 = vld [vmem:[#allocation5 + $0x3a] sm:$0xff] }
 0x824   : > { %v12056_v1 = vld [vmem:[#allocation5 + $0x11] sm:$0xff] }
 0x825   : > { %9454 = vmatmul.mubr.msk.f32.gmra.mrb[28].mxu1 %vm6193_vm2, %v12056_v1  ;;  %v12062_v20 = vld [vmem:[#allocation5 + $0x19] sm:$0xff]  ;;  %v6296_v23 = vld [vmem:[#allocation5 + $0x10] sm:$0xff] }
 0x826   : > { %9456 = vmatprep.mubr.msk.f32.mxu1 %vm10459_vm1, %v10458_v14  ;;  %v6297_v27 = vld [vmem:[#allocation5 + $0x18] sm:$0xff]  ;;  %v6528_v57 = vld [vmem:[#allocation5 + $0xa] sm:$0xff] }
 0x827   : > { %v6311_v2 = vld [vmem:[#allocation5 + $0x21] sm:$0x7]  ;;  %v12147_v43 = vld [vmem:[#allocation5 + $0x12] sm:$0xff]  ;;  %v12203_v63 = vld [vmem:[#allocation5 + $0x28] sm:$0xff] }
 0x828   : > { %v6298_v32 = vld [vmem:[#allocation5 + $0x20] sm:$0x7]  ;;  %v6651_v24 = vld [vmem:[#allocation5 + $0x30] sm:$0x7] }
 0x829   : > { %9457 = vmatmul.mubr.msk.f32.gmra.mrb[30].mxu1 %vm6193_vm2, %v12062_v20  ;;  %v12154_v46 = vld [vmem:[#allocation5 + $0x1a] sm:$0xff]  ;;  %v6531_v9 = vld [vmem:[#allocation5 + $0x22] sm:$0x7]  ;;  %v6771_v8 = vld [vmem:[#allocation5 + $0x31] sm:$0x7] }
 0x82a   : > { %9459 = vmatprep.mubr.msk.f32.mxu1 %vm10459_vm1, %v10458_v14  ;;  %v12196_v56 = vld [vmem:[#allocation5 + $0x20] sm:$0xff]  ;;  %v12305_v30 = vld [vmem:[#allocation5 + $0x2a] sm:$0xff] }
 0x82b   : > { %v12247_v40 = vld [vmem:[#allocation5 + $0x21] sm:$0xff] }
 0x82d   : > { %9460 = vmatmul.mubr.msk.f32.gmra.mrb[32].mxu1 %vm6193_vm2, %v6311_v2  ;;  %v12254_v2 = vld [vmem:[#allocation5 + $0x29] sm:$0xff] }
 0x82e   : > { %9478 = vmatprep.mubr.msk.f32.mxu1 %vm10459_vm1, %v10458_v14 }
 0x831   : > { %9479 = vmatmul.mubr.msk.f32.vlgmr.msra.gmra.mrb[34].mxu1 %vm6193_vm2, %v6294_v3  ;;  %v7929_v3 = vld [vmem:[%s12435_s6 + $0x180] sm:$0xff] }
 0x832   : > { %9833 = vmatpush3.bf16.msra.mxu1 %v9832_v7  ;;  %9481 = vmatprep.mubr.msk.f32.mxu1 %vm10459_vm1, %v10458_v14  ;;  %v7930_v7 = vld [vmem:[%s12435_s6 + $0x188] sm:$0xff] }
 0x833   : > { %9834 = vmatprep.subr.bf16.mxu1 %v10460_v28  ;;  %v9880_v11 = vpack.c.bf16 %v7930_v7, %v7929_v3 }
 0x835   : > { %9482 = vmatmul.mubr.msk.f32.gmra.mrb[36].mxu1 %vm6193_vm2, %v6295_v10  ;;  %v7931_v10 = vld [vmem:[%s12435_s6 + $0x190] sm:$0xff] }
 0x836   : > { %9836 = vmatpush3.bf16.msra.mxu1 %v9835_v13  ;;  %9484 = vmatprep.mubr.msk.f32.mxu1 %vm10459_vm1, %v10458_v14  ;;  %v7932_v13 = vld [vmem:[%s12435_s6 + $0x198] sm:$0xff] }
 0x837   : > { %9837 = vmatprep.subr.bf16.mxu1 %v10460_v28  ;;  %v9883_v15 = vpack.c.bf16 %v7932_v13, %v7931_v10 }
 0x839   : > { %9485 = vmatmul.mubr.msk.f32.gmra.mrb[28].mxu1 %vm6193_vm2, %v6296_v23 }
 0x83a   : > { %9839 = vmatpush3.bf16.msra.mxu1 %v9838_v19  ;;  %9487 = vmatprep.mubr.msk.f32.mxu1 %vm10459_vm1, %v10458_v14  ;;  %v7934_v19 = vld [vmem:[%s12435_s6 + $0x1a8] sm:$0xff] }
 0x83b   : > { %9840 = vmatprep.subr.bf16.mxu1 %v10460_v28 }
 0x83d   : > { %9488 = vmatmul.mubr.msk.f32.gmra.mrb[38].mxu1 %vm6193_vm2, %v6297_v27 }
 0x83e   : > { %9490 = vmatprep.mubr.msk.f32.mxu1 %vm10459_vm1, %v10458_v14  ;;  %9842 = vmatpush3.bf16.msra.mxu1 %v9841_v26  ;;  %v7935_v26 = vld [vmem:[%s12435_s6 + $0x1b0] sm:$0xff] }
 0x83f   : > { %9843 = vmatprep.subr.bf16.mxu1 %v10460_v28  ;;  %v9889_v29 = vpack.c.bf16 %v7936_v16, %v7935_v26 }
 0x841   : > { %9491 = vmatmul.mubr.msk.f32.gmra.mrb[32].mxu1 %vm6193_vm2, %v6298_v32  ;;  %v7942_v32 = vld [vmem:[%s12435_s6 + $0x1c0] sm:$0xff] }
 0x842   : > { %9509 = vmatprep.mubr.msk.f32.mxu1 %vm10459_vm1, %v10458_v14 }
 0x845   : > { %9510 = vmatmul.mubr.msk.f32.vlgmr.msra.gmra.mrb[34].mxu1 %vm6193_vm2, %v6527_v33  ;;  %v7943_v33 = vld [vmem:[%s12435_s6 + $0x1c8] sm:$0xff] }
 0x846   : > { %9845 = vmatpush3.bf16.msra.mxu1 %v9844_v35  ;;  %9512 = vmatprep.mubr.msk.f32.mxu1 %vm10459_vm1, %v10458_v14  ;;  %v6891_v35 = vld [vmem:[#allocation5 + $0x32] sm:$0x7]  ;;  %v9892_v37 = vpack.c.bf16 %v7943_v33, %v7942_v32 }
 0x847   : > { %9846 = vmatprep.subr.bf16.mxu1 %v10460_v28 }
 0x849   : > { %9513 = vmatmul.mubr.msk.f32.gmra.mrb[40].mxu1 %vm6193_vm2, %v6528_v57  ;;  %v7947_v57 = vld [vmem:[%s12435_s6 + $0x1e8] sm:$0xff] }
 0x84a   : > { %9848 = vmatpush3.bf16.msra.mxu1 %v9847_v41  ;;  %9515 = vmatprep.mubr.msk.f32.mxu1 %vm10459_vm1, %v10458_v14  ;;  %v7945_v41 = vld [vmem:[%s12435_s6 + $0x1d8] sm:$0xff] }
 0x84b   : > { %9849 = vmatprep.subr.bf16.mxu1 %v10460_v28  ;;  %v9895_v42 = vpack.c.bf16 %v7945_v41, %v7944_v39 }
 0x84d   : > { %9516 = vmatmul.mubr.msk.f32.gmra.mrb[28].mxu1 %vm6193_vm2, %v12147_v43 }
 0x84e   : > { %9851 = vmatpush3.bf16.msra.mxu1 %v9850_v58  ;;  %9518 = vmatprep.mubr.msk.f32.mxu1 %vm10459_vm1, %v10458_v14  ;;  %v9898_v58 = vpack.c.bf16 %v7947_v57, %v7946_v6 }
 0x84f   : > { %9852 = vmatprep.subr.bf16.mxu1 %v10460_v28 }
 0x851   : > { %9519 = vmatmul.mubr.msk.f32.gmra.mrb[42].mxu1 %vm6193_vm2, %v12154_v46 }
 0x852   : > { %9521 = vmatprep.mubr.msk.f32.mxu1 %vm10459_vm1, %v10458_v14  ;;  %9854 = vmatpush3.bf16.msra.mxu1 %v9853_v61  ;;  %v7010_v61 = vld [vmem:[#allocation5 + $0x38] sm:$0xff] }
 0x853   : > { %9855 = vmatprep.subr.bf16.mxu1 %v10460_v28 }
 0x855   : > { %9522 = vmatmul.mubr.msk.f32.gmra.mrb[32].mxu1 %vm6193_vm2, %v6531_v9  ;;  %v7956_v9 = vld [vmem:[%s12435_s6 + $0x208] sm:$0xff] }
 0x856   : > { %9540 = vmatprep.mubr.msk.f32.mxu1 %vm10459_vm1, %v10458_v14 }
 0x859   : > { %9541 = vmatmul.mubr.msk.f32.vlgmr.msra.gmra.mrb[34].mxu1 %vm6193_vm2, %v6296_v23  ;;  %v9886_v23 = vpack.c.bf16 %v7934_v19, %v7933_v18 }
 0x85a   : > { %9857 = vmatpush3.bf16.msra.mxu1 %v9856_v48  ;;  %9543 = vmatprep.mubr.msk.f32.mxu1 %vm10459_vm1, %v10458_v14  ;;  %v9904_v48 = vpack.c.bf16 %v7956_v9, %v7955_v47 }
 0x85b   : > { %9858 = vmatprep.subr.bf16.mxu1 %v10460_v28 }
 0x85d   : > { %9544 = vmatmul.mubr.msk.f32.gmra.mrb[44].mxu1 %vm6193_vm2, %v6297_v27  ;;  %v12298_v27 = vld [vmem:[#allocation5 + $0x22] sm:$0xff] }
 0x85e   : > { %9860 = vmatpush3.bf16.msra.mxu1 %v9859_v5  ;;  %9546 = vmatprep.mubr.msk.f32.mxu1 %vm10459_vm1, %v10458_v14  ;;  %v9907_v5 = vpack.c.bf16 %v7958_v45, %v7957_v49 }
 0x85f   : > { %9861 = vmatprep.subr.bf16.mxu1 %v10460_v28 }
 0x861   : > { %9547 = vmatmul.mubr.msk.f32.gmra.mrb[28].mxu1 %vm6193_vm2, %v12196_v56 }
 0x862   : > { %9863 = vmatpush3.bf16.msra.mxu1 %v9862_v53  ;;  %9549 = vmatprep.mubr.msk.f32.mxu1 %vm10459_vm1, %v10458_v14  ;;  %v9910_v53 = vpack.c.bf16 %v7960_v52, %v7959_v12 }
 0x863   : > { %9864 = vmatprep.subr.bf16.mxu1 %v10460_v28 }
 0x865   : > { %9550 = vmatmul.mubr.msk.f32.gmra.mrb[46].mxu1 %vm6193_vm2, %v12203_v63 }
 0x866   : > { %9552 = vmatprep.mubr.msk.f32.mxu1 %vm10459_vm1, %v10458_v14  ;;  %9866 = vmatpush3.bf16.msra.mxu1 %v9865_v25  ;;  %v7130_v25 = vld [vmem:[#allocation5 + $0x39] sm:$0xff] }
 0x867   : > { %9867 = vmatprep.subr.bf16.mxu1 %v10460_v28 }
 0x869   : > { %9553 = vmatmul.mubr.msk.f32.gmra.mrb[32].mxu1 %vm6193_vm2, %v6651_v24  ;;  %v7251_v24 = vld [vmem:[#allocation5 + $0x42] sm:$0x7] }
 0x86a   : > { %9571 = vmatprep.mubr.msk.f32.mxu1 %vm10459_vm1, %v10458_v14 }
 0x86d   : > { %9572 = vmatmul.mubr.msk.f32.vlgmr.msra.gmra.mrb[34].mxu1 %vm6193_vm2, %v12056_v1  ;;  %v7922_v1 = vld [vmem:[%s12435_s6 + $0x170] sm:$0xff] }
 0x86e   : > { %9869 = vmatpush3.bf16.msra.mxu1 %v9868_v44  ;;  %9574 = vmatprep.mubr.msk.f32.mxu1 %vm10459_vm1, %v10458_v14 }
 0x86f   : > { %9870 = vmatprep.subr.bf16.mxu1 %v10460_v28 }
 0x871   : > { %9575 = vmatmul.mubr.msk.f32.gmra.mrb[48].mxu1 %vm6193_vm2, %v12062_v20  ;;  %v9877_v20 = vpack.c.bf16 %v7923_v36, %v7922_v1 }
 0x872   : > { %9872 = vmatpush3.bf16.msra.mxu1 %v9871_v51  ;;  %9577 = vmatprep.mubr.msk.f32.mxu1 %vm10459_vm1, %v10458_v14 }
 0x873   : > { %9873 = vmatprep.subr.bf16.mxu1 %v10460_v28 }
 0x875   : > { %9578 = vmatmul.mubr.msk.f32.gmra.mrb[28].mxu1 %vm6193_vm2, %v12247_v40 }
 0x876   : > { %9875 = vmatpush3.bf16.msra.mxu1 %v9874_v0  ;;  %9580 = vmatprep.mubr.msk.f32.mxu1 %vm10459_vm1, %v10458_v14 }
 0x877   : > { %9876 = vmatprep.subr.bf16.mxu1 %v10460_v28 }
 0x879   : > { %9581 = vmatmul.mubr.msk.f32.gmra.mrb[50].mxu1 %vm6193_vm2, %v12254_v2 }
 0x87a   : > { %9583 = vmatprep.mubr.msk.f32.mxu1 %vm10459_vm1, %v10458_v14  ;;  %9878 = vmatpush3.bf16.msra.mxu1 %v9877_v20 }
 0x87b   : > { %9879 = vmatprep.subr.bf16.mxu1 %v10460_v28 }
 0x87d   : > { %9584 = vmatmul.mubr.msk.f32.gmra.mrb[32].mxu1 %vm6193_vm2, %v6771_v8 }
 0x87e   : > { %9602 = vmatprep.mubr.msk.f32.mxu1 %vm10459_vm1, %v10458_v14 }
 0x881   : > { %9603 = vmatmul.mubr.msk.f32.vlgmr.msra.gmra.mrb[34].mxu1 %vm6193_vm2, %v12147_v43  ;;  %v7009_v43 = vld [vmem:[#allocation5 + $0x30] sm:$0xff] }
 0x882   : > { %9881 = vmatpush3.bf16.msra.mxu1 %v9880_v11  ;;  %9605 = vmatprep.mubr.msk.f32.mxu1 %vm10459_vm1, %v10458_v14 }
 0x883   : > { %9882 = vmatprep.subr.bf16.mxu1 %v10460_v28 }
 0x885   : > { %9606 = vmatmul.mubr.msk.f32.gmra.mrb[52].mxu1 %vm6193_vm2, %v12154_v46  ;;  %v9901_v46 = vpack.c.bf16 %v7949_v60, %v7948_v59 }
 0x886   : > { %9884 = vmatpush3.bf16.msra.mxu1 %v9883_v15  ;;  %9608 = vmatprep.mubr.msk.f32.mxu1 %vm10459_vm1, %v10458_v14 }
 0x887   : > { %9885 = vmatprep.subr.bf16.mxu1 %v10460_v28 }
 0x889   : > { %9609 = vmatmul.mubr.msk.f32.gmra.mrb[28].mxu1 %vm6193_vm2, %v12298_v27 }
 0x88a   : > { %9887 = vmatpush3.bf16.msra.mxu1 %v9886_v23  ;;  %9611 = vmatprep.mubr.msk.f32.mxu1 %vm10459_vm1, %v10458_v14 }
 0x88b   : > { %9888 = vmatprep.subr.bf16.mxu1 %v10460_v28 }
 0x88d   : > { %9612 = vmatmul.mubr.msk.f32.gmra.mrb[54].mxu1 %vm6193_vm2, %v12305_v30 }
 0x88e   : > { %9614 = vmatprep.mubr.msk.f32.mxu1 %vm10459_vm1, %v10458_v14  ;;  %9890 = vmatpush3.bf16.msra.mxu1 %v9889_v29 }
 0x88f   : > { %9891 = vmatprep.subr.bf16.mxu1 %v10460_v28 }
 0x891   : > { %9615 = vmatmul.mubr.msk.f32.gmra.mrb[32].mxu1 %vm6193_vm2, %v6891_v35 }
 0x892   : > { %9633 = vmatprep.mubr.msk.f32.mxu1 %vm10459_vm1, %v10458_v14 }
 0x895   : > { %9634 = vmatmul.mubr.msk.f32.vlgmr.msra.gmra.mrb[34].mxu1 %vm6193_vm2, %v12196_v56  ;;  %v7129_v56 = vld [vmem:[#allocation5 + $0x31] sm:$0xff] }
 0x896   : > { %9893 = vmatpush3.bf16.msra.mxu1 %v9892_v37  ;;  %9636 = vmatprep.mubr.msk.f32.mxu1 %vm10459_vm1, %v10458_v14 }
 0x897   : > { %9894 = vmatprep.subr.bf16.mxu1 %v10460_v28 }
 0x899   : > { %9637 = vmatmul.mubr.msk.f32.gmra.mrb[56].mxu1 %vm6193_vm2, %v12203_v63  ;;  %v9913_v63 = vpack.c.bf16 %v7962_v55, %v7961_v54 }
 0x89a   : > { %9896 = vmatpush3.bf16.msra.mxu1 %v9895_v42  ;;  %9639 = vmatprep.mubr.msk.f32.mxu1 %vm10459_vm1, %v10458_v14 }
 0x89b   : > { %9897 = vmatprep.subr.bf16.mxu1 %v10460_v28 }
 0x89d   : > { %9640 = vmatmul.mubr.msk.f32.gmra.mrb[28].mxu1 %vm6193_vm2, %v7009_v43 }
 0x89e   : > { %9899 = vmatpush3.bf16.msra.mxu1 %v9898_v58  ;;  %9642 = vmatprep.mubr.msk.f32.mxu1 %vm10459_vm1, %v10458_v14 }
 0x89f   : > { %9900 = vmatprep.subr.bf16.mxu1 %v10460_v28 }
 0x8a1   : > { %9643 = vmatmul.mubr.msk.f32.gmra.mrb[58].mxu1 %vm6193_vm2, %v7010_v61 }
 0x8a2   : > { %9645 = vmatprep.mubr.msk.f32.mxu1 %vm10459_vm1, %v10458_v14  ;;  %9902 = vmatpush3.bf16.msra.mxu1 %v9901_v46  ;;  %v7968_v46 = vld [vmem:[%s12436_s7] ss:$0 sm:$0xff] }
 0x8a3   : > { %9903 = vmatprep.subr.bf16.mxu1 %v10460_v28 }
 0x8a5   : > { %9646 = vmatmul.mubr.msk.f32.gmra.mrb[32].mxu1 %vm6193_vm2, %v7011_v31 }
 0x8a6   : > { %9664 = vmatprep.mubr.msk.f32.mxu1 %vm10459_vm1, %v10458_v14 }
 0x8a9   : > { %9665 = vmatmul.mubr.msk.f32.vlgmr.msra.gmra.mrb[34].mxu1 %vm6193_vm2, %v12247_v40 }
 0x8aa   : > { %9905 = vmatpush3.bf16.msra.mxu1 %v9904_v48  ;;  %9667 = vmatprep.mubr.msk.f32.mxu1 %vm10459_vm1, %v10458_v14 }
 0x8ab   : > { %9906 = vmatprep.subr.bf16.mxu1 %v10460_v28 }
 0x8ad   : > { %9668 = vmatmul.mubr.msk.f32.gmra.mrb[60].mxu1 %vm6193_vm2, %v12254_v2 }
 0x8ae   : > { %9908 = vmatpush3.bf16.msra.mxu1 %v9907_v5  ;;  %9670 = vmatprep.mubr.msk.f32.mxu1 %vm10459_vm1, %v10458_v14 }
 0x8af   : > { %9909 = vmatprep.subr.bf16.mxu1 %v10460_v28 }
 0x8b1   : > { %9671 = vmatmul.mubr.msk.f32.gmra.mrb[28].mxu1 %vm6193_vm2, %v7129_v56 }
 0x8b2   : > { %9911 = vmatpush3.bf16.msra.mxu1 %v9910_v53  ;;  %9673 = vmatprep.mubr.msk.f32.mxu1 %vm10459_vm1, %v10458_v14 }
 0x8b3   : > { %9912 = vmatprep.subr.bf16.mxu1 %v10460_v28  ;;  %v7249_v28 = vld [vmem:[#allocation5 + $0x32] sm:$0xff] }
 0x8b5   : > { %9674 = vmatmul.mubr.msk.f32.gmra.mrb[62].mxu1 %vm6193_vm2, %v7130_v25 }
 0x8b6   : > { %9676 = vmatprep.mubr.msk.f32.mxu1 %vm10459_vm1, %v10458_v14  ;;  %9914 = vmatpush3.bf16.msra.mxu1 %v9913_v63 }
 0x8b9   : > { %9677 = vmatmul.mubr.msk.f32.gmra.mrb[32].mxu1 %vm6193_vm2, %v7131_v4 }
 0x8ba   : > { %9695 = vmatprep.mubr.msk.f32.mxu1 %vm10459_vm1, %v10458_v14 }
 0x8bd   : > { %9696 = vmatmul.mubr.msk.f32.vlgmr.msra.gmra.mrb[34].mxu1 %vm6193_vm2, %v12298_v27 }
 0x8be   : > { %9698 = vmatprep.mubr.msk.f32.mxu1 %vm10459_vm1, %v10458_v14 }
 0x8c1   : > { %9699 = vmatmul.mubr.msk.f32.gmra.mrb[64].mxu1 %vm6193_vm2, %v12305_v30 }
 0x8c2   : > { %9701 = vmatprep.mubr.msk.f32.mxu1 %vm10459_vm1, %v10458_v14 }
 0x8c5   : > { %9702 = vmatmul.mubr.msk.f32.gmra.mrb[28].mxu1 %vm6193_vm2, %v7249_v28 }
 0x8c6   : > { %9704 = vmatprep.mubr.msk.f32.mxu1 %vm10459_vm1, %v10458_v14 }
 0x8c9   : > { %9705 = vmatmul.mubr.msk.f32.gmra.mrb[66].mxu1 %vm6193_vm2, %v7250_v34 }
 0x8ca   : > { %9707 = vmatprep.mubr.msk.f32.mxu1 %vm10459_vm1, %v10458_v14  ;;  %vm7373_vm1 = vcmask 1042432  }
 0x8cc   : > { %v6402_v50 = vpop.f32.mrb[60].mxu0 }
 0x8cd   : > { %9708 = vmatmul.mubr.msk.f32.gmra.mrb[32].mxu1 %vm6193_vm2, %v7251_v24  ;;  %v9449_v62 = vpop.f32.mrb[61].mxu0 }
 0x8fc   : > { %v6416_v44 = vpop.f32.mrb[30].mxu1 }
 0x8fd   : > { %v9458_v38 = vpop.f32.mrb[31].mxu1 }
 0x908   : > { %v6510_v17 = vpop.f32.mrb[36].mxu1 }
 0x909   : > { %v9483_v51 = vpop.f32.mrb[37].mxu1 }
 0x910   : > { %v6519_v0 = vpop.f32.mrb[38].mxu1 }
 0x911   : > { %v9489_v1 = vpop.f32.mrb[39].mxu1 }
 0x91c   : > { %v6627_v36 = vpop.f32.mrb[40].mxu1 }
 0x91d   : > { %v9514_v40 = vpop.f32.mrb[41].mxu1 }
 0x924   : > { %v6636_v20 = vpop.f32.mrb[42].mxu1 }
 0x925   : > { %v9520_v2 = vpop.f32.mrb[43].mxu1 }
 0x930   : > { %v6747_v3 = vpop.f32.mrb[44].mxu1 }
 0x931   : > { %v9545_v7 = vpop.f32.mrb[45].mxu1 }
 0x938   : > { %v6756_v8 = vpop.f32.mrb[46].mxu1 }
 0x939   : > { %v9551_v11 = vpop.f32.mrb[47].mxu1 }
 0x944   : > { %v6867_v14 = vpop.f32.mrb[48].mxu1 }
 0x945   : > { %v9576_v10 = vpop.f32.mrb[49].mxu1 }
 0x94c   : > { %v6876_v13 = vpop.f32.mrb[50].mxu1 }
 0x94d   : > { %v9582_v15 = vpop.f32.mrb[51].mxu1 }
 0x958   : > { %v6987_v18 = vpop.f32.mrb[52].mxu1 }
 0x959   : > { %v9607_v19 = vpop.f32.mrb[53].mxu1 }
 0x960   : > { %v6996_v21 = vpop.f32.mrb[54].mxu1 }
 0x961   : > { %v9613_v22 = vpop.f32.mrb[55].mxu1 }
 0x96c   : > { %v7107_v23 = vpop.f32.mrb[56].mxu1 }
 0x96d   : > { %v9638_v26 = vpop.f32.mrb[57].mxu1 }
 0x974   : > { %v7116_v16 = vpop.f32.mrb[58].mxu1 }
 0x975   : > { %v9644_v27 = vpop.f32.mrb[59].mxu1 }
 0x980   : > { %v7227_v29 = vpop.f32.mrb[60].mxu1 }
 0x981   : > { %v9669_v30 = vpop.f32.mrb[61].mxu1 }
 0x988   : > { %v7236_v32 = vpop.f32.mrb[62].mxu1 }
 0x989   : > { %v9675_v33 = vpop.f32.mrb[63].mxu1 }
 0x990   : > { %v7342_v35 = vpop.f32.mrb[34].mxu1 }
 0x991   : > { %v9930_v37 = vadd.f32 %v7342_v35, %v6402_v50  ;;  %v9697_v39 = vpop.f32.mrb[35].mxu1 }
 0x994   : > { %v7347_v41 = vpop.f32.mrb[64].mxu1 }
 0x995   : > { %v9700_v42 = vpop.f32.mrb[65].mxu1 }
 0x998   : > { %v7351_v6 = vpop.f32.mrb[28].mxu1 }
 0x999   : > { %v7368_v57 = vrot.slane %v7351_v6, 5  ;;  %v9703_v58 = vpop.f32.mrb[29].mxu1 }
 0x99b   : > { %v7374_v59 = vsel %vm7373_vm1, %v9930_v37, %v7368_v57 }
 0x99c   : > { %v7356_v60 = vpop.f32.mrb[66].mxu1 }
 0x99d   : > { %v9706_v43 = vpop.f32.mrb[67].mxu1 }
 0x9a0   : > { %v7360_v61 = vpop.f32.mrb[32].mxu1 }
 0x9a1   : > { %v7371_v31 = vrot.slane %v7360_v61, 2  ;;  %v9709_v47 = vpop.f32.mrb[33].mxu1 }
 0x9a3   : > { %v7376_v9 = vsel %vm7375_vm8, %v7374_v59, %v7371_v31  ;;  %v7385_v48 = vadd.f32 %v7968_v46, %v7371_v31 }
 0x9a4   : > { %v7384_v49 = vadd.f32 %v7968_v46, %v7376_v9 }
 0x9a5   : > { %v7387_v45 = vsub.f32 0.0, %v7385_v48 }
 0x9a6   : > { %v7386_v5 = vsub.f32 0.0, %v7384_v49 }
 0x9a7   : > { %v7390_v12 = vmul.f32 1.442695, %v7387_v45 }
 0x9a8   : > { %v7388_v52 = vmul.f32 1.442695, %v7386_v5 }
 0x9a9   : > { %10442 = vpow2.f32 %v7390_v12 }
 0x9aa   : > { %10444 = vpow2.f32 %v7388_v52 }
 0x9b3   : > { %v10443_v53 = vpop.eup %10442 }
 0x9b4   : > { %v10445_v54 = vpop.eup %10444  ;;  %v7393_v55 = vadd.f32 1.0, %v10443_v53 }
 0x9b5   : > { %v7392_v56 = vadd.f32 1.0, %v10445_v54 }
 0x9b6   : > { %10446 = vrcp.f32 %v7393_v55 }
 0x9b7   : > { %10448 = vrcp.f32 %v7392_v56 }
 0x9c0   : > { %v10447_v25 = vpop.eup %10446 }
 0x9c1   : > { %v10449_v63 = vpop.eup %10448  ;;  %7401 = vst.msk [vmem:[%s305_s24 + $0x8] sm:$0x1] %vm7400_vm9, %v10447_v25 }
 0x9c2   : > { %7399 = vst.msk [vmem:[%s305_s24] sm:$0xff] %vm7398_vm10, %v10449_v63 }
 0x9c3 PF: > { %s18_s27 = sadd.s32 1, %s10456_s27  }
 0x9c4   : > { %p15_p4 = scmp.ge.s32.totalorder %s18_s27, 4  }
 0x9c6   :  { %17 = sbr.rel (!%p15_p4) target bundleno = 1 (0x1), region = 181 }

</bundles_post_ra>
